<compile_context>
chip_gen: v7x
topology: tpu7x:2x2x1
jax: 0.10.0
libtpu: 0.0.40
codegen_flags: <defaults>
</compile_context>

<pallas_src>
import functools

import numpy as np
import jax
import jax.numpy as jnp
from jax import lax
from jax.experimental import pallas as pl
from jax.experimental.pallas import tpu as pltpu


_W_ALIGN = 8  # sublane-aligned left margin for the in-kernel padded conv2 buffer


# ----------------------------------------------------------------------------
# Fused kernel: conv1 -> relu -> pool -> conv2 -> relu -> pool -> MLP -> softmax
# ----------------------------------------------------------------------------
def _cnn_fused_kernel(x_ref, w1_ref, b1_ref, w2_ref, b2_ref,
                      wl1_ref, bl1_ref, wl2_ref, bl2_ref,
                      o_ref,
                      y1s, t1s, xp2, y2s, t2s, p2s,
                      *, pad2, w_off):
    f32 = jnp.float32
    NB, Hp1, Wp1, C0 = x_ref.shape          # pre-padded NHWC conv1 input block
    KH1, KW1, _, C1 = w1_ref.shape
    KH2, KW2, _, C2 = w2_ref.shape
    Hc1, Wc1 = Hp1 - KH1 + 1, Wp1 - KW1 + 1
    Hq1, Wq1 = Hc1 // 2, Wc1 // 2
    Hc2 = Hq1 + 2 * pad2 - KH2 + 1
    Wc2 = Wq1 + 2 * pad2 - KW2 + 1
    Hq2, Wq2 = Hc2 // 2, Wc2 // 2
    HID = wl1_ref.shape[-1]

    # ---- conv1: KH*KW shifted-patch matmuls, batch folded into the MXU M dim.
    acc1 = jnp.zeros((NB * Hc1 * Wc1, C1), f32)
    for kh in range(KH1):
        for kw in range(KW1):
            patch = x_ref[:, kh:kh + Hc1, kw:kw + Wc1, :].astype(f32)
            acc1 = acc1 + jnp.dot(patch.reshape(NB * Hc1 * Wc1, C0),
                                  w1_ref[kh, kw], preferred_element_type=f32)
    y1s[...] = jnp.maximum(acc1 + b1_ref[...], 0.0)          # bias + ReLU

    # ---- MaxPool2d(2): stride-2 reads over the flat (n, h, w) row dimension.
    wp1 = jnp.maximum(y1s[pl.ds(0, NB * Hc1 * Wq1, 2)],
                      y1s[pl.ds(1, NB * Hc1 * Wq1, 2)])      # pool over W
    t1s[...] = wp1.reshape(NB * Hc1, Wq1, C1)
    pooled1 = jnp.maximum(t1s[pl.ds(0, NB * Hq1, 2)],
                          t1s[pl.ds(1, NB * Hq1, 2)])        # pool over H

    # ---- conv2: zero-pad the pooled activations in VMEM (no HBM round trip).
    # The image is placed at a sublane-aligned W offset (w_off) so the store is
    # tile-aligned; the tap reads below use unaligned offsets (cheap for loads).
    xp2[...] = jnp.zeros(xp2.shape, f32)
    xp2[:, pad2:pad2 + Hq1, w_off:w_off + Wq1, :] = pooled1.reshape(NB, Hq1, Wq1, C1)
    wbase = w_off - pad2
    acc2 = jnp.zeros((NB * Hc2 * Wc2, C2), f32)
    for kh in range(KH2):
        for kw in range(KW2):
            patch = xp2[:, kh:kh + Hc2, wbase + kw:wbase + kw + Wc2, :]
            acc2 = acc2 + jnp.dot(patch.reshape(NB * Hc2 * Wc2, C1),
                                  w2_ref[kh, kw], preferred_element_type=f32)
    y2s[...] = jnp.maximum(acc2 + b2_ref[...], 0.0)

    wp2 = jnp.maximum(y2s[pl.ds(0, NB * Hc2 * Wq2, 2)],
                      y2s[pl.ds(1, NB * Hc2 * Wq2, 2)])
    t2s[...] = wp2.reshape(NB * Hc2, Wq2, C2)
    pooled2 = jnp.maximum(t2s[pl.ds(0, NB * Hq2, 2)],
                          t2s[pl.ds(1, NB * Hq2, 2)])
    p2s[...] = pooled2.reshape(NB, Hq2, Wq2, C2)             # NHWC, flatten source

    # ---- flatten + Linear -> Linear -> softmax.  PyTorch's x.view(N, -1) is in
    # NCHW order; that permutation was pre-folded into wl1's row layout, so the
    # flatten reduces to a sum of per-spatial-position matmuls.
    hacc = jnp.zeros((NB, HID), f32)
    for hq in range(Hq2):
        for wq in range(Wq2):
            hacc = hacc + jnp.dot(p2s[:, hq, wq, :], wl1_ref[hq, wq],
                                  preferred_element_type=f32)
    h1 = hacc + bl1_ref[...]
    logits = jnp.dot(h1, wl2_ref[...], preferred_element_type=f32) + bl2_ref[...]

    m = jnp.max(logits, axis=1, keepdims=True)
    e = jnp.exp(logits - m)
    denom = jnp.sum(e, axis=1, keepdims=True)
    probs = e * pl.reciprocal(denom, approx=True)            # EUP slot, near-free
    o_ref[:, 0, :] = probs.astype(o_ref.dtype)


# ----------------------------------------------------------------------------
# One-time parameter layout preparation (hoisted out of the per-call path)
# ----------------------------------------------------------------------------
def prepare_params(params, pooled_hw):
    hq, wq = pooled_hw
    c2 = params["w_c2"].shape[0]
    hid = params["w_l1"].shape[0]
    # rows of w_l1 are indexed (c, h, w) by the NCHW flatten; re-order to (h, w, c)
    wl1 = params["w_l1"].T.reshape(c2, hq, wq, hid).transpose(1, 2, 0, 3)
    return {
        "w1": jnp.transpose(params["w_c1"], (2, 3, 1, 0)).astype(jnp.float32),  # OIHW->HWIO
        "b1": params["b_c1"].reshape(1, -1).astype(jnp.float32),
        "w2": jnp.transpose(params["w_c2"], (2, 3, 1, 0)).astype(jnp.float32),
        "b2": params["b_c2"].reshape(1, -1).astype(jnp.float32),
        "wl1": jnp.asarray(wl1, jnp.float32),                                   # (Hq2,Wq2,C2,HID)
        "bl1": params["b_l1"].reshape(1, -1).astype(jnp.float32),
        "wl2": params["w_l2"].T.astype(jnp.float32),                            # (HID, NCLS)
        "bl2": params["b_l2"].reshape(1, -1).astype(jnp.float32),
    }


def _pick_batch_block(n):
    """One batch element per TensorCore on multi-core chips (v7x / megacore);
    the whole batch in a single grid step on single-core chips (v5e / v6e)."""
    try:
        kind = jax.devices()[0].device_kind.lower()
    except Exception:
        kind = ""
    multi_core = any(tag in kind for tag in ("v7", "7x", "v4", "v5p"))
    if multi_core and n % 2 == 0:
        return n // 2
    return n


def _block_out_hw(h, w, cfg):
    k, s, p = cfg[2], cfg[3], cfg[4]
    hc = (h + 2 * p - k) // s + 1
    wc = (w + 2 * p - k) // s + 1
    return hc // 2, wc // 2


# ----------------------------------------------------------------------------
# Forward pass: one fused pallas_call
# ----------------------------------------------------------------------------
def cnn_forward(x_nchw, prep, *, conv1_cfg, conv2_cfg, nb):
    s1, p1 = conv1_cfg[3], conv1_cfg[4]
    s2, p2 = conv2_cfg[3], conv2_cfg[4]
    # TODO(synk): only stride == 1 convolutions are implemented in the fused kernel.
    assert s1 == 1 and s2 == 1, "fused Pallas kernel implements stride=1 only"
    assert p2 <= _W_ALIGN

    # NCHW -> NHWC + conv1 zero-padding fused into a single tiny XLA relayout op.
    x = jnp.transpose(x_nchw, (0, 2, 3, 1)).astype(jnp.float32)
    x = jnp.pad(x, ((0, 0), (p1, p1), (p1, p1), (0, 0)))

    N, Hp1, Wp1, C0 = x.shape
    KH1, KW1, _, C1 = prep["w1"].shape
    KH2, KW2, _, C2 = prep["w2"].shape
    Hc1, Wc1 = Hp1 - KH1 + 1, Wp1 - KW1 + 1
    assert Hc1 % 2 == 0 and Wc1 % 2 == 0
    Hq1, Wq1 = Hc1 // 2, Wc1 // 2
    Hc2 = Hq1 + 2 * p2 - KH2 + 1
    Wc2 = Wq1 + 2 * p2 - KW2 + 1
    assert Hc2 % 2 == 0 and Wc2 % 2 == 0
    Hq2, Wq2 = Hc2 // 2, Wc2 // 2
    HID = prep["wl1"].shape[-1]
    NCLS = prep["wl2"].shape[-1]
    assert N % nb == 0

    kernel = functools.partial(_cnn_fused_kernel, pad2=p2, w_off=_W_ALIGN)
    out = pl.pallas_call(
        kernel,
        out_shape=jax.ShapeDtypeStruct((N, 1, NCLS), jnp.float32),
        grid_spec=pltpu.PrefetchScalarGridSpec(
            num_scalar_prefetch=0,
            grid=(N // nb,),
            in_specs=[
                pl.BlockSpec((nb, Hp1, Wp1, C0), lambda b: (b, 0, 0, 0)),
                pl.BlockSpec((KH1, KW1, C0, C1), lambda b: (0, 0, 0, 0)),
                pl.BlockSpec((1, C1), lambda b: (0, 0)),
                pl.BlockSpec((KH2, KW2, C1, C2), lambda b: (0, 0, 0, 0)),
                pl.BlockSpec((1, C2), lambda b: (0, 0)),
                pl.BlockSpec((Hq2, Wq2, C2, HID), lambda b: (0, 0, 0, 0)),
                pl.BlockSpec((1, HID), lambda b: (0, 0)),
                pl.BlockSpec((HID, NCLS), lambda b: (0, 0)),
                pl.BlockSpec((1, NCLS), lambda b: (0, 0)),
            ],
            out_specs=pl.BlockSpec((nb, 1, NCLS), lambda b: (b, 0, 0)),
            scratch_shapes=[
                pltpu.VMEM((nb * Hc1 * Wc1, C1), jnp.float32),                      # conv1 ReLU out
                pltpu.VMEM((nb * Hc1, Wq1, C1), jnp.float32),                       # conv1 W-pooled
                pltpu.VMEM((nb, Hq1 + 2 * p2, _W_ALIGN + Wq1 + p2, C1), jnp.float32),  # padded conv2 in
                pltpu.VMEM((nb * Hc2 * Wc2, C2), jnp.float32),                      # conv2 ReLU out
                pltpu.VMEM((nb * Hc2, Wq2, C2), jnp.float32),                       # conv2 W-pooled
                pltpu.VMEM((nb, Hq2, Wq2, C2), jnp.float32),                        # pooled2 (flatten)
            ],
        ),
        compiler_params=pltpu.CompilerParams(dimension_semantics=("parallel",)),
    )(x, prep["w1"], prep["b1"], prep["w2"], prep["b2"],
      prep["wl1"], prep["bl1"], prep["wl2"], prep["bl2"])
    return out[:, 0, :]


# ----------------------------------------------------------------------------
# Pure-JAX reference (mirrors the PyTorch module semantics exactly)
# ----------------------------------------------------------------------------
def ref_forward(x_nchw, params, conv1_cfg, conv2_cfg):
    def conv_block(x, w_oihw, b, stride, pad):
        y = lax.conv_general_dilated(
            x, w_oihw, (stride, stride), [(pad, pad), (pad, pad)],
            dimension_numbers=("NCHW", "OIHW", "NCHW"),
            precision=lax.Precision.HIGHEST)
        y = jnp.maximum(y + b[None, :, None, None], 0.0)
        return lax.reduce_window(y, -jnp.inf, lax.max,
                                 (1, 1, 2, 2), (1, 1, 2, 2), "VALID")

    y = conv_block(x_nchw, params["w_c1"], params["b_c1"], conv1_cfg[3], conv1_cfg[4])
    y = conv_block(y, params["w_c2"], params["b_c2"], conv2_cfg[3], conv2_cfg[4])
    flat = y.reshape(y.shape[0], -1)
    h = flat @ params["w_l1"].T + params["b_l1"]
    logits = h @ params["w_l2"].T + params["b_l2"]
    return jax.nn.softmax(logits, axis=1)


if __name__ == "__main__":
    # Module config: CNN(conv1, conv2, linear)
    conv1_cfg = (4, 8, 3, 1, 1)      # (in, out, kernel, stride, padding)
    conv2_cfg = (8, 16, 3, 1, 1)
    linear_cfg = (16 * 4 * 4, 32, 10)
    N, H, W = 2, 16, 16

    key = jax.random.PRNGKey(0)
    ks = jax.random.split(key, 9)
    x = jax.random.normal(ks[0], (N, conv1_cfg[0], H, W), jnp.float32)
    params = {
        "w_c1": 0.10 * jax.random.normal(
            ks[1], (conv1_cfg[1], conv1_cfg[0], conv1_cfg[2], conv1_cfg[2]), jnp.float32),
        "b_c1": 0.10 * jax.random.normal(ks[2], (conv1_cfg[1],), jnp.float32),
        "w_c2": 0.10 * jax.random.normal(
            ks[3], (conv2_cfg[1], conv2_cfg[0], conv2_cfg[2], conv2_cfg[2]), jnp.float32),
        "b_c2": 0.10 * jax.random.normal(ks[4], (conv2_cfg[1],), jnp.float32),
        "w_l1": 0.05 * jax.random.normal(ks[5], (linear_cfg[1], linear_cfg[0]), jnp.float32),
        "b_l1": 0.05 * jax.random.normal(ks[6], (linear_cfg[1],), jnp.float32),
        "w_l2": 0.10 * jax.random.normal(ks[7], (linear_cfg[2], linear_cfg[1]), jnp.float32),
        "b_l2": 0.10 * jax.random.normal(ks[8], (linear_cfg[2],), jnp.float32),
    }

    hq1, wq1 = _block_out_hw(H, W, conv1_cfg)
    hq2, wq2 = _block_out_hw(hq1, wq1, conv2_cfg)
    assert conv2_cfg[1] * hq2 * wq2 == linear_cfg[0]

    prep = prepare_params(params, (hq2, wq2))   # one-time weight relayout (hoisted)
    nb = _pick_batch_block(N)

    fwd = jax.jit(functools.partial(cnn_forward, conv1_cfg=conv1_cfg,
                                    conv2_cfg=conv2_cfg, nb=nb))
    out = jax.block_until_ready(fwd(x, prep))

    ref = np.asarray(ref_forward(x, params, conv1_cfg, conv2_cfg))
    out_np = np.asarray(out)
    assert out_np.shape == (N, linear_cfg[2])
    # DEFAULT MXU precision + approximate reciprocal vs. a HIGHEST-precision
    # f32 reference -> slightly looser tolerances than bit-level.
    np.testing.assert_allclose(out_np, ref, rtol=5e-3, atol=5e-3)
    np.testing.assert_allclose(out_np.sum(axis=1), np.ones(N), rtol=2e-3, atol=2e-3)

    print("KERNEL_OK")
</pallas_src>

<mosaic_0001>
module attributes {stable_mosaic.version = 11 : i64} {
  func.func @_cnn_fused_kernel(%arg0: i32, %arg1: memref<2x18x18x4xf32, #tpu.memory_space<vmem>>, %arg2: memref<3x3x4x8xf32, #tpu.memory_space<vmem>>, %arg3: memref<1x8xf32, #tpu.memory_space<vmem>>, %arg4: memref<3x3x8x16xf32, #tpu.memory_space<vmem>>, %arg5: memref<1x16xf32, #tpu.memory_space<vmem>>, %arg6: memref<4x4x16x32xf32, #tpu.memory_space<vmem>>, %arg7: memref<1x32xf32, #tpu.memory_space<vmem>>, %arg8: memref<32x10xf32, #tpu.memory_space<vmem>>, %arg9: memref<1x10xf32, #tpu.memory_space<vmem>>, %arg10: memref<2x1x10xf32, #tpu.memory_space<vmem>>, %arg11: memref<512x8xf32, #tpu.memory_space<vmem>>, %arg12: memref<32x8x8xf32, #tpu.memory_space<vmem>>, %arg13: memref<2x10x17x8xf32, #tpu.memory_space<vmem>>, %arg14: memref<128x16xf32, #tpu.memory_space<vmem>>, %arg15: memref<16x4x16xf32, #tpu.memory_space<vmem>>, %arg16: memref<2x4x4x16xf32, #tpu.memory_space<vmem>>) attributes {dimension_semantics = [#tpu.dimension_semantics<parallel>], iteration_bounds = array<i64: 1>, scalar_prefetch = 0 : i64, scratch_operands = 6 : i64, tpu.core_type = #tpu.core_type<tc>, window_params = [{transform_indices = @transform_0, window_bounds = array<i64: 2, 18, 18, 4>}, {pipeline_mode = #tpu.pipeline_mode<synchronous>, transform_indices = @transform_1, window_bounds = array<i64: 3, 3, 4, 8>}, {pipeline_mode = #tpu.pipeline_mode<synchronous>, transform_indices = @transform_2, window_bounds = array<i64: 1, 8>}, {pipeline_mode = #tpu.pipeline_mode<synchronous>, transform_indices = @transform_3, window_bounds = array<i64: 3, 3, 8, 16>}, {pipeline_mode = #tpu.pipeline_mode<synchronous>, transform_indices = @transform_4, window_bounds = array<i64: 1, 16>}, {pipeline_mode = #tpu.pipeline_mode<synchronous>, transform_indices = @transform_5, window_bounds = array<i64: 4, 4, 16, 32>}, {pipeline_mode = #tpu.pipeline_mode<synchronous>, transform_indices = @transform_6, window_bounds = array<i64: 1, 32>}, {pipeline_mode = #tpu.pipeline_mode<synchronous>, transform_indices = @transform_7, window_bounds = array<i64: 32, 10>}, {pipeline_mode = #tpu.pipeline_mode<synchronous>, transform_indices = @transform_8, window_bounds = array<i64: 1, 10>}, {transform_indices = @transform_9, window_bounds = array<i64: 2, 1, 10>}]} {
    %cst = arith.constant 0.000000e+00 : f32
    %0 = vector.broadcast %cst : f32 to vector<512x8xf32>
    %c0 = arith.constant 0 : index
    %c0_0 = arith.constant 0 : index
    %c0_1 = arith.constant 0 : index
    %c0_2 = arith.constant 0 : index
    %1 = vector.load %arg1[%c0, %c0_0, %c0_1, %c0_2] : memref<2x18x18x4xf32, #tpu.memory_space<vmem>>, vector<2x16x16x4xf32>
    %2 = vector.shape_cast %1 : vector<2x16x16x4xf32> to vector<512x4xf32>
    %c0_3 = arith.constant 0 : index
    %c0_4 = arith.constant 0 : index
    %c0_5 = arith.constant 0 : index
    %c0_6 = arith.constant 0 : index
    %3 = vector.load %arg2[%c0_3, %c0_4, %c0_5, %c0_6] : memref<3x3x4x8xf32, #tpu.memory_space<vmem>>, vector<1x1x4x8xf32>
    %4 = vector.shape_cast %3 : vector<1x1x4x8xf32> to vector<4x8xf32>
    %cst_7 = arith.constant dense<0.000000e+00> : vector<512x8xf32>
    %5 = tpu.matmul %2, %4, %cst_7 {dimension_numbers = #tpu.dot_dimension_numbers<[1], [0], [0], [1], [0, 0, 1, 1], [], []>} : vector<512x4xf32>, vector<4x8xf32>, vector<512x8xf32> -> vector<512x8xf32>
    %6 = arith.addf %0, %5 : vector<512x8xf32>
    %c0_8 = arith.constant 0 : index
    %c0_9 = arith.constant 0 : index
    %c1 = arith.constant 1 : index
    %c0_10 = arith.constant 0 : index
    %7 = vector.load %arg1[%c0_8, %c0_9, %c1, %c0_10] : memref<2x18x18x4xf32, #tpu.memory_space<vmem>>, vector<2x16x16x4xf32>
    %8 = vector.shape_cast %7 : vector<2x16x16x4xf32> to vector<512x4xf32>
    %c0_11 = arith.constant 0 : index
    %c1_12 = arith.constant 1 : index
    %c0_13 = arith.constant 0 : index
    %c0_14 = arith.constant 0 : index
    %9 = vector.load %arg2[%c0_11, %c1_12, %c0_13, %c0_14] : memref<3x3x4x8xf32, #tpu.memory_space<vmem>>, vector<1x1x4x8xf32>
    %10 = vector.shape_cast %9 : vector<1x1x4x8xf32> to vector<4x8xf32>
    %cst_15 = arith.constant dense<0.000000e+00> : vector<512x8xf32>
    %11 = tpu.matmul %8, %10, %cst_15 {dimension_numbers = #tpu.dot_dimension_numbers<[1], [0], [0], [1], [0, 0, 1, 1], [], []>} : vector<512x4xf32>, vector<4x8xf32>, vector<512x8xf32> -> vector<512x8xf32>
    %12 = arith.addf %6, %11 : vector<512x8xf32>
    %c0_16 = arith.constant 0 : index
    %c0_17 = arith.constant 0 : index
    %c2 = arith.constant 2 : index
    %c0_18 = arith.constant 0 : index
    %13 = vector.load %arg1[%c0_16, %c0_17, %c2, %c0_18] : memref<2x18x18x4xf32, #tpu.memory_space<vmem>>, vector<2x16x16x4xf32>
    %14 = vector.shape_cast %13 : vector<2x16x16x4xf32> to vector<512x4xf32>
    %c0_19 = arith.constant 0 : index
    %c2_20 = arith.constant 2 : index
    %c0_21 = arith.constant 0 : index
    %c0_22 = arith.constant 0 : index
    %15 = vector.load %arg2[%c0_19, %c2_20, %c0_21, %c0_22] : memref<3x3x4x8xf32, #tpu.memory_space<vmem>>, vector<1x1x4x8xf32>
    %16 = vector.shape_cast %15 : vector<1x1x4x8xf32> to vector<4x8xf32>
    %cst_23 = arith.constant dense<0.000000e+00> : vector<512x8xf32>
    %17 = tpu.matmul %14, %16, %cst_23 {dimension_numbers = #tpu.dot_dimension_numbers<[1], [0], [0], [1], [0, 0, 1, 1], [], []>} : vector<512x4xf32>, vector<4x8xf32>, vector<512x8xf32> -> vector<512x8xf32>
    %18 = arith.addf %12, %17 : vector<512x8xf32>
    %c0_24 = arith.constant 0 : index
    %c1_25 = arith.constant 1 : index
    %c0_26 = arith.constant 0 : index
    %c0_27 = arith.constant 0 : index
    %19 = vector.load %arg1[%c0_24, %c1_25, %c0_26, %c0_27] : memref<2x18x18x4xf32, #tpu.memory_space<vmem>>, vector<2x16x16x4xf32>
    %20 = vector.shape_cast %19 : vector<2x16x16x4xf32> to vector<512x4xf32>
    %c1_28 = arith.constant 1 : index
    %c0_29 = arith.constant 0 : index
    %c0_30 = arith.constant 0 : index
    %c0_31 = arith.constant 0 : index
    %21 = vector.load %arg2[%c1_28, %c0_29, %c0_30, %c0_31] : memref<3x3x4x8xf32, #tpu.memory_space<vmem>>, vector<1x1x4x8xf32>
    %22 = vector.shape_cast %21 : vector<1x1x4x8xf32> to vector<4x8xf32>
    %cst_32 = arith.constant dense<0.000000e+00> : vector<512x8xf32>
    %23 = tpu.matmul %20, %22, %cst_32 {dimension_numbers = #tpu.dot_dimension_numbers<[1], [0], [0], [1], [0, 0, 1, 1], [], []>} : vector<512x4xf32>, vector<4x8xf32>, vector<512x8xf32> -> vector<512x8xf32>
    %24 = arith.addf %18, %23 : vector<512x8xf32>
    %c0_33 = arith.constant 0 : index
    %c1_34 = arith.constant 1 : index
    %c1_35 = arith.constant 1 : index
    %c0_36 = arith.constant 0 : index
    %25 = vector.load %arg1[%c0_33, %c1_34, %c1_35, %c0_36] : memref<2x18x18x4xf32, #tpu.memory_space<vmem>>, vector<2x16x16x4xf32>
    %26 = vector.shape_cast %25 : vector<2x16x16x4xf32> to vector<512x4xf32>
    %c1_37 = arith.constant 1 : index
    %c1_38 = arith.constant 1 : index
    %c0_39 = arith.constant 0 : index
    %c0_40 = arith.constant 0 : index
    %27 = vector.load %arg2[%c1_37, %c1_38, %c0_39, %c0_40] : memref<3x3x4x8xf32, #tpu.memory_space<vmem>>, vector<1x1x4x8xf32>
    %28 = vector.shape_cast %27 : vector<1x1x4x8xf32> to vector<4x8xf32>
    %cst_41 = arith.constant dense<0.000000e+00> : vector<512x8xf32>
    %29 = tpu.matmul %26, %28, %cst_41 {dimension_numbers = #tpu.dot_dimension_numbers<[1], [0], [0], [1], [0, 0, 1, 1], [], []>} : vector<512x4xf32>, vector<4x8xf32>, vector<512x8xf32> -> vector<512x8xf32>
    %30 = arith.addf %24, %29 : vector<512x8xf32>
    %c0_42 = arith.constant 0 : index
    %c1_43 = arith.constant 1 : index
    %c2_44 = arith.constant 2 : index
    %c0_45 = arith.constant 0 : index
    %31 = vector.load %arg1[%c0_42, %c1_43, %c2_44, %c0_45] : memref<2x18x18x4xf32, #tpu.memory_space<vmem>>, vector<2x16x16x4xf32>
    %32 = vector.shape_cast %31 : vector<2x16x16x4xf32> to vector<512x4xf32>
    %c1_46 = arith.constant 1 : index
    %c2_47 = arith.constant 2 : index
    %c0_48 = arith.constant 0 : index
    %c0_49 = arith.constant 0 : index
    %33 = vector.load %arg2[%c1_46, %c2_47, %c0_48, %c0_49] : memref<3x3x4x8xf32, #tpu.memory_space<vmem>>, vector<1x1x4x8xf32>
    %34 = vector.shape_cast %33 : vector<1x1x4x8xf32> to vector<4x8xf32>
    %cst_50 = arith.constant dense<0.000000e+00> : vector<512x8xf32>
    %35 = tpu.matmul %32, %34, %cst_50 {dimension_numbers = #tpu.dot_dimension_numbers<[1], [0], [0], [1], [0, 0, 1, 1], [], []>} : vector<512x4xf32>, vector<4x8xf32>, vector<512x8xf32> -> vector<512x8xf32>
    %36 = arith.addf %30, %35 : vector<512x8xf32>
    %c0_51 = arith.constant 0 : index
    %c2_52 = arith.constant 2 : index
    %c0_53 = arith.constant 0 : index
    %c0_54 = arith.constant 0 : index
    %37 = vector.load %arg1[%c0_51, %c2_52, %c0_53, %c0_54] : memref<2x18x18x4xf32, #tpu.memory_space<vmem>>, vector<2x16x16x4xf32>
    %38 = vector.shape_cast %37 : vector<2x16x16x4xf32> to vector<512x4xf32>
    %c2_55 = arith.constant 2 : index
    %c0_56 = arith.constant 0 : index
    %c0_57 = arith.constant 0 : index
    %c0_58 = arith.constant 0 : index
    %39 = vector.load %arg2[%c2_55, %c0_56, %c0_57, %c0_58] : memref<3x3x4x8xf32, #tpu.memory_space<vmem>>, vector<1x1x4x8xf32>
    %40 = vector.shape_cast %39 : vector<1x1x4x8xf32> to vector<4x8xf32>
    %cst_59 = arith.constant dense<0.000000e+00> : vector<512x8xf32>
    %41 = tpu.matmul %38, %40, %cst_59 {dimension_numbers = #tpu.dot_dimension_numbers<[1], [0], [0], [1], [0, 0, 1, 1], [], []>} : vector<512x4xf32>, vector<4x8xf32>, vector<512x8xf32> -> vector<512x8xf32>
    %42 = arith.addf %36, %41 : vector<512x8xf32>
    %c0_60 = arith.constant 0 : index
    %c2_61 = arith.constant 2 : index
    %c1_62 = arith.constant 1 : index
    %c0_63 = arith.constant 0 : index
    %43 = vector.load %arg1[%c0_60, %c2_61, %c1_62, %c0_63] : memref<2x18x18x4xf32, #tpu.memory_space<vmem>>, vector<2x16x16x4xf32>
    %44 = vector.shape_cast %43 : vector<2x16x16x4xf32> to vector<512x4xf32>
    %c2_64 = arith.constant 2 : index
    %c1_65 = arith.constant 1 : index
    %c0_66 = arith.constant 0 : index
    %c0_67 = arith.constant 0 : index
    %45 = vector.load %arg2[%c2_64, %c1_65, %c0_66, %c0_67] : memref<3x3x4x8xf32, #tpu.memory_space<vmem>>, vector<1x1x4x8xf32>
    %46 = vector.shape_cast %45 : vector<1x1x4x8xf32> to vector<4x8xf32>
    %cst_68 = arith.constant dense<0.000000e+00> : vector<512x8xf32>
    %47 = tpu.matmul %44, %46, %cst_68 {dimension_numbers = #tpu.dot_dimension_numbers<[1], [0], [0], [1], [0, 0, 1, 1], [], []>} : vector<512x4xf32>, vector<4x8xf32>, vector<512x8xf32> -> vector<512x8xf32>
    %48 = arith.addf %42, %47 : vector<512x8xf32>
    %c0_69 = arith.constant 0 : index
    %c2_70 = arith.constant 2 : index
    %c2_71 = arith.constant 2 : index
    %c0_72 = arith.constant 0 : index
    %49 = vector.load %arg1[%c0_69, %c2_70, %c2_71, %c0_72] : memref<2x18x18x4xf32, #tpu.memory_space<vmem>>, vector<2x16x16x4xf32>
    %50 = vector.shape_cast %49 : vector<2x16x16x4xf32> to vector<512x4xf32>
    %c2_73 = arith.constant 2 : index
    %c2_74 = arith.constant 2 : index
    %c0_75 = arith.constant 0 : index
    %c0_76 = arith.constant 0 : index
    %51 = vector.load %arg2[%c2_73, %c2_74, %c0_75, %c0_76] : memref<3x3x4x8xf32, #tpu.memory_space<vmem>>, vector<1x1x4x8xf32>
    %52 = vector.shape_cast %51 : vector<1x1x4x8xf32> to vector<4x8xf32>
    %cst_77 = arith.constant dense<0.000000e+00> : vector<512x8xf32>
    %53 = tpu.matmul %50, %52, %cst_77 {dimension_numbers = #tpu.dot_dimension_numbers<[1], [0], [0], [1], [0, 0, 1, 1], [], []>} : vector<512x4xf32>, vector<4x8xf32>, vector<512x8xf32> -> vector<512x8xf32>
    %54 = arith.addf %48, %53 : vector<512x8xf32>
    %c0_78 = arith.constant 0 : index
    %c0_79 = arith.constant 0 : index
    %55 = vector.load %arg3[%c0_78, %c0_79] : memref<1x8xf32, #tpu.memory_space<vmem>>, vector<1x8xf32>
    %56 = vector.broadcast %55 : vector<1x8xf32> to vector<512x8xf32>
    %57 = arith.addf %54, %56 : vector<512x8xf32>
    %cst_80 = arith.constant 0.000000e+00 : f32
    %58 = vector.broadcast %cst_80 : f32 to vector<512x8xf32>
    %59 = arith.maximumf %57, %58 : vector<512x8xf32>
    %c0_81 = arith.constant 0 : index
    %c0_82 = arith.constant 0 : index
    %60 = vector.load %arg11[%c0_81, %c0_82] : memref<512x8xf32, #tpu.memory_space<vmem>>, vector<512x8xf32>
    tpu.vector_store %arg11[%c0_81, %c0_82], %59 {strides = array<i32>} : memref<512x8xf32, #tpu.memory_space<vmem>>, vector<512x8xf32>,
    %c0_83 = arith.constant 0 : index
    %c0_84 = arith.constant 0 : index
    %61 = tpu.strided_load %arg11[%c0_83, %c0_84] {strides = array<i32: 2, 1>} : memref<512x8xf32, #tpu.memory_space<vmem>>, vector<256x8xf32>
    %c1_85 = arith.constant 1 : index
    %c0_86 = arith.constant 0 : index
    %62 = tpu.strided_load %arg11[%c1_85, %c0_86] {strides = array<i32: 2, 1>} : memref<512x8xf32, #tpu.memory_space<vmem>>, vector<256x8xf32>
    %63 = arith.maximumf %61, %62 : vector<256x8xf32>
    %64 = vector.shape_cast %63 : vector<256x8xf32> to vector<32x8x8xf32>
    %c0_87 = arith.constant 0 : index
    %c0_88 = arith.constant 0 : index
    %c0_89 = arith.constant 0 : index
    %65 = vector.load %arg12[%c0_87, %c0_88, %c0_89] : memref<32x8x8xf32, #tpu.memory_space<vmem>>, vector<32x8x8xf32>
    tpu.vector_store %arg12[%c0_87, %c0_88, %c0_89], %64 {strides = array<i32>} : memref<32x8x8xf32, #tpu.memory_space<vmem>>, vector<32x8x8xf32>,
    %c0_90 = arith.constant 0 : index
    %c0_91 = arith.constant 0 : index
    %c0_92 = arith.constant 0 : index
    %66 = tpu.strided_load %arg12[%c0_90, %c0_91, %c0_92] {strides = array<i32: 2, 1, 1>} : memref<32x8x8xf32, #tpu.memory_space<vmem>>, vector<16x8x8xf32>
    %c1_93 = arith.constant 1 : index
    %c0_94 = arith.constant 0 : index
    %c0_95 = arith.constant 0 : index
    %67 = tpu.strided_load %arg12[%c1_93, %c0_94, %c0_95] {strides = array<i32: 2, 1, 1>} : memref<32x8x8xf32, #tpu.memory_space<vmem>>, vector<16x8x8xf32>
    %68 = arith.maximumf %66, %67 : vector<16x8x8xf32>
    %cst_96 = arith.constant 0.000000e+00 : f32
    %69 = vector.broadcast %cst_96 : f32 to vector<2x10x17x8xf32>
    %c0_97 = arith.constant 0 : index
    %c0_98 = arith.constant 0 : index
    %c0_99 = arith.constant 0 : index
    %c0_100 = arith.constant 0 : index
    %70 = vector.load %arg13[%c0_97, %c0_98, %c0_99, %c0_100] : memref<2x10x17x8xf32, #tpu.memory_space<vmem>>, vector<2x10x17x8xf32>
    tpu.vector_store %arg13[%c0_97, %c0_98, %c0_99, %c0_100], %69 {strides = array<i32>} : memref<2x10x17x8xf32, #tpu.memory_space<vmem>>, vector<2x10x17x8xf32>,
    %71 = vector.shape_cast %68 : vector<16x8x8xf32> to vector<2x8x8x8xf32>
    %c0_101 = arith.constant 0 : index
    %c1_102 = arith.constant 1 : index
    %c8 = arith.constant 8 : index
    %c0_103 = arith.constant 0 : index
    %72 = vector.load %arg13[%c0_101, %c1_102, %c8, %c0_103] : memref<2x10x17x8xf32, #tpu.memory_space<vmem>>, vector<2x8x8x8xf32>
    tpu.vector_store %arg13[%c0_101, %c1_102, %c8, %c0_103], %71 {strides = array<i32>} : memref<2x10x17x8xf32, #tpu.memory_space<vmem>>, vector<2x8x8x8xf32>,
    %cst_104 = arith.constant 0.000000e+00 : f32
    %73 = vector.broadcast %cst_104 : f32 to vector<128x16xf32>
    %c0_105 = arith.constant 0 : index
    %c0_106 = arith.constant 0 : index
    %c7 = arith.constant 7 : index
    %c0_107 = arith.constant 0 : index
    %74 = vector.load %arg13[%c0_105, %c0_106, %c7, %c0_107] : memref<2x10x17x8xf32, #tpu.memory_space<vmem>>, vector<2x8x8x8xf32>
    %75 = vector.shape_cast %74 : vector<2x8x8x8xf32> to vector<128x8xf32>
    %c0_108 = arith.constant 0 : index
    %c0_109 = arith.constant 0 : index
    %c0_110 = arith.constant 0 : index
    %c0_111 = arith.constant 0 : index
    %76 = vector.load %arg4[%c0_108, %c0_109, %c0_110, %c0_111] : memref<3x3x8x16xf32, #tpu.memory_space<vmem>>, vector<1x1x8x16xf32>
    %77 = vector.shape_cast %76 : vector<1x1x8x16xf32> to vector<8x16xf32>
    %cst_112 = arith.constant dense<0.000000e+00> : vector<128x16xf32>
    %78 = tpu.matmul %75, %77, %cst_112 {dimension_numbers = #tpu.dot_dimension_numbers<[1], [0], [0], [1], [0, 0, 1, 1], [], []>} : vector<128x8xf32>, vector<8x16xf32>, vector<128x16xf32> -> vector<128x16xf32>
    %79 = arith.addf %73, %78 : vector<128x16xf32>
    %c0_113 = arith.constant 0 : index
    %c0_114 = arith.constant 0 : index
    %c8_115 = arith.constant 8 : index
    %c0_116 = arith.constant 0 : index
    %80 = vector.load %arg13[%c0_113, %c0_114, %c8_115, %c0_116] : memref<2x10x17x8xf32, #tpu.memory_space<vmem>>, vector<2x8x8x8xf32>
    %81 = vector.shape_cast %80 : vector<2x8x8x8xf32> to vector<128x8xf32>
    %c0_117 = arith.constant 0 : index
    %c1_118 = arith.constant 1 : index
    %c0_119 = arith.constant 0 : index
    %c0_120 = arith.constant 0 : index
    %82 = vector.load %arg4[%c0_117, %c1_118, %c0_119, %c0_120] : memref<3x3x8x16xf32, #tpu.memory_space<vmem>>, vector<1x1x8x16xf32>
    %83 = vector.shape_cast %82 : vector<1x1x8x16xf32> to vector<8x16xf32>
    %cst_121 = arith.constant dense<0.000000e+00> : vector<128x16xf32>
    %84 = tpu.matmul %81, %83, %cst_121 {dimension_numbers = #tpu.dot_dimension_numbers<[1], [0], [0], [1], [0, 0, 1, 1], [], []>} : vector<128x8xf32>, vector<8x16xf32>, vector<128x16xf32> -> vector<128x16xf32>
    %85 = arith.addf %79, %84 : vector<128x16xf32>
    %c0_122 = arith.constant 0 : index
    %c0_123 = arith.constant 0 : index
    %c9 = arith.constant 9 : index
    %c0_124 = arith.constant 0 : index
    %86 = vector.load %arg13[%c0_122, %c0_123, %c9, %c0_124] : memref<2x10x17x8xf32, #tpu.memory_space<vmem>>, vector<2x8x8x8xf32>
    %87 = vector.shape_cast %86 : vector<2x8x8x8xf32> to vector<128x8xf32>
    %c0_125 = arith.constant 0 : index
    %c2_126 = arith.constant 2 : index
    %c0_127 = arith.constant 0 : index
    %c0_128 = arith.constant 0 : index
    %88 = vector.load %arg4[%c0_125, %c2_126, %c0_127, %c0_128] : memref<3x3x8x16xf32, #tpu.memory_space<vmem>>, vector<1x1x8x16xf32>
    %89 = vector.shape_cast %88 : vector<1x1x8x16xf32> to vector<8x16xf32>
    %cst_129 = arith.constant dense<0.000000e+00> : vector<128x16xf32>
    %90 = tpu.matmul %87, %89, %cst_129 {dimension_numbers = #tpu.dot_dimension_numbers<[1], [0], [0], [1], [0, 0, 1, 1], [], []>} : vector<128x8xf32>, vector<8x16xf32>, vector<128x16xf32> -> vector<128x16xf32>
    %91 = arith.addf %85, %90 : vector<128x16xf32>
    %c0_130 = arith.constant 0 : index
    %c1_131 = arith.constant 1 : index
    %c7_132 = arith.constant 7 : index
    %c0_133 = arith.constant 0 : index
    %92 = vector.load %arg13[%c0_130, %c1_131, %c7_132, %c0_133] : memref<2x10x17x8xf32, #tpu.memory_space<vmem>>, vector<2x8x8x8xf32>
    %93 = vector.shape_cast %92 : vector<2x8x8x8xf32> to vector<128x8xf32>
    %c1_134 = arith.constant 1 : index
    %c0_135 = arith.constant 0 : index
    %c0_136 = arith.constant 0 : index
    %c0_137 = arith.constant 0 : index
    %94 = vector.load %arg4[%c1_134, %c0_135, %c0_136, %c0_137] : memref<3x3x8x16xf32, #tpu.memory_space<vmem>>, vector<1x1x8x16xf32>
    %95 = vector.shape_cast %94 : vector<1x1x8x16xf32> to vector<8x16xf32>
    %cst_138 = arith.constant dense<0.000000e+00> : vector<128x16xf32>
    %96 = tpu.matmul %93, %95, %cst_138 {dimension_numbers = #tpu.dot_dimension_numbers<[1], [0], [0], [1], [0, 0, 1, 1], [], []>} : vector<128x8xf32>, vector<8x16xf32>, vector<128x16xf32> -> vector<128x16xf32>
    %97 = arith.addf %91, %96 : vector<128x16xf32>
    %c0_139 = arith.constant 0 : index
    %c1_140 = arith.constant 1 : index
    %c8_141 = arith.constant 8 : index
    %c0_142 = arith.constant 0 : index
    %98 = vector.load %arg13[%c0_139, %c1_140, %c8_141, %c0_142] : memref<2x10x17x8xf32, #tpu.memory_space<vmem>>, vector<2x8x8x8xf32>
    %99 = vector.shape_cast %98 : vector<2x8x8x8xf32> to vector<128x8xf32>
    %c1_143 = arith.constant 1 : index
    %c1_144 = arith.constant 1 : index
    %c0_145 = arith.constant 0 : index
    %c0_146 = arith.constant 0 : index
    %100 = vector.load %arg4[%c1_143, %c1_144, %c0_145, %c0_146] : memref<3x3x8x16xf32, #tpu.memory_space<vmem>>, vector<1x1x8x16xf32>
    %101 = vector.shape_cast %100 : vector<1x1x8x16xf32> to vector<8x16xf32>
    %cst_147 = arith.constant dense<0.000000e+00> : vector<128x16xf32>
    %102 = tpu.matmul %99, %101, %cst_147 {dimension_numbers = #tpu.dot_dimension_numbers<[1], [0], [0], [1], [0, 0, 1, 1], [], []>} : vector<128x8xf32>, vector<8x16xf32>, vector<128x16xf32> -> vector<128x16xf32>
    %103 = arith.addf %97, %102 : vector<128x16xf32>
    %c0_148 = arith.constant 0 : index
    %c1_149 = arith.constant 1 : index
    %c9_150 = arith.constant 9 : index
    %c0_151 = arith.constant 0 : index
    %104 = vector.load %arg13[%c0_148, %c1_149, %c9_150, %c0_151] : memref<2x10x17x8xf32, #tpu.memory_space<vmem>>, vector<2x8x8x8xf32>
    %105 = vector.shape_cast %104 : vector<2x8x8x8xf32> to vector<128x8xf32>
    %c1_152 = arith.constant 1 : index
    %c2_153 = arith.constant 2 : index
    %c0_154 = arith.constant 0 : index
    %c0_155 = arith.constant 0 : index
    %106 = vector.load %arg4[%c1_152, %c2_153, %c0_154, %c0_155] : memref<3x3x8x16xf32, #tpu.memory_space<vmem>>, vector<1x1x8x16xf32>
    %107 = vector.shape_cast %106 : vector<1x1x8x16xf32> to vector<8x16xf32>
    %cst_156 = arith.constant dense<0.000000e+00> : vector<128x16xf32>
    %108 = tpu.matmul %105, %107, %cst_156 {dimension_numbers = #tpu.dot_dimension_numbers<[1], [0], [0], [1], [0, 0, 1, 1], [], []>} : vector<128x8xf32>, vector<8x16xf32>, vector<128x16xf32> -> vector<128x16xf32>
    %109 = arith.addf %103, %108 : vector<128x16xf32>
    %c0_157 = arith.constant 0 : index
    %c2_158 = arith.constant 2 : index
    %c7_159 = arith.constant 7 : index
    %c0_160 = arith.constant 0 : index
    %110 = vector.load %arg13[%c0_157, %c2_158, %c7_159, %c0_160] : memref<2x10x17x8xf32, #tpu.memory_space<vmem>>, vector<2x8x8x8xf32>
    %111 = vector.shape_cast %110 : vector<2x8x8x8xf32> to vector<128x8xf32>
    %c2_161 = arith.constant 2 : index
    %c0_162 = arith.constant 0 : index
    %c0_163 = arith.constant 0 : index
    %c0_164 = arith.constant 0 : index
    %112 = vector.load %arg4[%c2_161, %c0_162, %c0_163, %c0_164] : memref<3x3x8x16xf32, #tpu.memory_space<vmem>>, vector<1x1x8x16xf32>
    %113 = vector.shape_cast %112 : vector<1x1x8x16xf32> to vector<8x16xf32>
    %cst_165 = arith.constant dense<0.000000e+00> : vector<128x16xf32>
    %114 = tpu.matmul %111, %113, %cst_165 {dimension_numbers = #tpu.dot_dimension_numbers<[1], [0], [0], [1], [0, 0, 1, 1], [], []>} : vector<128x8xf32>, vector<8x16xf32>, vector<128x16xf32> -> vector<128x16xf32>
    %115 = arith.addf %109, %114 : vector<128x16xf32>
    %c0_166 = arith.constant 0 : index
    %c2_167 = arith.constant 2 : index
    %c8_168 = arith.constant 8 : index
    %c0_169 = arith.constant 0 : index
    %116 = vector.load %arg13[%c0_166, %c2_167, %c8_168, %c0_169] : memref<2x10x17x8xf32, #tpu.memory_space<vmem>>, vector<2x8x8x8xf32>
    %117 = vector.shape_cast %116 : vector<2x8x8x8xf32> to vector<128x8xf32>
    %c2_170 = arith.constant 2 : index
    %c1_171 = arith.constant 1 : index
    %c0_172 = arith.constant 0 : index
    %c0_173 = arith.constant 0 : index
    %118 = vector.load %arg4[%c2_170, %c1_171, %c0_172, %c0_173] : memref<3x3x8x16xf32, #tpu.memory_space<vmem>>, vector<1x1x8x16xf32>
    %119 = vector.shape_cast %118 : vector<1x1x8x16xf32> to vector<8x16xf32>
    %cst_174 = arith.constant dense<0.000000e+00> : vector<128x16xf32>
    %120 = tpu.matmul %117, %119, %cst_174 {dimension_numbers = #tpu.dot_dimension_numbers<[1], [0], [0], [1], [0, 0, 1, 1], [], []>} : vector<128x8xf32>, vector<8x16xf32>, vector<128x16xf32> -> vector<128x16xf32>
    %121 = arith.addf %115, %120 : vector<128x16xf32>
    %c0_175 = arith.constant 0 : index
    %c2_176 = arith.constant 2 : index
    %c9_177 = arith.constant 9 : index
    %c0_178 = arith.constant 0 : index
    %122 = vector.load %arg13[%c0_175, %c2_176, %c9_177, %c0_178] : memref<2x10x17x8xf32, #tpu.memory_space<vmem>>, vector<2x8x8x8xf32>
    %123 = vector.shape_cast %122 : vector<2x8x8x8xf32> to vector<128x8xf32>
    %c2_179 = arith.constant 2 : index
    %c2_180 = arith.constant 2 : index
    %c0_181 = arith.constant 0 : index
    %c0_182 = arith.constant 0 : index
    %124 = vector.load %arg4[%c2_179, %c2_180, %c0_181, %c0_182] : memref<3x3x8x16xf32, #tpu.memory_space<vmem>>, vector<1x1x8x16xf32>
    %125 = vector.shape_cast %124 : vector<1x1x8x16xf32> to vector<8x16xf32>
    %cst_183 = arith.constant dense<0.000000e+00> : vector<128x16xf32>
    %126 = tpu.matmul %123, %125, %cst_183 {dimension_numbers = #tpu.dot_dimension_numbers<[1], [0], [0], [1], [0, 0, 1, 1], [], []>} : vector<128x8xf32>, vector<8x16xf32>, vector<128x16xf32> -> vector<128x16xf32>
    %127 = arith.addf %121, %126 : vector<128x16xf32>
    %c0_184 = arith.constant 0 : index
    %c0_185 = arith.constant 0 : index
    %128 = vector.load %arg5[%c0_184, %c0_185] : memref<1x16xf32, #tpu.memory_space<vmem>>, vector<1x16xf32>
    %129 = vector.broadcast %128 : vector<1x16xf32> to vector<128x16xf32>
    %130 = arith.addf %127, %129 : vector<128x16xf32>
    %cst_186 = arith.constant 0.000000e+00 : f32
    %131 = vector.broadcast %cst_186 : f32 to vector<128x16xf32>
    %132 = arith.maximumf %130, %131 : vector<128x16xf32>
    %c0_187 = arith.constant 0 : index
    %c0_188 = arith.constant 0 : index
    %133 = vector.load %arg14[%c0_187, %c0_188] : memref<128x16xf32, #tpu.memory_space<vmem>>, vector<128x16xf32>
    tpu.vector_store %arg14[%c0_187, %c0_188], %132 {strides = array<i32>} : memref<128x16xf32, #tpu.memory_space<vmem>>, vector<128x16xf32>,
    %c0_189 = arith.constant 0 : index
    %c0_190 = arith.constant 0 : index
    %134 = tpu.strided_load %arg14[%c0_189, %c0_190] {strides = array<i32: 2, 1>} : memref<128x16xf32, #tpu.memory_space<vmem>>, vector<64x16xf32>
    %c1_191 = arith.constant 1 : index
    %c0_192 = arith.constant 0 : index
    %135 = tpu.strided_load %arg14[%c1_191, %c0_192] {strides = array<i32: 2, 1>} : memref<128x16xf32, #tpu.memory_space<vmem>>, vector<64x16xf32>
    %136 = arith.maximumf %134, %135 : vector<64x16xf32>
    %137 = vector.shape_cast %136 : vector<64x16xf32> to vector<16x4x16xf32>
    %c0_193 = arith.constant 0 : index
    %c0_194 = arith.constant 0 : index
    %c0_195 = arith.constant 0 : index
    %138 = vector.load %arg15[%c0_193, %c0_194, %c0_195] : memref<16x4x16xf32, #tpu.memory_space<vmem>>, vector<16x4x16xf32>
    tpu.vector_store %arg15[%c0_193, %c0_194, %c0_195], %137 {strides = array<i32>} : memref<16x4x16xf32, #tpu.memory_space<vmem>>, vector<16x4x16xf32>,
    %c0_196 = arith.constant 0 : index
    %c0_197 = arith.constant 0 : index
    %c0_198 = arith.constant 0 : index
    %139 = tpu.strided_load %arg15[%c0_196, %c0_197, %c0_198] {strides = array<i32: 2, 1, 1>} : memref<16x4x16xf32, #tpu.memory_space<vmem>>, vector<8x4x16xf32>
    %c1_199 = arith.constant 1 : index
    %c0_200 = arith.constant 0 : index
    %c0_201 = arith.constant 0 : index
    %140 = tpu.strided_load %arg15[%c1_199, %c0_200, %c0_201] {strides = array<i32: 2, 1, 1>} : memref<16x4x16xf32, #tpu.memory_space<vmem>>, vector<8x4x16xf32>
    %141 = arith.maximumf %139, %140 : vector<8x4x16xf32>
    %142 = vector.shape_cast %141 : vector<8x4x16xf32> to vector<2x4x4x16xf32>
    %c0_202 = arith.constant 0 : index
    %c0_203 = arith.constant 0 : index
    %c0_204 = arith.constant 0 : index
    %c0_205 = arith.constant 0 : index
    %143 = vector.load %arg16[%c0_202, %c0_203, %c0_204, %c0_205] : memref<2x4x4x16xf32, #tpu.memory_space<vmem>>, vector<2x4x4x16xf32>
    tpu.vector_store %arg16[%c0_202, %c0_203, %c0_204, %c0_205], %142 {strides = array<i32>} : memref<2x4x4x16xf32, #tpu.memory_space<vmem>>, vector<2x4x4x16xf32>,
    %cst_206 = arith.constant 0.000000e+00 : f32
    %144 = vector.broadcast %cst_206 : f32 to vector<2x32xf32>
    %c0_207 = arith.constant 0 : index
    %c0_208 = arith.constant 0 : index
    %c0_209 = arith.constant 0 : index
    %c0_210 = arith.constant 0 : index
    %145 = vector.load %arg16[%c0_207, %c0_208, %c0_209, %c0_210] : memref<2x4x4x16xf32, #tpu.memory_space<vmem>>, vector<2x1x1x16xf32>
    %146 = vector.shape_cast %145 : vector<2x1x1x16xf32> to vector<2x16xf32>
    %c0_211 = arith.constant 0 : index
    %c0_212 = arith.constant 0 : index
    %c0_213 = arith.constant 0 : index
    %c0_214 = arith.constant 0 : index
    %147 = vector.load %arg6[%c0_211, %c0_212, %c0_213, %c0_214] : memref<4x4x16x32xf32, #tpu.memory_space<vmem>>, vector<1x1x16x32xf32>
    %148 = vector.shape_cast %147 : vector<1x1x16x32xf32> to vector<16x32xf32>
    %cst_215 = arith.constant dense<0.000000e+00> : vector<2x32xf32>
    %149 = tpu.matmul %146, %148, %cst_215 {dimension_numbers = #tpu.dot_dimension_numbers<[1], [0], [0], [1], [0, 0, 1, 1], [], []>} : vector<2x16xf32>, vector<16x32xf32>, vector<2x32xf32> -> vector<2x32xf32>
    %150 = arith.addf %144, %149 : vector<2x32xf32>
    %c0_216 = arith.constant 0 : index
    %c0_217 = arith.constant 0 : index
    %c1_218 = arith.constant 1 : index
    %c0_219 = arith.constant 0 : index
    %151 = vector.load %arg16[%c0_216, %c0_217, %c1_218, %c0_219] : memref<2x4x4x16xf32, #tpu.memory_space<vmem>>, vector<2x1x1x16xf32>
    %152 = vector.shape_cast %151 : vector<2x1x1x16xf32> to vector<2x16xf32>
    %c0_220 = arith.constant 0 : index
    %c1_221 = arith.constant 1 : index
    %c0_222 = arith.constant 0 : index
    %c0_223 = arith.constant 0 : index
    %153 = vector.load %arg6[%c0_220, %c1_221, %c0_222, %c0_223] : memref<4x4x16x32xf32, #tpu.memory_space<vmem>>, vector<1x1x16x32xf32>
    %154 = vector.shape_cast %153 : vector<1x1x16x32xf32> to vector<16x32xf32>
    %cst_224 = arith.constant dense<0.000000e+00> : vector<2x32xf32>
    %155 = tpu.matmul %152, %154, %cst_224 {dimension_numbers = #tpu.dot_dimension_numbers<[1], [0], [0], [1], [0, 0, 1, 1], [], []>} : vector<2x16xf32>, vector<16x32xf32>, vector<2x32xf32> -> vector<2x32xf32>
    %156 = arith.addf %150, %155 : vector<2x32xf32>
    %c0_225 = arith.constant 0 : index
    %c0_226 = arith.constant 0 : index
    %c2_227 = arith.constant 2 : index
    %c0_228 = arith.constant 0 : index
    %157 = vector.load %arg16[%c0_225, %c0_226, %c2_227, %c0_228] : memref<2x4x4x16xf32, #tpu.memory_space<vmem>>, vector<2x1x1x16xf32>
    %158 = vector.shape_cast %157 : vector<2x1x1x16xf32> to vector<2x16xf32>
    %c0_229 = arith.constant 0 : index
    %c2_230 = arith.constant 2 : index
    %c0_231 = arith.constant 0 : index
    %c0_232 = arith.constant 0 : index
    %159 = vector.load %arg6[%c0_229, %c2_230, %c0_231, %c0_232] : memref<4x4x16x32xf32, #tpu.memory_space<vmem>>, vector<1x1x16x32xf32>
    %160 = vector.shape_cast %159 : vector<1x1x16x32xf32> to vector<16x32xf32>
    %cst_233 = arith.constant dense<0.000000e+00> : vector<2x32xf32>
    %161 = tpu.matmul %158, %160, %cst_233 {dimension_numbers = #tpu.dot_dimension_numbers<[1], [0], [0], [1], [0, 0, 1, 1], [], []>} : vector<2x16xf32>, vector<16x32xf32>, vector<2x32xf32> -> vector<2x32xf32>
    %162 = arith.addf %156, %161 : vector<2x32xf32>
    %c0_234 = arith.constant 0 : index
    %c0_235 = arith.constant 0 : index
    %c3 = arith.constant 3 : index
    %c0_236 = arith.constant 0 : index
    %163 = vector.load %arg16[%c0_234, %c0_235, %c3, %c0_236] : memref<2x4x4x16xf32, #tpu.memory_space<vmem>>, vector<2x1x1x16xf32>
    %164 = vector.shape_cast %163 : vector<2x1x1x16xf32> to vector<2x16xf32>
    %c0_237 = arith.constant 0 : index
    %c3_238 = arith.constant 3 : index
    %c0_239 = arith.constant 0 : index
    %c0_240 = arith.constant 0 : index
    %165 = vector.load %arg6[%c0_237, %c3_238, %c0_239, %c0_240] : memref<4x4x16x32xf32, #tpu.memory_space<vmem>>, vector<1x1x16x32xf32>
    %166 = vector.shape_cast %165 : vector<1x1x16x32xf32> to vector<16x32xf32>
    %cst_241 = arith.constant dense<0.000000e+00> : vector<2x32xf32>
    %167 = tpu.matmul %164, %166, %cst_241 {dimension_numbers = #tpu.dot_dimension_numbers<[1], [0], [0], [1], [0, 0, 1, 1], [], []>} : vector<2x16xf32>, vector<16x32xf32>, vector<2x32xf32> -> vector<2x32xf32>
    %168 = arith.addf %162, %167 : vector<2x32xf32>
    %c0_242 = arith.constant 0 : index
    %c1_243 = arith.constant 1 : index
    %c0_244 = arith.constant 0 : index
    %c0_245 = arith.constant 0 : index
    %169 = vector.load %arg16[%c0_242, %c1_243, %c0_244, %c0_245] : memref<2x4x4x16xf32, #tpu.memory_space<vmem>>, vector<2x1x1x16xf32>
    %170 = vector.shape_cast %169 : vector<2x1x1x16xf32> to vector<2x16xf32>
    %c1_246 = arith.constant 1 : index
    %c0_247 = arith.constant 0 : index
    %c0_248 = arith.constant 0 : index
    %c0_249 = arith.constant 0 : index
    %171 = vector.load %arg6[%c1_246, %c0_247, %c0_248, %c0_249] : memref<4x4x16x32xf32, #tpu.memory_space<vmem>>, vector<1x1x16x32xf32>
    %172 = vector.shape_cast %171 : vector<1x1x16x32xf32> to vector<16x32xf32>
    %cst_250 = arith.constant dense<0.000000e+00> : vector<2x32xf32>
    %173 = tpu.matmul %170, %172, %cst_250 {dimension_numbers = #tpu.dot_dimension_numbers<[1], [0], [0], [1], [0, 0, 1, 1], [], []>} : vector<2x16xf32>, vector<16x32xf32>, vector<2x32xf32> -> vector<2x32xf32>
    %174 = arith.addf %168, %173 : vector<2x32xf32>
    %c0_251 = arith.constant 0 : index
    %c1_252 = arith.constant 1 : index
    %c1_253 = arith.constant 1 : index
    %c0_254 = arith.constant 0 : index
    %175 = vector.load %arg16[%c0_251, %c1_252, %c1_253, %c0_254] : memref<2x4x4x16xf32, #tpu.memory_space<vmem>>, vector<2x1x1x16xf32>
    %176 = vector.shape_cast %175 : vector<2x1x1x16xf32> to vector<2x16xf32>
    %c1_255 = arith.constant 1 : index
    %c1_256 = arith.constant 1 : index
    %c0_257 = arith.constant 0 : index
    %c0_258 = arith.constant 0 : index
    %177 = vector.load %arg6[%c1_255, %c1_256, %c0_257, %c0_258] : memref<4x4x16x32xf32, #tpu.memory_space<vmem>>, vector<1x1x16x32xf32>
    %178 = vector.shape_cast %177 : vector<1x1x16x32xf32> to vector<16x32xf32>
    %cst_259 = arith.constant dense<0.000000e+00> : vector<2x32xf32>
    %179 = tpu.matmul %176, %178, %cst_259 {dimension_numbers = #tpu.dot_dimension_numbers<[1], [0], [0], [1], [0, 0, 1, 1], [], []>} : vector<2x16xf32>, vector<16x32xf32>, vector<2x32xf32> -> vector<2x32xf32>
    %180 = arith.addf %174, %179 : vector<2x32xf32>
    %c0_260 = arith.constant 0 : index
    %c1_261 = arith.constant 1 : index
    %c2_262 = arith.constant 2 : index
    %c0_263 = arith.constant 0 : index
    %181 = vector.load %arg16[%c0_260, %c1_261, %c2_262, %c0_263] : memref<2x4x4x16xf32, #tpu.memory_space<vmem>>, vector<2x1x1x16xf32>
    %182 = vector.shape_cast %181 : vector<2x1x1x16xf32> to vector<2x16xf32>
    %c1_264 = arith.constant 1 : index
    %c2_265 = arith.constant 2 : index
    %c0_266 = arith.constant 0 : index
    %c0_267 = arith.constant 0 : index
    %183 = vector.load %arg6[%c1_264, %c2_265, %c0_266, %c0_267] : memref<4x4x16x32xf32, #tpu.memory_space<vmem>>, vector<1x1x16x32xf32>
    %184 = vector.shape_cast %183 : vector<1x1x16x32xf32> to vector<16x32xf32>
    %cst_268 = arith.constant dense<0.000000e+00> : vector<2x32xf32>
    %185 = tpu.matmul %182, %184, %cst_268 {dimension_numbers = #tpu.dot_dimension_numbers<[1], [0], [0], [1], [0, 0, 1, 1], [], []>} : vector<2x16xf32>, vector<16x32xf32>, vector<2x32xf32> -> vector<2x32xf32>
    %186 = arith.addf %180, %185 : vector<2x32xf32>
    %c0_269 = arith.constant 0 : index
    %c1_270 = arith.constant 1 : index
    %c3_271 = arith.constant 3 : index
    %c0_272 = arith.constant 0 : index
    %187 = vector.load %arg16[%c0_269, %c1_270, %c3_271, %c0_272] : memref<2x4x4x16xf32, #tpu.memory_space<vmem>>, vector<2x1x1x16xf32>
    %188 = vector.shape_cast %187 : vector<2x1x1x16xf32> to vector<2x16xf32>
    %c1_273 = arith.constant 1 : index
    %c3_274 = arith.constant 3 : index
    %c0_275 = arith.constant 0 : index
    %c0_276 = arith.constant 0 : index
    %189 = vector.load %arg6[%c1_273, %c3_274, %c0_275, %c0_276] : memref<4x4x16x32xf32, #tpu.memory_space<vmem>>, vector<1x1x16x32xf32>
    %190 = vector.shape_cast %189 : vector<1x1x16x32xf32> to vector<16x32xf32>
    %cst_277 = arith.constant dense<0.000000e+00> : vector<2x32xf32>
    %191 = tpu.matmul %188, %190, %cst_277 {dimension_numbers = #tpu.dot_dimension_numbers<[1], [0], [0], [1], [0, 0, 1, 1], [], []>} : vector<2x16xf32>, vector<16x32xf32>, vector<2x32xf32> -> vector<2x32xf32>
    %192 = arith.addf %186, %191 : vector<2x32xf32>
    %c0_278 = arith.constant 0 : index
    %c2_279 = arith.constant 2 : index
    %c0_280 = arith.constant 0 : index
    %c0_281 = arith.constant 0 : index
    %193 = vector.load %arg16[%c0_278, %c2_279, %c0_280, %c0_281] : memref<2x4x4x16xf32, #tpu.memory_space<vmem>>, vector<2x1x1x16xf32>
    %194 = vector.shape_cast %193 : vector<2x1x1x16xf32> to vector<2x16xf32>
    %c2_282 = arith.constant 2 : index
    %c0_283 = arith.constant 0 : index
    %c0_284 = arith.constant 0 : index
    %c0_285 = arith.constant 0 : index
    %195 = vector.load %arg6[%c2_282, %c0_283, %c0_284, %c0_285] : memref<4x4x16x32xf32, #tpu.memory_space<vmem>>, vector<1x1x16x32xf32>
    %196 = vector.shape_cast %195 : vector<1x1x16x32xf32> to vector<16x32xf32>
    %cst_286 = arith.constant dense<0.000000e+00> : vector<2x32xf32>
    %197 = tpu.matmul %194, %196, %cst_286 {dimension_numbers = #tpu.dot_dimension_numbers<[1], [0], [0], [1], [0, 0, 1, 1], [], []>} : vector<2x16xf32>, vector<16x32xf32>, vector<2x32xf32> -> vector<2x32xf32>
    %198 = arith.addf %192, %197 : vector<2x32xf32>
    %c0_287 = arith.constant 0 : index
    %c2_288 = arith.constant 2 : index
    %c1_289 = arith.constant 1 : index
    %c0_290 = arith.constant 0 : index
    %199 = vector.load %arg16[%c0_287, %c2_288, %c1_289, %c0_290] : memref<2x4x4x16xf32, #tpu.memory_space<vmem>>, vector<2x1x1x16xf32>
    %200 = vector.shape_cast %199 : vector<2x1x1x16xf32> to vector<2x16xf32>
    %c2_291 = arith.constant 2 : index
    %c1_292 = arith.constant 1 : index
    %c0_293 = arith.constant 0 : index
    %c0_294 = arith.constant 0 : index
    %201 = vector.load %arg6[%c2_291, %c1_292, %c0_293, %c0_294] : memref<4x4x16x32xf32, #tpu.memory_space<vmem>>, vector<1x1x16x32xf32>
    %202 = vector.shape_cast %201 : vector<1x1x16x32xf32> to vector<16x32xf32>
    %cst_295 = arith.constant dense<0.000000e+00> : vector<2x32xf32>
    %203 = tpu.matmul %200, %202, %cst_295 {dimension_numbers = #tpu.dot_dimension_numbers<[1], [0], [0], [1], [0, 0, 1, 1], [], []>} : vector<2x16xf32>, vector<16x32xf32>, vector<2x32xf32> -> vector<2x32xf32>
    %204 = arith.addf %198, %203 : vector<2x32xf32>
    %c0_296 = arith.constant 0 : index
    %c2_297 = arith.constant 2 : index
    %c2_298 = arith.constant 2 : index
    %c0_299 = arith.constant 0 : index
    %205 = vector.load %arg16[%c0_296, %c2_297, %c2_298, %c0_299] : memref<2x4x4x16xf32, #tpu.memory_space<vmem>>, vector<2x1x1x16xf32>
    %206 = vector.shape_cast %205 : vector<2x1x1x16xf32> to vector<2x16xf32>
    %c2_300 = arith.constant 2 : index
    %c2_301 = arith.constant 2 : index
    %c0_302 = arith.constant 0 : index
    %c0_303 = arith.constant 0 : index
    %207 = vector.load %arg6[%c2_300, %c2_301, %c0_302, %c0_303] : memref<4x4x16x32xf32, #tpu.memory_space<vmem>>, vector<1x1x16x32xf32>
    %208 = vector.shape_cast %207 : vector<1x1x16x32xf32> to vector<16x32xf32>
    %cst_304 = arith.constant dense<0.000000e+00> : vector<2x32xf32>
    %209 = tpu.matmul %206, %208, %cst_304 {dimension_numbers = #tpu.dot_dimension_numbers<[1], [0], [0], [1], [0, 0, 1, 1], [], []>} : vector<2x16xf32>, vector<16x32xf32>, vector<2x32xf32> -> vector<2x32xf32>
    %210 = arith.addf %204, %209 : vector<2x32xf32>
    %c0_305 = arith.constant 0 : index
    %c2_306 = arith.constant 2 : index
    %c3_307 = arith.constant 3 : index
    %c0_308 = arith.constant 0 : index
    %211 = vector.load %arg16[%c0_305, %c2_306, %c3_307, %c0_308] : memref<2x4x4x16xf32, #tpu.memory_space<vmem>>, vector<2x1x1x16xf32>
    %212 = vector.shape_cast %211 : vector<2x1x1x16xf32> to vector<2x16xf32>
    %c2_309 = arith.constant 2 : index
    %c3_310 = arith.constant 3 : index
    %c0_311 = arith.constant 0 : index
    %c0_312 = arith.constant 0 : index
    %213 = vector.load %arg6[%c2_309, %c3_310, %c0_311, %c0_312] : memref<4x4x16x32xf32, #tpu.memory_space<vmem>>, vector<1x1x16x32xf32>
    %214 = vector.shape_cast %213 : vector<1x1x16x32xf32> to vector<16x32xf32>
    %cst_313 = arith.constant dense<0.000000e+00> : vector<2x32xf32>
    %215 = tpu.matmul %212, %214, %cst_313 {dimension_numbers = #tpu.dot_dimension_numbers<[1], [0], [0], [1], [0, 0, 1, 1], [], []>} : vector<2x16xf32>, vector<16x32xf32>, vector<2x32xf32> -> vector<2x32xf32>
    %216 = arith.addf %210, %215 : vector<2x32xf32>
    %c0_314 = arith.constant 0 : index
    %c3_315 = arith.constant 3 : index
    %c0_316 = arith.constant 0 : index
    %c0_317 = arith.constant 0 : index
    %217 = vector.load %arg16[%c0_314, %c3_315, %c0_316, %c0_317] : memref<2x4x4x16xf32, #tpu.memory_space<vmem>>, vector<2x1x1x16xf32>
    %218 = vector.shape_cast %217 : vector<2x1x1x16xf32> to vector<2x16xf32>
    %c3_318 = arith.constant 3 : index
    %c0_319 = arith.constant 0 : index
    %c0_320 = arith.constant 0 : index
    %c0_321 = arith.constant 0 : index
    %219 = vector.load %arg6[%c3_318, %c0_319, %c0_320, %c0_321] : memref<4x4x16x32xf32, #tpu.memory_space<vmem>>, vector<1x1x16x32xf32>
    %220 = vector.shape_cast %219 : vector<1x1x16x32xf32> to vector<16x32xf32>
    %cst_322 = arith.constant dense<0.000000e+00> : vector<2x32xf32>
    %221 = tpu.matmul %218, %220, %cst_322 {dimension_numbers = #tpu.dot_dimension_numbers<[1], [0], [0], [1], [0, 0, 1, 1], [], []>} : vector<2x16xf32>, vector<16x32xf32>, vector<2x32xf32> -> vector<2x32xf32>
    %222 = arith.addf %216, %221 : vector<2x32xf32>
    %c0_323 = arith.constant 0 : index
    %c3_324 = arith.constant 3 : index
    %c1_325 = arith.constant 1 : index
    %c0_326 = arith.constant 0 : index
    %223 = vector.load %arg16[%c0_323, %c3_324, %c1_325, %c0_326] : memref<2x4x4x16xf32, #tpu.memory_space<vmem>>, vector<2x1x1x16xf32>
    %224 = vector.shape_cast %223 : vector<2x1x1x16xf32> to vector<2x16xf32>
    %c3_327 = arith.constant 3 : index
    %c1_328 = arith.constant 1 : index
    %c0_329 = arith.constant 0 : index
    %c0_330 = arith.constant 0 : index
    %225 = vector.load %arg6[%c3_327, %c1_328, %c0_329, %c0_330] : memref<4x4x16x32xf32, #tpu.memory_space<vmem>>, vector<1x1x16x32xf32>
    %226 = vector.shape_cast %225 : vector<1x1x16x32xf32> to vector<16x32xf32>
    %cst_331 = arith.constant dense<0.000000e+00> : vector<2x32xf32>
    %227 = tpu.matmul %224, %226, %cst_331 {dimension_numbers = #tpu.dot_dimension_numbers<[1], [0], [0], [1], [0, 0, 1, 1], [], []>} : vector<2x16xf32>, vector<16x32xf32>, vector<2x32xf32> -> vector<2x32xf32>
    %228 = arith.addf %222, %227 : vector<2x32xf32>
    %c0_332 = arith.constant 0 : index
    %c3_333 = arith.constant 3 : index
    %c2_334 = arith.constant 2 : index
    %c0_335 = arith.constant 0 : index
    %229 = vector.load %arg16[%c0_332, %c3_333, %c2_334, %c0_335] : memref<2x4x4x16xf32, #tpu.memory_space<vmem>>, vector<2x1x1x16xf32>
    %230 = vector.shape_cast %229 : vector<2x1x1x16xf32> to vector<2x16xf32>
    %c3_336 = arith.constant 3 : index
    %c2_337 = arith.constant 2 : index
    %c0_338 = arith.constant 0 : index
    %c0_339 = arith.constant 0 : index
    %231 = vector.load %arg6[%c3_336, %c2_337, %c0_338, %c0_339] : memref<4x4x16x32xf32, #tpu.memory_space<vmem>>, vector<1x1x16x32xf32>
    %232 = vector.shape_cast %231 : vector<1x1x16x32xf32> to vector<16x32xf32>
    %cst_340 = arith.constant dense<0.000000e+00> : vector<2x32xf32>
    %233 = tpu.matmul %230, %232, %cst_340 {dimension_numbers = #tpu.dot_dimension_numbers<[1], [0], [0], [1], [0, 0, 1, 1], [], []>} : vector<2x16xf32>, vector<16x32xf32>, vector<2x32xf32> -> vector<2x32xf32>
    %234 = arith.addf %228, %233 : vector<2x32xf32>
    %c0_341 = arith.constant 0 : index
    %c3_342 = arith.constant 3 : index
    %c3_343 = arith.constant 3 : index
    %c0_344 = arith.constant 0 : index
    %235 = vector.load %arg16[%c0_341, %c3_342, %c3_343, %c0_344] : memref<2x4x4x16xf32, #tpu.memory_space<vmem>>, vector<2x1x1x16xf32>
    %236 = vector.shape_cast %235 : vector<2x1x1x16xf32> to vector<2x16xf32>
    %c3_345 = arith.constant 3 : index
    %c3_346 = arith.constant 3 : index
    %c0_347 = arith.constant 0 : index
    %c0_348 = arith.constant 0 : index
    %237 = vector.load %arg6[%c3_345, %c3_346, %c0_347, %c0_348] : memref<4x4x16x32xf32, #tpu.memory_space<vmem>>, vector<1x1x16x32xf32>
    %238 = vector.shape_cast %237 : vector<1x1x16x32xf32> to vector<16x32xf32>
    %cst_349 = arith.constant dense<0.000000e+00> : vector<2x32xf32>
    %239 = tpu.matmul %236, %238, %cst_349 {dimension_numbers = #tpu.dot_dimension_numbers<[1], [0], [0], [1], [0, 0, 1, 1], [], []>} : vector<2x16xf32>, vector<16x32xf32>, vector<2x32xf32> -> vector<2x32xf32>
    %240 = arith.addf %234, %239 : vector<2x32xf32>
    %c0_350 = arith.constant 0 : index
    %c0_351 = arith.constant 0 : index
    %241 = vector.load %arg7[%c0_350, %c0_351] : memref<1x32xf32, #tpu.memory_space<vmem>>, vector<1x32xf32>
    %242 = vector.broadcast %241 : vector<1x32xf32> to vector<2x32xf32>
    %243 = arith.addf %240, %242 : vector<2x32xf32>
    %c0_352 = arith.constant 0 : index
    %c0_353 = arith.constant 0 : index
    %244 = vector.load %arg8[%c0_352, %c0_353] : memref<32x10xf32, #tpu.memory_space<vmem>>, vector<32x10xf32>
    %cst_354 = arith.constant dense<0.000000e+00> : vector<2x10xf32>
    %245 = tpu.matmul %243, %244, %cst_354 {dimension_numbers = #tpu.dot_dimension_numbers<[1], [0], [0], [1], [0, 0, 1, 1], [], []>} : vector<2x32xf32>, vector<32x10xf32>, vector<2x10xf32> -> vector<2x10xf32>
    %c0_355 = arith.constant 0 : index
    %c0_356 = arith.constant 0 : index
    %246 = vector.load %arg9[%c0_355, %c0_356] : memref<1x10xf32, #tpu.memory_space<vmem>>, vector<1x10xf32>
    %247 = vector.broadcast %246 : vector<1x10xf32> to vector<2x10xf32>
    %248 = arith.addf %245, %247 : vector<2x10xf32>
    %cst_357 = arith.constant dense<0xFF800000> : vector<2xf32>
    %249 = vector.multi_reduction <maximumf>, %248, %cst_357 [1] : vector<2x10xf32> to vector<2xf32>
    %250 = vector.shape_cast %249 : vector<2xf32> to vector<2x1xf32>
    %251 = vector.broadcast %250 : vector<2x1xf32> to vector<2x10xf32>
    %252 = arith.subf %248, %251 : vector<2x10xf32>
    %253 = math.exp %252 : vector<2x10xf32>
    %cst_358 = arith.constant dense<0.000000e+00> : vector<2xf32>
    %254 = vector.multi_reduction <add>, %253, %cst_358 [1] : vector<2x10xf32> to vector<2xf32>
    %255 = vector.shape_cast %254 : vector<2xf32> to vector<2x1xf32>
    %256 = tpu.reciprocal %255 {approx = true} : vector<2x1xf32> -> vector<2x1xf32>
    %257 = vector.broadcast %256 : vector<2x1xf32> to vector<2x10xf32>
    %258 = arith.mulf %253, %257 : vector<2x10xf32>
    %c0_359 = arith.constant 0 : index
    %c0_360 = arith.constant 0 : index
    %c0_361 = arith.constant 0 : index
    %259 = vector.load %arg10[%c0_359, %c0_360, %c0_361] : memref<2x1x10xf32, #tpu.memory_space<vmem>>, vector<2x1x10xf32>
    %260 = vector.shape_cast %259 : vector<2x1x10xf32> to vector<2x10xf32>
    %261 = vector.shape_cast %258 : vector<2x10xf32> to vector<2x1x10xf32>
    tpu.vector_store %arg10[%c0_359, %c0_360, %c0_361], %261 {strides = array<i32>} : memref<2x1x10xf32, #tpu.memory_space<vmem>>, vector<2x1x10xf32>,
    return
  }
  func.func @transform_0(%arg0: i32) -> (i32, i32, i32, i32) {
    %c0_i32 = arith.constant 0 : i32
    %c0_i32_0 = arith.constant 0 : i32
    %c0_i32_1 = arith.constant 0 : i32
    %c0_i32_2 = arith.constant 0 : i32
    return %arg0, %c0_i32, %c0_i32_0, %c0_i32_1 : i32, i32, i32, i32
  }
  func.func @transform_1(%arg0: i32) -> (i32, i32, i32, i32) {
    %c0_i32 = arith.constant 0 : i32
    %c0_i32_0 = arith.constant 0 : i32
    %c0_i32_1 = arith.constant 0 : i32
    %c0_i32_2 = arith.constant 0 : i32
    %c0_i32_3 = arith.constant 0 : i32
    return %c0_i32, %c0_i32_0, %c0_i32_1, %c0_i32_2 : i32, i32, i32, i32
  }
  func.func @transform_2(%arg0: i32) -> (i32, i32) {
    %c0_i32 = arith.constant 0 : i32
    %c0_i32_0 = arith.constant 0 : i32
    %c0_i32_1 = arith.constant 0 : i32
    return %c0_i32, %c0_i32_0 : i32, i32
  }
  func.func @transform_3(%arg0: i32) -> (i32, i32, i32, i32) {
    %c0_i32 = arith.constant 0 : i32
    %c0_i32_0 = arith.constant 0 : i32
    %c0_i32_1 = arith.constant 0 : i32
    %c0_i32_2 = arith.constant 0 : i32
    %c0_i32_3 = arith.constant 0 : i32
    return %c0_i32, %c0_i32_0, %c0_i32_1, %c0_i32_2 : i32, i32, i32, i32
  }
  func.func @transform_4(%arg0: i32) -> (i32, i32) {
    %c0_i32 = arith.constant 0 : i32
    %c0_i32_0 = arith.constant 0 : i32
    %c0_i32_1 = arith.constant 0 : i32
    return %c0_i32, %c0_i32_0 : i32, i32
  }
  func.func @transform_5(%arg0: i32) -> (i32, i32, i32, i32) {
    %c0_i32 = arith.constant 0 : i32
    %c0_i32_0 = arith.constant 0 : i32
    %c0_i32_1 = arith.constant 0 : i32
    %c0_i32_2 = arith.constant 0 : i32
    %c0_i32_3 = arith.constant 0 : i32
    return %c0_i32, %c0_i32_0, %c0_i32_1, %c0_i32_2 : i32, i32, i32, i32
  }
  func.func @transform_6(%arg0: i32) -> (i32, i32) {
    %c0_i32 = arith.constant 0 : i32
    %c0_i32_0 = arith.constant 0 : i32
    %c0_i32_1 = arith.constant 0 : i32
    return %c0_i32, %c0_i32_0 : i32, i32
  }
  func.func @transform_7(%arg0: i32) -> (i32, i32) {
    %c0_i32 = arith.constant 0 : i32
    %c0_i32_0 = arith.constant 0 : i32
    %c0_i32_1 = arith.constant 0 : i32
    return %c0_i32, %c0_i32_0 : i32, i32
  }
  func.func @transform_8(%arg0: i32) -> (i32, i32) {
    %c0_i32 = arith.constant 0 : i32
    %c0_i32_0 = arith.constant 0 : i32
    %c0_i32_1 = arith.constant 0 : i32
    return %c0_i32, %c0_i32_0 : i32, i32
  }
  func.func @transform_9(%arg0: i32) -> (i32, i32, i32) {
    %c0_i32 = arith.constant 0 : i32
    %c0_i32_0 = arith.constant 0 : i32
    %c0_i32_1 = arith.constant 0 : i32
    return %arg0, %c0_i32, %c0_i32_0 : i32, i32, i32
  }
}

</mosaic_0001>

<bundles_post_ra>
// kernel: cnn_forward.1
= control target key start
LH: loop header
LB: loop body
LE: loop exit
PB: predicated region body
PF: predicated region fallthrough
CT: control target
= control target key end

     0   :  { %vm357_vm0 = vcmask 1043456   ;;  %vm164_vm1 = vcmask 31744   ;;  %s17922_s0 = inlined_call_operand.vmem [shape: f32[2,18,18,4], index: 0, kind: input, shape index: {}]   ;;  %s17923_s1 = inlined_call_operand.vmem [shape: f32[3,3,4,8], index: 1, kind: input, shape index: {}]   ;;  %s17924_s2 = inlined_call_operand.vmem [shape: f32[1,8], index: 2, kind: input, shape index: {}]   ;;  %s17925_s3 = inlined_call_operand.vmem [shape: f32[3,3,8,16], index: 3, kind: input, shape index: {}]   ;;  %s17926_s4 = inlined_call_operand.vmem [shape: f32[1,16], index: 4, kind: input, shape index: {}]   ;;  %s17927_s5 = inlined_call_operand.vmem [shape: f32[4,4,16,32], index: 5, kind: input, shape index: {}]   ;;  %s17928_s6 = inlined_call_operand.vmem [shape: f32[1,32], index: 6, kind: input, shape index: {}]   ;;  %s17929_s7 = inlined_call_operand.vmem [shape: f32[32,10], index: 7, kind: input, shape index: {}]   ;;  %s17930_s8 = inlined_call_operand.vmem [shape: f32[1,10], index: 8, kind: input, shape index: {}]   ;;  %s17931_s9 = inlined_call_operand.hbm [shape: f32[2,1,10], index: 9, kind: output, shape index: {}]  }
   0x1   :  { %v14459_v0 = vld [vmem:[%s17923_s1 + $0xc] sm:$0xf]  ;;  %v14464_v1 = vld [vmem:[%s17922_s0 + $0x18] sm:$0xff]  ;;  %v14469_v2 = vld [vmem:[%s17922_s0 + $0x20] sm:$0xff] }
   0x2   :  { %17979 = vst [vmem:[#allocation11_spill] sm:$0xff] %v14459_v0  ;;  %12723 = vmatprep.subr.msk.mxu0 %vm357_vm0, %v14459_v0  ;;  %12725 = vmatprep.mubr.msk.f32.mxu0 %vm164_vm1, %v14464_v1  ;;  %v10849_v3 = vld [vmem:[%s17923_s1 + $0x10] sm:$0xf]  ;;  %v14494_v5 = vld [vmem:[%s17922_s0 + $0x38] sm:$0xff]  ;;  %v14499_v6 = vld [vmem:[%s17922_s0 + $0x48] sm:$0xff] }
   0x3   :  { %v14481_v4 = vld [vmem:[%s17922_s0 + $0x30] sm:$0xff]  ;;  %12724 = vmatpush3.msk.msra.mxu0 %vm357_vm0, %v14459_v0  ;;  %v14513_v8 = vld [vmem:[%s17922_s0 + $0x60] sm:$0xff]  ;;  %v14522_v9 = vld [vmem:[%s17922_s0 + $0x68] sm:$0xff] }
   0x4   :  { %12726 = vmatmul.mubr.msk.f32.vlgmr.msra.gmra.mrb[0].mxu0 %vm164_vm1, %v14469_v2  ;;  %12821 = vmatprep.subr.msk.mxu0 %vm357_vm0, %v10849_v3  ;;  %v14508_v7 = vld [vmem:[%s17922_s0 + $0x50] sm:$0xff]  ;;  %v14527_v10 = vld [vmem:[%s17922_s0 + $0x78] sm:$0xff]  ;;  %v14536_v11 = vld [vmem:[%s17922_s0 + $0x80] sm:$0xff] }
   0x5   :  { %12822 = vmatpush3.msk.msra.mxu0 %vm357_vm0, %v10849_v3  ;;  %12728 = vmatprep.mubr.msk.f32.mxu0 %vm164_vm1, %v14481_v4  ;;  %v10458_v12 = vld [vmem:[%s17923_s1 + $0x4] sm:$0xf]  ;;  %v14547_v14 = vld [vmem:[%s17922_s0 + $0x90] sm:$0xff]  ;;  %v14557_v16 = vld [vmem:[%s17922_s0 + $0x19] sm:$0xff] }
   0x6   :  { %v98_v13 = vld [vmem:[%s17922_s0 + $0x1] sm:$0xff]  ;;  %12429 = vmatprep.subr.msk.mxu1 %vm357_vm0, %v10458_v12  ;;  %v99_v15 = vld [vmem:[%s17922_s0 + $0x9] sm:$0xff]  ;;  %v14568_v17 = vld [vmem:[%s17922_s0 + $0x98] sm:$0xff] }
   0x7   :  { %12431 = vmatprep.mubr.msk.f32.mxu1 %vm164_vm1, %v98_v13  ;;  %12430 = vmatpush3.msk.msra.mxu1 %vm357_vm0, %v10458_v12  ;;  %v14575_v18 = vld [vmem:[%s17922_s0 + $0x21] sm:$0xff]  ;;  %v14585_v20 = vld [vmem:[%s17922_s0 + $0x31] sm:$0xff]  ;;  %v14603_v22 = vld [vmem:[%s17922_s0 + $0x39] sm:$0xff] }
   0x8   :  { %12729 = vmatmul.mubr.msk.f32.gmra.mrb[2].mxu0 %vm164_vm1, %v14494_v5  ;;  %12432 = vmatmul.mubr.msk.f32.vlgmr.msra.gmra.mrb[0].mxu1 %vm164_vm1, %v99_v15  ;;  %v14580_v19 = vld [vmem:[%s17922_s0 + $0xa8] sm:$0xff]  ;;  %v14596_v21 = vld [vmem:[%s17922_s0 + $0xb0] sm:$0xff]  ;;  %v14608_v23 = vld [vmem:[%s17922_s0 + $0xc0] sm:$0xff] }
   0x9   :  { %12731 = vmatprep.mubr.msk.f32.mxu0 %vm164_vm1, %v14499_v6  ;;  %12434 = vmatprep.mubr.msk.f32.mxu1 %vm164_vm1, %v14557_v16  ;;  %v14613_v24 = vld [vmem:[%s17922_s0 + $0x49] sm:$0xff]  ;;  %v14618_v25 = vld [vmem:[%s17923_s1 + $0x14] sm:$0xf]  ;;  %v14643_v28 = vld [vmem:[%s17922_s0 + $0xd8] sm:$0xff] }
   0xa   :  { %12919 = vmatprep.subr.msk.mxu0 %vm357_vm0, %v14618_v25  ;;  %v14631_v26 = vld [vmem:[%s17922_s0 + $0xc8] sm:$0xff]  ;;  %v14638_v27 = vld [vmem:[%s17922_s0 + $0x51] sm:$0xff]  ;;  %v14659_v30 = vld [vmem:[%s17922_s0 + $0xe0] sm:$0xff] }
   0xb   :  { %v14648_v29 = vld [vmem:[%s17922_s0 + $0x61] sm:$0xff]  ;;  %v14666_v31 = vld [vmem:[%s17922_s0 + $0x69] sm:$0xff] }
   0xc   :  { %12732 = vmatmul.mubr.msk.f32.gmra.mrb[4].mxu0 %vm164_vm1, %v14508_v7  ;;  %12435 = vmatmul.mubr.msk.f32.gmra.mrb[2].mxu1 %vm164_vm1, %v14575_v18 }
   0xd   :  { %12734 = vmatprep.mubr.msk.f32.mxu0 %vm164_vm1, %v14513_v8  ;;  %12437 = vmatprep.mubr.msk.f32.mxu1 %vm164_vm1, %v14585_v20 }
  0x10   :  { %12735 = vmatmul.mubr.msk.f32.gmra.mrb[6].mxu0 %vm164_vm1, %v14522_v9  ;;  %12438 = vmatmul.mubr.msk.f32.gmra.mrb[4].mxu1 %vm164_vm1, %v14603_v22 }
  0x11   :  { %12737 = vmatprep.mubr.msk.f32.mxu0 %vm164_vm1, %v14527_v10  ;;  %12440 = vmatprep.mubr.msk.f32.mxu1 %vm164_vm1, %v14613_v24 }
  0x14   :  { %12738 = vmatmul.mubr.msk.f32.gmra.mrb[8].mxu0 %vm164_vm1, %v14536_v11  ;;  %12441 = vmatmul.mubr.msk.f32.gmra.mrb[6].mxu1 %vm164_vm1, %v14638_v27 }
  0x15   :  { %12740 = vmatprep.mubr.msk.f32.mxu0 %vm164_vm1, %v14547_v14  ;;  %12443 = vmatprep.mubr.msk.f32.mxu1 %vm164_vm1, %v14648_v29 }
  0x18   :  { %12741 = vmatmul.mubr.msk.f32.gmra.mrb[10].mxu0 %vm164_vm1, %v14568_v17 }
  0x19   :  { %12743 = vmatprep.mubr.msk.f32.mxu0 %vm164_vm1, %v14580_v19 }
  0x1c   :  { %12744 = vmatmul.mubr.msk.f32.gmra.mrb[12].mxu0 %vm164_vm1, %v14596_v21 }
  0x1d   :  { %12746 = vmatprep.mubr.msk.f32.mxu0 %vm164_vm1, %v14608_v23 }
  0x20   :  { %12747 = vmatmul.mubr.msk.f32.gmra.mrb[14].mxu0 %vm164_vm1, %v14631_v26 }
  0x21   :  { %12749 = vmatprep.mubr.msk.f32.mxu0 %vm164_vm1, %v14643_v28 }
  0x22   :  { %14 = vsyncpa [#allocation9], 0  ;;  %v14671_v32 = vld [vmem:[%s17922_s0 + $0xf0] sm:$0xff]  ;;  %v14676_v33 = vld [vmem:[%s17922_s0 + $0x79] sm:$0xff]  ;;  %12444 = vmatmul.mubr.msk.f32.gmra.mrb[8].mxu1 %vm164_vm1, %v14666_v31  ;;  %vm6433_vm2 = vcmask 64512   ;;  %vm6740_vm3 = vcmask 57344  }
  0x23   :  { %v14687_v34 = vld [vmem:[%s17922_s0 + $0xf8] sm:$0xff]  ;;  %12446 = vmatprep.mubr.msk.f32.mxu1 %vm164_vm1, %v14676_v33  ;;  %v14694_v35 = vld [vmem:[%s17922_s0 + $0x81] sm:$0xff]  ;;  %v14715_v38 = vld [vmem:[%s17922_s0 + $0x110] sm:$0xff]  ;;  %vm14401_vm4 = vmmov 0   ;;  %vm8866_vm5 = vcmask 130048   ;;  %vm8946_vm6 = vcmask 125952  }
  0x24   :  { %12750 = vmatmul.mubr.msk.f32.gmra.mrb[16].mxu0 %vm164_vm1, %v14659_v30  ;;  %v14699_v36 = vld [vmem:[%s17922_s0 + $0x108] sm:$0xff]  ;;  %v14704_v37 = vld [vmem:[%s17922_s0 + $0x91] sm:$0xff]  ;;  %17980 = vst [vmem:[#allocation12_spill] sm:$0xff] %v14715_v38  ;;  %v14722_v39 = vld [vmem:[%s17922_s0 + $0x99] sm:$0xff]  ;;  %vm9008_vm7 = vcmask 1041409   ;;  %vm10328_vm8 = vcmask 261120  }
  0x25   :  { %12752 = vmatprep.mubr.msk.f32.mxu0 %vm164_vm1, %v14671_v32  ;;  %v14727_v40 = vld [vmem:[%s17922_s0 + $0x120] sm:$0xff]  ;;  %v14732_v41 = vld [vmem:[%s17922_s0 + $0xa9] sm:$0xff]  ;;  %v14750_v43 = vld [vmem:[%s17922_s0 + $0xb1] sm:$0xff]  ;;  %vm10402_vm9 = vcmask 74752   ;;  %vm10439_vm10 = vcmask 73728  }
  0x26   :  { %12447 = vmatmul.mubr.msk.f32.gmra.mrb[10].mxu1 %vm164_vm1, %v14694_v35  ;;  %17981 = vst [vmem:[#allocation13_spill] sm:$0xff] %v14727_v40  ;;  %v14743_v42 = vld [vmem:[%s17922_s0 + $0x128] sm:$0xff]  ;;  %v14755_v44 = vld [vmem:[%s17922_s0 + $0x138] sm:$0xff]  ;;  %v14771_v46 = vld [vmem:[%s17922_s0 + $0x140] sm:$0xff] }
  0x27   :  { %12449 = vmatprep.mubr.msk.f32.mxu1 %vm164_vm1, %v14704_v37  ;;  %17982 = vst [vmem:[#allocation14_spill] sm:$0xff] %v14743_v42  ;;  %17983 = vst [vmem:[#allocation15_spill] sm:$0xff] %v14755_v44  ;;  %v14760_v45 = vld [vmem:[%s17922_s0 + $0xc1] sm:$0xff]  ;;  %v14778_v47 = vld [vmem:[%s17922_s0 + $0xc9] sm:$0xff] }
  0x28   :  { %12753 = vmatmul.mubr.msk.f32.gmra.mrb[18].mxu0 %vm164_vm1, %v14687_v34  ;;  %17984 = vst [vmem:[#allocation16_spill] sm:$0xff] %v14771_v46  ;;  %v14783_v48 = vld [vmem:[%s17922_s0 + $0x150] sm:$0xff]  ;;  %v14788_v49 = vld [vmem:[%s17922_s0 + $0xd9] sm:$0xff]  ;;  %v14806_v51 = vld [vmem:[%s17922_s0 + $0xe1] sm:$0xff] }
  0x29   :  { %12755 = vmatprep.mubr.msk.f32.mxu0 %vm164_vm1, %v14699_v36  ;;  %17985 = vst [vmem:[#allocation17_spill] sm:$0xff] %v14783_v48  ;;  %v14799_v50 = vld [vmem:[%s17922_s0 + $0x158] sm:$0xff]  ;;  %v14811_v52 = vld [vmem:[%s17922_s0 + $0x168] sm:$0xff]  ;;  %v14827_v54 = vld [vmem:[%s17922_s0 + $0x170] sm:$0xff] }
  0x2a   :  { %12450 = vmatmul.mubr.msk.f32.gmra.mrb[12].mxu1 %vm164_vm1, %v14722_v39  ;;  %17986 = vst [vmem:[#allocation18_spill] sm:$0xff] %v14799_v50  ;;  %17987 = vst [vmem:[#allocation19_spill] sm:$0xff] %v14811_v52  ;;  %v14816_v53 = vld [vmem:[%s17922_s0 + $0xf1] sm:$0xff]  ;;  %v14834_v55 = vld [vmem:[%s17922_s0 + $0xf9] sm:$0xff] }
  0x2b   :  { %12452 = vmatprep.mubr.msk.f32.mxu1 %vm164_vm1, %v14732_v41  ;;  %17988 = vst [vmem:[#allocation20_spill] sm:$0xff] %v14827_v54  ;;  %v10685_v56 = vld [vmem:[%s17922_s0 + $0x180] sm:$0xff]  ;;  %v14842_v57 = vld [vmem:[%s17922_s0 + $0x109] sm:$0xff]  ;;  %v14857_v59 = vld [vmem:[%s17922_s0 + $0x111] sm:$0xff] }
  0x2c   :  { %12756 = vmatmul.mubr.msk.f32.gmra.mrb[20].mxu0 %vm164_vm1, %v14715_v38  ;;  %v10686_v58 = vld [vmem:[%s17922_s0 + $0x188] sm:$0xff]  ;;  %v14877_v62 = vld [vmem:[%s17922_s0 + $0x1d0] sm:$0xff]  ;;  %v14889_v3 = vld [vmem:[%s17922_s0 + $0x1e0] sm:$0xff] }
  0x2d   :  { %12758 = vmatprep.mubr.msk.f32.mxu0 %vm164_vm1, %v14727_v40  ;;  %v14862_v60 = vld [vmem:[%s17922_s0 + $0x1c8] sm:$0xff]  ;;  %17990 = vst [vmem:[#allocation22_spill] sm:$0xff] %v14877_v62  ;;  %17991 = vst [vmem:[#allocation23_spill] sm:$0xff] %v14889_v3  ;;  %v14894_v12 = vld [vmem:[%s17922_s0 + $0x139] sm:$0xff] }
  0x2e   :  { %12453 = vmatmul.mubr.msk.f32.gmra.mrb[14].mxu1 %vm164_vm1, %v14750_v43  ;;  %17989 = vst [vmem:[#allocation21_spill] sm:$0xff] %v14862_v60  ;;  %v14867_v61 = vld [vmem:[%s17922_s0 + $0x121] sm:$0xff]  ;;  %v14884_v63 = vld [vmem:[%s17922_s0 + $0x129] sm:$0xff]  ;;  %v15135_v38 = vld [vmem:[%s17922_s0 + $0x231] sm:$0xff] }
  0x2f   :  { %12455 = vmatprep.mubr.msk.f32.mxu1 %vm164_vm1, %v14760_v45  ;;  %v14905_v13 = vld [vmem:[%s17922_s0 + $0x1e8] sm:$0xff]  ;;  %v14933_v0 = vld [vmem:[%s17922_s0 + $0x200] sm:$0xff]  ;;  %v15100_v40 = vld [vmem:[%s17922_s0 + $0x290] sm:$0xff]  ;;  %18012 = vst [vmem:[#allocation44_spill] sm:$0xff] %v15135_v38 }
  0x30   :  { %12759 = vmatmul.mubr.msk.f32.gmra.mrb[22].mxu0 %vm164_vm1, %v14743_v42  ;;  %17992 = vst [vmem:[#allocation24_spill] sm:$0xff] %v14905_v13  ;;  %v14912_v15 = vld [vmem:[%s17922_s0 + $0x141] sm:$0xff]  ;;  %17994 = vst [vmem:[#allocation26_spill] sm:$0xff] %v14933_v0 }
  0x31   :  { %12761 = vmatprep.mubr.msk.f32.mxu0 %vm164_vm1, %v14755_v44  ;;  %v15070_v44 = vld [vmem:[%s17922_s0 + $0x278] sm:$0xff]  ;;  %v15082_v42 = vld [vmem:[%s17922_s0 + $0x288] sm:$0xff]  ;;  %18007 = vst [vmem:[#allocation39_spill] sm:$0xff] %v15100_v40 }
  0x32   :  { %12456 = vmatmul.mubr.msk.f32.gmra.mrb[16].mxu1 %vm164_vm1, %v14778_v47  ;;  %18004 = vst [vmem:[#allocation36_spill] sm:$0xff] %v15070_v44  ;;  %18005 = vst [vmem:[#allocation37_spill] sm:$0xff] %v15082_v42 }
  0x33   :  { %12458 = vmatprep.mubr.msk.f32.mxu1 %vm164_vm1, %v14788_v49 }
  0x34   :  { %12762 = vmatmul.mubr.msk.f32.gmra.mrb[24].mxu0 %vm164_vm1, %v14771_v46  ;;  %v97_v46 = vld [vmem:[%s17923_s1] sm:$0xf] }
  0x35   :  { %12764 = vmatprep.mubr.msk.f32.mxu0 %vm164_vm1, %v14783_v48  ;;  %v15046_v48 = vld [vmem:[%s17922_s0 + $0x1e9] sm:$0xff]  ;;  %12527 = vmatprep.subr.msk.mxu1 %vm357_vm0, %v97_v46 }
  0x36   :  { %12459 = vmatmul.mubr.msk.f32.gmra.mrb[18].mxu1 %vm164_vm1, %v14806_v51 }
  0x37   :  { %12461 = vmatprep.mubr.msk.f32.mxu1 %vm164_vm1, %v14816_v53  ;;  %12528 = vmatpush3.msk.msra.mxu1 %vm357_vm0, %v97_v46  ;;  %v15107_v46 = vld [vmem:[%s17922_s0 + $0x219] sm:$0xff] }
  0x38   :  { %12765 = vmatmul.mubr.msk.f32.gmra.mrb[26].mxu0 %vm164_vm1, %v14799_v50  ;;  %v15018_v50 = vld [vmem:[%s17922_s0 + $0x1d1] sm:$0xff]  ;;  %18008 = vst [vmem:[#allocation40_spill] sm:$0xff] %v15107_v46 }
  0x39   :  { %12767 = vmatprep.mubr.msk.f32.mxu0 %vm164_vm1, %v14811_v52  ;;  %v131_v52 = vld [vmem:[%s17922_s0 + $0x1b9] sm:$0xff] }
  0x3a   :  { %12462 = vmatmul.mubr.msk.f32.gmra.mrb[20].mxu1 %vm164_vm1, %v14834_v55 }
  0x3b   :  { %12464 = vmatprep.mubr.msk.f32.mxu1 %vm164_vm1, %v14842_v57 }
  0x3c   :  { %12768 = vmatmul.mubr.msk.f32.gmra.mrb[28].mxu0 %vm164_vm1, %v14827_v54  ;;  %v14987_v54 = vld [vmem:[%s17922_s0 + $0x230] sm:$0xff] }
  0x3d   :  { %12770 = vmatprep.mubr.msk.f32.mxu0 %vm164_vm1, %v10685_v56  ;;  %v14917_v56 = vld [vmem:[%s17922_s0 + $0x1f8] sm:$0xff]  ;;  %17998 = vst [vmem:[#allocation30_spill] sm:$0xff] %v14987_v54 }
  0x3e   :  { %12465 = vmatmul.mubr.msk.f32.gmra.mrb[22].mxu1 %vm164_vm1, %v14857_v59  ;;  %17993 = vst [vmem:[#allocation25_spill] sm:$0xff] %v14917_v56 }
  0x3f   :  { %12467 = vmatprep.mubr.msk.f32.mxu1 %vm164_vm1, %v14867_v61 }
  0x40   :  { %12771 = vmatmul.mubr.msk.f32.gmra.mrb[30].mxu0 %vm164_vm1, %v10686_v58  ;;  %v14922_v58 = vld [vmem:[%s17922_s0 + $0x151] sm:$0xff] }
  0x41   :  { %12773 = vmatprep.mubr.msk.f32.mxu0 %vm164_vm1, %v14862_v60  ;;  %v14968_v60 = vld [vmem:[%s17922_s0 + $0x171] sm:$0xff] }
  0x42   :  { %12468 = vmatmul.mubr.msk.f32.gmra.mrb[24].mxu1 %vm164_vm1, %v14884_v63 }
  0x43   :  { %12470 = vmatprep.mubr.msk.f32.mxu1 %vm164_vm1, %v14894_v12 }
  0x44   :  { %12774 = vmatmul.mubr.msk.f32.gmra.mrb[32].mxu0 %vm164_vm1, %v14877_v62  ;;  %v14961_v62 = vld [vmem:[%s17922_s0 + $0x218] sm:$0xff] }
  0x45   :  { %12776 = vmatprep.mubr.msk.f32.mxu0 %vm164_vm1, %v14889_v3  ;;  %v14940_v3 = vld [vmem:[%s17922_s0 + $0x159] sm:$0xff]  ;;  %17996 = vst [vmem:[#allocation28_spill] sm:$0xff] %v14961_v62 }
  0x46   :  { %12471 = vmatmul.mubr.msk.f32.gmra.mrb[26].mxu1 %vm164_vm1, %v14912_v15 }
  0x47   :  { %12473 = vmatprep.mubr.msk.f32.mxu1 %vm164_vm1, %v14922_v58 }
  0x48   :  { %12777 = vmatmul.mubr.msk.f32.gmra.mrb[34].mxu0 %vm164_vm1, %v14905_v13  ;;  %v14945_v13 = vld [vmem:[%s17922_s0 + $0x210] sm:$0xff] }
  0x49   :  { %12779 = vmatprep.mubr.msk.f32.mxu0 %vm164_vm1, %v14917_v56  ;;  %17995 = vst [vmem:[#allocation27_spill] sm:$0xff] %v14945_v13  ;;  %v14950_v56 = vld [vmem:[%s17922_s0 + $0x169] sm:$0xff] }
  0x4a   :  { %12474 = vmatmul.mubr.msk.f32.gmra.mrb[28].mxu1 %vm164_vm1, %v14940_v3 }
  0x4b   :  { %12476 = vmatprep.mubr.msk.f32.mxu1 %vm164_vm1, %v14950_v56 }
  0x4c   :  { %12780 = vmatmul.mubr.msk.f32.gmra.mrb[36].mxu0 %vm164_vm1, %v14933_v0  ;;  %v14973_v0 = vld [vmem:[%s17922_s0 + $0x228] sm:$0xff] }
  0x4d   :  { %12782 = vmatprep.mubr.msk.f32.mxu0 %vm164_vm1, %v14945_v13  ;;  %17997 = vst [vmem:[#allocation29_spill] sm:$0xff] %v14973_v0  ;;  %v130_v13 = vld [vmem:[%s17922_s0 + $0x1b1] sm:$0xff] }
  0x4e   :  { %12477 = vmatmul.mubr.msk.f32.gmra.mrb[30].mxu1 %vm164_vm1, %v14968_v60 }
  0x4f   :  { %12479 = vmatprep.mubr.msk.f32.mxu1 %vm164_vm1, %v130_v13  ;;  %v15011_v13 = vld [vmem:[%s17922_s0 + $0x248] sm:$0xff] }
  0x50   :  { %12783 = vmatmul.mubr.msk.f32.gmra.mrb[38].mxu0 %vm164_vm1, %v14961_v62  ;;  %v14996_v62 = vld [vmem:[%s17922_s0 + $0x240] sm:$0xff]  ;;  %18000 = vst [vmem:[#allocation32_spill] sm:$0xff] %v15011_v13 }
  0x51   :  { %12785 = vmatprep.mubr.msk.f32.mxu0 %vm164_vm1, %v14973_v0  ;;  %17999 = vst [vmem:[#allocation31_spill] sm:$0xff] %v14996_v62  ;;  %v15001_v0 = vld [vmem:[%s17922_s0 + $0x1c9] sm:$0xff] }
  0x52   :  { %12480 = vmatmul.mubr.msk.f32.gmra.mrb[32].mxu1 %vm164_vm1, %v131_v52  ;;  %v15023_v52 = vld [vmem:[%s17922_s0 + $0x258] sm:$0xff] }
  0x53   :  { %12482 = vmatprep.mubr.msk.f32.mxu1 %vm164_vm1, %v15001_v0  ;;  %18001 = vst [vmem:[#allocation33_spill] sm:$0xff] %v15023_v52 }
  0x54   :  { %12786 = vmatmul.mubr.msk.f32.gmra.mrb[40].mxu0 %vm164_vm1, %v14987_v54  ;;  %v15039_v54 = vld [vmem:[%s17922_s0 + $0x260] sm:$0xff] }
  0x55   :  { %12788 = vmatprep.mubr.msk.f32.mxu0 %vm164_vm1, %v14996_v62  ;;  %v15028_v62 = vld [vmem:[%s17922_s0 + $0x1e1] sm:$0xff]  ;;  %18002 = vst [vmem:[#allocation34_spill] sm:$0xff] %v15039_v54 }
  0x56   :  { %12483 = vmatmul.mubr.msk.f32.gmra.mrb[34].mxu1 %vm164_vm1, %v15018_v50 }
  0x57   :  { %12485 = vmatprep.mubr.msk.f32.mxu1 %vm164_vm1, %v15028_v62 }
  0x58   :  { %12789 = vmatmul.mubr.msk.f32.gmra.mrb[42].mxu0 %vm164_vm1, %v15011_v13  ;;  %v15051_v13 = vld [vmem:[%s17922_s0 + $0x270] sm:$0xff] }
  0x59   :  { %12791 = vmatprep.mubr.msk.f32.mxu0 %vm164_vm1, %v15023_v52  ;;  %18003 = vst [vmem:[#allocation35_spill] sm:$0xff] %v15051_v13  ;;  %v15056_v52 = vld [vmem:[%s17922_s0 + $0x1f9] sm:$0xff] }
  0x5a   :  { %12486 = vmatmul.mubr.msk.f32.gmra.mrb[36].mxu1 %vm164_vm1, %v15046_v48 }
  0x5b   :  { %12488 = vmatprep.mubr.msk.f32.mxu1 %vm164_vm1, %v15056_v52 }
  0x5c   :  { %12792 = vmatmul.mubr.msk.f32.gmra.mrb[44].mxu0 %vm164_vm1, %v15039_v54  ;;  %v15077_v54 = vld [vmem:[%s17922_s0 + $0x201] sm:$0xff] }
  0x5d   :  { %12794 = vmatprep.mubr.msk.f32.mxu0 %vm164_vm1, %v15051_v13  ;;  %v15087_v13 = vld [vmem:[%s17922_s0 + $0x211] sm:$0xff] }
  0x5e   :  { %18006 = vst [vmem:[#allocation38_spill] sm:$0xff] %v15087_v13  ;;  %12489 = vmatmul.mubr.msk.f32.gmra.mrb[38].mxu1 %vm164_vm1, %v15077_v54 }
  0x5f   :  { %12491 = vmatprep.mubr.msk.f32.mxu1 %vm164_vm1, %v15087_v13  ;;  %v15128_v13 = vld [vmem:[%s17922_s0 + $0x2a8] sm:$0xff] }
  0x60   :  { %12795 = vmatmul.mubr.msk.f32.gmra.mrb[46].mxu0 %vm164_vm1, %v15070_v44  ;;  %v15112_v44 = vld [vmem:[%s17922_s0 + $0x2a0] sm:$0xff]  ;;  %18011 = vst [vmem:[#allocation43_spill] sm:$0xff] %v15128_v13 }
  0x61   :  { %12797 = vmatprep.mubr.msk.f32.mxu0 %vm164_vm1, %v15082_v42  ;;  %18009 = vst [vmem:[#allocation41_spill] sm:$0xff] %v15112_v44  ;;  %v15117_v42 = vld [vmem:[%s17922_s0 + $0x229] sm:$0xff] }
  0x62   :  { %18010 = vst [vmem:[#allocation42_spill] sm:$0xff] %v15117_v42  ;;  %12492 = vmatmul.mubr.msk.f32.gmra.mrb[40].mxu1 %vm164_vm1, %v15107_v46  ;;  %v15163_v46 = vld [vmem:[%s17922_s0 + $0x249] sm:$0xff] }
  0x63   :  { %12494 = vmatprep.mubr.msk.f32.mxu1 %vm164_vm1, %v15117_v42  ;;  %v15156_v42 = vld [vmem:[%s17922_s0 + $0x2c0] sm:$0xff]  ;;  %18016 = vst [vmem:[#allocation48_spill] sm:$0xff] %v15163_v46 }
  0x64   :  { %12798 = vmatmul.mubr.msk.f32.gmra.mrb[48].mxu0 %vm164_vm1, %v15100_v40  ;;  %v15140_v40 = vld [vmem:[%s17922_s0 + $0x2b8] sm:$0xff]  ;;  %18015 = vst [vmem:[#allocation47_spill] sm:$0xff] %v15156_v42 }
  0x65   :  { %12800 = vmatprep.mubr.msk.f32.mxu0 %vm164_vm1, %v15112_v44  ;;  %18013 = vst [vmem:[#allocation45_spill] sm:$0xff] %v15140_v40  ;;  %v15145_v44 = vld [vmem:[%s17922_s0 + $0x241] sm:$0xff] }
  0x66   :  { %18014 = vst [vmem:[#allocation46_spill] sm:$0xff] %v15145_v44  ;;  %12495 = vmatmul.mubr.msk.f32.gmra.mrb[42].mxu1 %vm164_vm1, %v15135_v38  ;;  %v15191_v38 = vld [vmem:[%s17922_s0 + $0x261] sm:$0xff] }
  0x67   :  { %12497 = vmatprep.mubr.msk.f32.mxu1 %vm164_vm1, %v15145_v44  ;;  %v15184_v44 = vld [vmem:[%s17922_s0 + $0x2d8] sm:$0xff] }
  0x68   :  { %12801 = vmatmul.mubr.msk.f32.gmra.mrb[50].mxu0 %vm164_vm1, %v15128_v13  ;;  %v15168_v13 = vld [vmem:[%s17922_s0 + $0x2d0] sm:$0xff]  ;;  %18019 = vst [vmem:[#allocation51_spill] sm:$0xff] %v15184_v44 }
  0x69   :  { %12803 = vmatprep.mubr.msk.f32.mxu0 %vm164_vm1, %v15140_v40  ;;  %18017 = vst [vmem:[#allocation49_spill] sm:$0xff] %v15168_v13  ;;  %v15173_v40 = vld [vmem:[%s17922_s0 + $0x259] sm:$0xff] }
  0x6a   :  { %18018 = vst [vmem:[#allocation50_spill] sm:$0xff] %v15173_v40  ;;  %12498 = vmatmul.mubr.msk.f32.gmra.mrb[44].mxu1 %vm164_vm1, %v15163_v46  ;;  %v15219_v46 = vld [vmem:[%s17922_s0 + $0x279] sm:$0xff] }
  0x6b   :  { %12500 = vmatprep.mubr.msk.f32.mxu1 %vm164_vm1, %v15173_v40  ;;  %v15212_v40 = vld [vmem:[%s17922_s0 + $0x2f0] sm:$0xff] }
  0x6c   :  { %12804 = vmatmul.mubr.msk.f32.gmra.mrb[52].mxu0 %vm164_vm1, %v15156_v42  ;;  %v15196_v42 = vld [vmem:[%s17922_s0 + $0x2e8] sm:$0xff]  ;;  %18022 = vst [vmem:[#allocation54_spill] sm:$0xff] %v15212_v40 }
  0x6d   :  { %12806 = vmatprep.mubr.msk.f32.mxu0 %vm164_vm1, %v15168_v13  ;;  %18020 = vst [vmem:[#allocation52_spill] sm:$0xff] %v15196_v42  ;;  %v15201_v13 = vld [vmem:[%s17922_s0 + $0x271] sm:$0xff] }
  0x6e   :  { %18021 = vst [vmem:[#allocation53_spill] sm:$0xff] %v15201_v13  ;;  %12501 = vmatmul.mubr.msk.f32.gmra.mrb[46].mxu1 %vm164_vm1, %v15191_v38 }
  0x6f   :  { %12503 = vmatprep.mubr.msk.f32.mxu1 %vm164_vm1, %v15201_v13  ;;  %v15242_v13 = vld [vmem:[%s17922_s0 + $0x2a1] sm:$0xff] }
  0x70   :  { %12807 = vmatmul.mubr.msk.f32.gmra.mrb[54].mxu0 %vm164_vm1, %v15184_v44  ;;  %v15224_v44 = vld [vmem:[%s17922_s0 + $0x289] sm:$0xff] }
  0x71   :  { %12809 = vmatprep.mubr.msk.f32.mxu0 %vm164_vm1, %v15196_v42  ;;  %v15237_v42 = vld [vmem:[%s17922_s0 + $0x291] sm:$0xff] }
  0x72   :  { %12504 = vmatmul.mubr.msk.f32.gmra.mrb[48].mxu1 %vm164_vm1, %v15219_v46 }
  0x73   :  { %12506 = vmatprep.mubr.msk.f32.mxu1 %vm164_vm1, %v15224_v44 }
  0x74   :  { %12810 = vmatmul.mubr.msk.f32.gmra.mrb[56].mxu0 %vm164_vm1, %v15212_v40  ;;  %v15260_v40 = vld [vmem:[%s17922_s0 + $0x2a9] sm:$0xff] }
  0x75   :  { %12823 = vmatprep.mubr.msk.f32.mxu0 %vm164_vm1, %v14557_v16  ;;  %v15251_v16 = vld [vmem:[%s17923_s1 + $0x18] sm:$0xf] }
  0x76   :  { %12507 = vmatmul.mubr.msk.f32.gmra.mrb[50].mxu1 %vm164_vm1, %v15237_v42 }
  0x77   :  { %12509 = vmatprep.mubr.msk.f32.mxu1 %vm164_vm1, %v15242_v13 }
  0x78   :  { %12824 = vmatmul.mubr.msk.f32.vlgmr.msra.gmra.mrb[0].mxu0 %vm164_vm1, %v14575_v18  ;;  %v15267_v18 = vld [vmem:[%s17922_s0 + $0x2b9] sm:$0xff] }
  0x79   :  { %12920 = vmatpush3.msk.msra.mxu0 %vm357_vm0, %v14618_v25  ;;  %12826 = vmatprep.mubr.msk.f32.mxu0 %vm164_vm1, %v14585_v20  ;;  %v15282_v20 = vld [vmem:[%s17922_s0 + $0x2c1] sm:$0xff]  ;;  %v15287_v25 = vld [vmem:[%s17922_s0 + $0x2d1] sm:$0xff] }
  0x7a   :  { %13017 = vmatprep.subr.msk.mxu0 %vm357_vm0, %v15251_v16  ;;  %12510 = vmatmul.mubr.msk.f32.gmra.mrb[52].mxu1 %vm164_vm1, %v15260_v40 }
  0x7b   :  { %12512 = vmatprep.mubr.msk.f32.mxu1 %vm164_vm1, %v15267_v18 }
  0x7c   :  { %12827 = vmatmul.mubr.msk.f32.gmra.mrb[2].mxu0 %vm164_vm1, %v14603_v22  ;;  %v15300_v22 = vld [vmem:[%s17922_s0 + $0x2d9] sm:$0xff] }
  0x7d   :  { %12829 = vmatprep.mubr.msk.f32.mxu0 %vm164_vm1, %v14613_v24  ;;  %v15305_v24 = vld [vmem:[%s17922_s0 + $0x2e9] sm:$0xff] }
  0x7e   :  { %12513 = vmatmul.mubr.msk.f32.gmra.mrb[54].mxu1 %vm164_vm1, %v15282_v20 }
  0x7f   :  { %12515 = vmatprep.mubr.msk.f32.mxu1 %vm164_vm1, %v15287_v25 }
  0x80   :  { %12830 = vmatmul.mubr.msk.f32.gmra.mrb[4].mxu0 %vm164_vm1, %v14638_v27  ;;  %v15318_v27 = vld [vmem:[%s17922_s0 + $0x2f1] sm:$0xff] }
  0x81   :  { %12832 = vmatprep.mubr.msk.f32.mxu0 %vm164_vm1, %v14648_v29  ;;  %v15323_v29 = vld [vmem:[%s17922_s0 + $0x301] sm:$0xff] }
  0x82   :  { %12516 = vmatmul.mubr.msk.f32.gmra.mrb[56].mxu1 %vm164_vm1, %v15300_v22 }
  0x83   :  { %12518 = vmatprep.mubr.msk.f32.mxu1 %vm164_vm1, %v15305_v24 }
  0x84   :  { %12833 = vmatmul.mubr.msk.f32.gmra.mrb[6].mxu0 %vm164_vm1, %v14666_v31  ;;  %v15336_v31 = vld [vmem:[%s17922_s0 + $0x309] sm:$0xff] }
  0x85   :  { %12835 = vmatprep.mubr.msk.f32.mxu0 %vm164_vm1, %v14676_v33  ;;  %v15341_v33 = vld [vmem:[%s17922_s0 + $0x319] sm:$0xff] }
  0x86   :  { %12519 = vmatmul.mubr.msk.f32.gmra.mrb[58].mxu1 %vm164_vm1, %v15318_v27 }
  0x87   :  { %12521 = vmatprep.mubr.msk.f32.mxu1 %vm164_vm1, %v15323_v29 }
  0x88   :  { %12836 = vmatmul.mubr.msk.f32.gmra.mrb[8].mxu0 %vm164_vm1, %v14694_v35  ;;  %v15354_v35 = vld [vmem:[%s17922_s0 + $0x321] sm:$0xff] }
  0x89   :  { %12838 = vmatprep.mubr.msk.f32.mxu0 %vm164_vm1, %v14704_v37  ;;  %v33_v37 = vld [vmem:[%s17922_s0] sm:$0xff] }
  0x8a   :  { %12522 = vmatmul.mubr.msk.f32.gmra.mrb[60].mxu1 %vm164_vm1, %v15336_v31 }
  0x8b   :  { %12524 = vmatprep.mubr.msk.f32.mxu1 %vm164_vm1, %v15341_v33 }
  0x8c   :  { %12839 = vmatmul.mubr.msk.f32.gmra.mrb[10].mxu0 %vm164_vm1, %v14722_v39  ;;  %v34_v39 = vld [vmem:[%s17922_s0 + $0x8] sm:$0xff] }
  0x8d   :  { %12841 = vmatprep.mubr.msk.f32.mxu0 %vm164_vm1, %v14732_v41  ;;  %v18042_v41 = vld [vmem:[#allocation23_spill] sm:$0xff] }
  0x8e   :  { %12525 = vmatmul.mubr.msk.f32.gmra.mrb[62].mxu1 %vm164_vm1, %v15354_v35 }
  0x8f   :  { %12529 = vmatprep.mubr.msk.f32.mxu1 %vm164_vm1, %v33_v37  ;;  %v15658_v37 = vld [vmem:[%s17922_s0 + $0x300] sm:$0xff] }
  0x90   :  { %12842 = vmatmul.mubr.msk.f32.gmra.mrb[12].mxu0 %vm164_vm1, %v14750_v43  ;;  %v18043_v43 = vld [vmem:[#allocation24_spill] sm:$0xff] }
  0x91   :  { %12844 = vmatprep.mubr.msk.f32.mxu0 %vm164_vm1, %v14760_v45  ;;  %v18046_v45 = vld [vmem:[#allocation27_spill] sm:$0xff] }
  0x92   :  { %12530 = vmatmul.mubr.msk.f32.vlgmr.msra.gmra.mrb[0].mxu1 %vm164_vm1, %v34_v39  ;;  %v18066_v39 = vld [vmem:[#allocation54_spill] sm:$0xff] }
  0x93   :  { %12532 = vmatprep.mubr.msk.f32.mxu1 %vm164_vm1, %v14464_v1  ;;  %v10815_v1 = vld [vmem:[%s17922_s0 + $0x181] sm:$0xff] }
  0x94   :  { %12845 = vmatmul.mubr.msk.f32.gmra.mrb[14].mxu0 %vm164_vm1, %v14778_v47  ;;  %v18047_v47 = vld [vmem:[#allocation11_spill] sm:$0xff] }
  0x95   :  { %12847 = vmatprep.mubr.msk.f32.mxu0 %vm164_vm1, %v14788_v49  ;;  %v18049_v49 = vld [vmem:[#allocation29_spill] sm:$0xff] }
  0x96   :  { %12533 = vmatmul.mubr.msk.f32.gmra.mrb[2].mxu1 %vm164_vm1, %v14469_v2  ;;  %v10816_v2 = vld [vmem:[%s17922_s0 + $0x189] sm:$0xff] }
  0x97   :  { %12535 = vmatprep.mubr.msk.f32.mxu1 %vm164_vm1, %v14481_v4  ;;  %v18024_v4 = vld [vmem:[#allocation38_spill] sm:$0xff] }
  0x98   :  { %12848 = vmatmul.mubr.msk.f32.gmra.mrb[16].mxu0 %vm164_vm1, %v14806_v51  ;;  %v18051_v51 = vld [vmem:[#allocation31_spill] sm:$0xff] }
  0x99   :  { %12850 = vmatprep.mubr.msk.f32.mxu0 %vm164_vm1, %v14816_v53  ;;  %v18052_v53 = vld [vmem:[#allocation32_spill] sm:$0xff] }
  0x9a   :  { %12536 = vmatmul.mubr.msk.f32.gmra.mrb[4].mxu1 %vm164_vm1, %v14494_v5  ;;  %v18025_v5 = vld [vmem:[#allocation13_spill] sm:$0xff] }
  0x9b   :  { %12538 = vmatprep.mubr.msk.f32.mxu1 %vm164_vm1, %v14499_v6  ;;  %v18026_v6 = vld [vmem:[#allocation40_spill] sm:$0xff] }
  0x9c   :  { %12851 = vmatmul.mubr.msk.f32.gmra.mrb[18].mxu0 %vm164_vm1, %v14834_v55  ;;  %v10847_v55 = vld [vmem:[%s17922_s0 + $0x331] sm:$0xff] }
  0x9d   :  { %12853 = vmatprep.mubr.msk.f32.mxu0 %vm164_vm1, %v14842_v57  ;;  %v18054_v57 = vld [vmem:[#allocation34_spill] sm:$0xff] }
  0x9e   :  { %12539 = vmatmul.mubr.msk.f32.gmra.mrb[6].mxu1 %vm164_vm1, %v14508_v7  ;;  %v18027_v7 = vld [vmem:[#allocation14_spill] sm:$0xff] }
  0x9f   :  { %12541 = vmatprep.mubr.msk.f32.mxu1 %vm164_vm1, %v14513_v8  ;;  %v18028_v8 = vld [vmem:[#allocation42_spill] sm:$0xff] }
  0xa0   :  { %12854 = vmatmul.mubr.msk.f32.gmra.mrb[20].mxu0 %vm164_vm1, %v14857_v59  ;;  %v10848_v59 = vld [vmem:[%s17922_s0 + $0x339] sm:$0xff] }
  0xa1   :  { %12856 = vmatprep.mubr.msk.f32.mxu0 %vm164_vm1, %v14867_v61  ;;  %v10915_v61 = vld [vmem:[%s17922_s0 + $0x1a] sm:$0xff] }
  0xa2   :  { %12542 = vmatmul.mubr.msk.f32.gmra.mrb[8].mxu1 %vm164_vm1, %v14522_v9  ;;  %v18029_v9 = vld [vmem:[#allocation15_spill] sm:$0xff] }
  0xa3   :  { %12544 = vmatprep.mubr.msk.f32.mxu1 %vm164_vm1, %v14527_v10  ;;  %v18030_v10 = vld [vmem:[#allocation44_spill] sm:$0xff] }
  0xa4   :  { %12857 = vmatmul.mubr.msk.f32.gmra.mrb[22].mxu0 %vm164_vm1, %v14884_v63  ;;  %v10916_v63 = vld [vmem:[%s17922_s0 + $0x22] sm:$0xff] }
  0xa5   :  { %12859 = vmatprep.mubr.msk.f32.mxu0 %vm164_vm1, %v14894_v12  ;;  %v15595_v12 = vld [vmem:[%s17922_s0 + $0x32] sm:$0xff] }
  0xa6   :  { %12545 = vmatmul.mubr.msk.f32.gmra.mrb[10].mxu1 %vm164_vm1, %v14536_v11  ;;  %v18031_v11 = vld [vmem:[#allocation16_spill] sm:$0xff] }
  0xa7   :  { %12547 = vmatprep.mubr.msk.f32.mxu1 %vm164_vm1, %v14547_v14  ;;  %v18032_v14 = vld [vmem:[#allocation46_spill] sm:$0xff] }
  0xa8   :  { %12860 = vmatmul.mubr.msk.f32.gmra.mrb[24].mxu0 %vm164_vm1, %v14912_v15  ;;  %v18058_v15 = vld [vmem:[#allocation39_spill] sm:$0xff] }
  0xa9   :  { %12862 = vmatprep.mubr.msk.f32.mxu0 %vm164_vm1, %v14922_v58  ;;  %v10918_v58 = vld [vmem:[%s17922_s0 + $0x3a] sm:$0xff] }
  0xaa   :  { %12548 = vmatmul.mubr.msk.f32.gmra.mrb[12].mxu1 %vm164_vm1, %v14568_v17  ;;  %v18033_v17 = vld [vmem:[#allocation17_spill] sm:$0xff] }
  0xab   :  { %12550 = vmatprep.mubr.msk.f32.mxu1 %vm164_vm1, %v14580_v19  ;;  %v18034_v19 = vld [vmem:[#allocation48_spill] sm:$0xff] }
  0xac   :  { %12863 = vmatmul.mubr.msk.f32.gmra.mrb[26].mxu0 %vm164_vm1, %v14940_v3  ;;  %v18057_v3 = vld [vmem:[#allocation37_spill] sm:$0xff] }
  0xad   :  { %12865 = vmatprep.mubr.msk.f32.mxu0 %vm164_vm1, %v14950_v56  ;;  %v15603_v56 = vld [vmem:[%s17923_s1 + $0x1c] sm:$0xf] }
  0xae   :  { %12551 = vmatmul.mubr.msk.f32.gmra.mrb[14].mxu1 %vm164_vm1, %v14596_v21  ;;  %v18035_v21 = vld [vmem:[#allocation18_spill] sm:$0xff] }
  0xaf   :  { %12553 = vmatprep.mubr.msk.f32.mxu1 %vm164_vm1, %v14608_v23  ;;  %v18036_v23 = vld [vmem:[#allocation50_spill] sm:$0xff] }
  0xb0   :  { %12866 = vmatmul.mubr.msk.f32.gmra.mrb[28].mxu0 %vm164_vm1, %v14968_v60  ;;  %v18055_v60 = vld [vmem:[#allocation35_spill] sm:$0xff] }
  0xb1   :  { %12868 = vmatprep.mubr.msk.f32.mxu0 %vm164_vm1, %v10815_v1  ;;  %v10926_v1 = vld [vmem:[%s17922_s0 + $0x9a] sm:$0xff] }
  0xb2   :  { %12554 = vmatmul.mubr.msk.f32.gmra.mrb[16].mxu1 %vm164_vm1, %v14631_v26  ;;  %v18037_v26 = vld [vmem:[#allocation19_spill] sm:$0xff] }
  0xb3   :  { %12556 = vmatprep.mubr.msk.f32.mxu1 %vm164_vm1, %v14643_v28  ;;  %v65_v28 = vld [vmem:[%s17922_s0 + $0x1b0] sm:$0xff] }
  0xb4   :  { %12869 = vmatmul.mubr.msk.f32.gmra.mrb[30].mxu0 %vm164_vm1, %v10816_v2  ;;  %v15672_v2 = vld [vmem:[%s17922_s0 + $0x308] sm:$0xff] }
  0xb5   :  { %12871 = vmatprep.mubr.msk.f32.mxu0 %vm164_vm1, %v15001_v0  ;;  %v18023_v0 = vld [vmem:[#allocation12_spill] sm:$0xff] }
  0xb6   :  { %12557 = vmatmul.mubr.msk.f32.gmra.mrb[18].mxu1 %vm164_vm1, %v14659_v30  ;;  %v18038_v30 = vld [vmem:[#allocation20_spill] sm:$0xff] }
  0xb7   :  { %12559 = vmatprep.mubr.msk.f32.mxu1 %vm164_vm1, %v14671_v32  ;;  %v18039_v32 = vld [vmem:[#allocation53_spill] sm:$0xff] }
  0xb8   :  { %12872 = vmatmul.mubr.msk.f32.gmra.mrb[32].mxu0 %vm164_vm1, %v15018_v50  ;;  %v18050_v50 = vld [vmem:[#allocation30_spill] sm:$0xff] }
  0xb9   :  { %12874 = vmatprep.mubr.msk.f32.mxu0 %vm164_vm1, %v15028_v62  ;;  %v18056_v62 = vld [vmem:[#allocation36_spill] sm:$0xff] }
  0xba   :  { %12560 = vmatmul.mubr.msk.f32.gmra.mrb[20].mxu1 %vm164_vm1, %v14687_v34  ;;  %v66_v34 = vld [vmem:[%s17922_s0 + $0x1b8] sm:$0xff] }
  0xbb   :  { %12562 = vmatprep.mubr.msk.f32.mxu1 %vm164_vm1, %v14699_v36  ;;  %v18040_v36 = vld [vmem:[#allocation21_spill] sm:$0xff] }
  0xbc   :  { %12875 = vmatmul.mubr.msk.f32.gmra.mrb[34].mxu0 %vm164_vm1, %v15046_v48  ;;  %v18048_v48 = vld [vmem:[#allocation28_spill] sm:$0xff] }
  0xbd   :  { %12877 = vmatprep.mubr.msk.f32.mxu0 %vm164_vm1, %v15056_v52  ;;  %v18059_v52 = vld [vmem:[#allocation41_spill] sm:$0xff] }
  0xbe   :  { %12563 = vmatmul.mubr.msk.f32.gmra.mrb[22].mxu1 %vm164_vm1, %v18023_v0  ;;  %v10927_v0 = vld [vmem:[%s17922_s0 + $0xaa] sm:$0xff] }
  0xbf   :  { %12565 = vmatprep.mubr.msk.f32.mxu1 %vm164_vm1, %v18025_v5  ;;  %v10928_v5 = vld [vmem:[%s17922_s0 + $0xb2] sm:$0xff] }
  0xc0   :  { %12878 = vmatmul.mubr.msk.f32.gmra.mrb[36].mxu0 %vm164_vm1, %v15077_v54  ;;  %v18053_v54 = vld [vmem:[#allocation33_spill] sm:$0xff] }
  0xc1   :  { %12880 = vmatprep.mubr.msk.f32.mxu0 %vm164_vm1, %v18024_v4  ;;  %v15680_v4 = vld [vmem:[%s17922_s0 + $0x318] sm:$0xff] }
  0xc2   :  { %12566 = vmatmul.mubr.msk.f32.gmra.mrb[24].mxu1 %vm164_vm1, %v18027_v7  ;;  %v10929_v7 = vld [vmem:[%s17922_s0 + $0xc2] sm:$0xff] }
  0xc3   :  { %12568 = vmatprep.mubr.msk.f32.mxu1 %vm164_vm1, %v18029_v9  ;;  %v10930_v9 = vld [vmem:[%s17922_s0 + $0xca] sm:$0xff] }
  0xc4   :  { %12881 = vmatmul.mubr.msk.f32.gmra.mrb[38].mxu0 %vm164_vm1, %v18026_v6  ;;  %v15694_v6 = vld [vmem:[%s17922_s0 + $0x320] sm:$0xff] }
  0xc5   :  { %12883 = vmatprep.mubr.msk.f32.mxu0 %vm164_vm1, %v18028_v8  ;;  %v1326_v8 = vld [vmem:[%s17922_s0 + $0x2] sm:$0xff] }
  0xc6   :  { %12569 = vmatmul.mubr.msk.f32.gmra.mrb[26].mxu1 %vm164_vm1, %v18031_v11  ;;  %v10931_v11 = vld [vmem:[%s17922_s0 + $0xda] sm:$0xff] }
  0xc7   :  { %12571 = vmatprep.mubr.msk.f32.mxu1 %vm164_vm1, %v18033_v17  ;;  %v10933_v17 = vld [vmem:[%s17922_s0 + $0xf2] sm:$0xff] }
  0xc8   :  { %12884 = vmatmul.mubr.msk.f32.gmra.mrb[40].mxu0 %vm164_vm1, %v18030_v10  ;;  %v1327_v10 = vld [vmem:[%s17922_s0 + $0xa] sm:$0xff] }
  0xc9   :  { %12886 = vmatprep.mubr.msk.f32.mxu0 %vm164_vm1, %v18032_v14  ;;  %v10932_v14 = vld [vmem:[%s17922_s0 + $0xe2] sm:$0xff] }
  0xca   :  { %12572 = vmatmul.mubr.msk.f32.gmra.mrb[28].mxu1 %vm164_vm1, %v18035_v21  ;;  %v10935_v21 = vld [vmem:[%s17922_s0 + $0x10a] sm:$0xff] }
  0xcb   :  { %12574 = vmatprep.mubr.msk.f32.mxu1 %vm164_vm1, %v18037_v26  ;;  %v10937_v26 = vld [vmem:[%s17922_s0 + $0x122] sm:$0xff] }
  0xcc   :  { %12887 = vmatmul.mubr.msk.f32.gmra.mrb[42].mxu0 %vm164_vm1, %v18034_v19  ;;  %v10934_v19 = vld [vmem:[%s17922_s0 + $0xfa] sm:$0xff] }
  0xcd   :  { %12889 = vmatprep.mubr.msk.f32.mxu0 %vm164_vm1, %v18036_v23  ;;  %v10936_v23 = vld [vmem:[%s17922_s0 + $0x112] sm:$0xff] }
  0xce   :  { %12575 = vmatmul.mubr.msk.f32.gmra.mrb[30].mxu1 %vm164_vm1, %v18038_v30  ;;  %v10939_v30 = vld [vmem:[%s17922_s0 + $0x13a] sm:$0xff] }
  0xcf   :  { %12577 = vmatprep.mubr.msk.f32.mxu1 %vm164_vm1, %v65_v28  ;;  %v10938_v28 = vld [vmem:[%s17922_s0 + $0x12a] sm:$0xff] }
  0xd0   :  { %12890 = vmatmul.mubr.msk.f32.gmra.mrb[44].mxu0 %vm164_vm1, %v15191_v38  ;;  %v18041_v38 = vld [vmem:[#allocation22_spill] sm:$0xff] }
  0xd1   :  { %12892 = vmatprep.mubr.msk.f32.mxu0 %vm164_vm1, %v18039_v32  ;;  %v10940_v32 = vld [vmem:[%s17922_s0 + $0x142] sm:$0xff] }
  0xd2   :  { %12578 = vmatmul.mubr.msk.f32.gmra.mrb[32].mxu1 %vm164_vm1, %v66_v34  ;;  %v10941_v34 = vld [vmem:[%s17922_s0 + $0x152] sm:$0xff] }
  0xd3   :  { %12580 = vmatprep.mubr.msk.f32.mxu1 %vm164_vm1, %v18040_v36  ;;  %v10942_v36 = vld [vmem:[%s17922_s0 + $0x15a] sm:$0xff] }
  0xd4   :  { %12893 = vmatmul.mubr.msk.f32.gmra.mrb[46].mxu0 %vm164_vm1, %v15219_v46  ;;  %v18060_v46 = vld [vmem:[#allocation43_spill] sm:$0xff] }
  0xd5   :  { %12895 = vmatprep.mubr.msk.f32.mxu0 %vm164_vm1, %v15224_v44  ;;  %v10589_v44 = vld [vmem:[%s17923_s1 + $0x8] sm:$0xf] }
  0xd6   :  { %12581 = vmatmul.mubr.msk.f32.gmra.mrb[34].mxu1 %vm164_vm1, %v18041_v38  ;;  %12625 = vmatprep.subr.msk.mxu1 %vm357_vm0, %v10589_v44  ;;  %v10943_v38 = vld [vmem:[%s17922_s0 + $0x16a] sm:$0xff] }
  0xd7   :  { %12583 = vmatprep.mubr.msk.f32.mxu1 %vm164_vm1, %v18042_v41  ;;  %12626 = vmatpush3.msk.msra.mxu1 %vm357_vm0, %v10589_v44  ;;  %v10944_v41 = vld [vmem:[%s17922_s0 + $0x172] sm:$0xff]  ;;  %v10946_v44 = vld [vmem:[%s17922_s0 + $0x18a] sm:$0xff] }
  0xd8   :  { %12896 = vmatmul.mubr.msk.f32.gmra.mrb[48].mxu0 %vm164_vm1, %v15237_v42  ;;  %v18044_v42 = vld [vmem:[#allocation25_spill] sm:$0xff]  ;;  %13722 = vmatprep.subr.msk.mxu1 %vm357_vm0, %v18047_v47 }
  0xd9   :  { %12898 = vmatprep.mubr.msk.f32.mxu0 %vm164_vm1, %v15242_v13  ;;  %v10919_v13 = vld [vmem:[%s17922_s0 + $0x4a] sm:$0xff] }
  0xda   :  { %12584 = vmatmul.mubr.msk.f32.gmra.mrb[36].mxu1 %vm164_vm1, %v18043_v43  ;;  %v10945_v43 = vld [vmem:[%s17922_s0 + $0x182] sm:$0xff] }
  0xdb   :  { %12586 = vmatprep.mubr.msk.f32.mxu1 %vm164_vm1, %v18044_v42  ;;  %v10947_v42 = vld [vmem:[%s17922_s0 + $0x1ca] sm:$0xff] }
  0xdc   :  { %12899 = vmatmul.mubr.msk.f32.gmra.mrb[50].mxu0 %vm164_vm1, %v15260_v40  ;;  %v18045_v40 = vld [vmem:[#allocation26_spill] sm:$0xff] }
  0xdd   :  { %12901 = vmatprep.mubr.msk.f32.mxu0 %vm164_vm1, %v15267_v18  ;;  %v18061_v18 = vld [vmem:[#allocation45_spill] sm:$0xff] }
  0xde   :  { %12587 = vmatmul.mubr.msk.f32.gmra.mrb[38].mxu1 %vm164_vm1, %v18045_v40  ;;  %v10948_v40 = vld [vmem:[%s17922_s0 + $0x1d2] sm:$0xff] }
  0xdf   :  { %12589 = vmatprep.mubr.msk.f32.mxu1 %vm164_vm1, %v18046_v45  ;;  %v10949_v45 = vld [vmem:[%s17922_s0 + $0x1e2] sm:$0xff] }
  0xe0   :  { %12902 = vmatmul.mubr.msk.f32.gmra.mrb[52].mxu0 %vm164_vm1, %v15282_v20  ;;  %v10921_v20 = vld [vmem:[%s17922_s0 + $0x62] sm:$0xff] }
  0xe1   :  { %12904 = vmatprep.mubr.msk.f32.mxu0 %vm164_vm1, %v15287_v25  ;;  %v18062_v25 = vld [vmem:[#allocation47_spill] sm:$0xff] }
  0xe2   :  { %12590 = vmatmul.mubr.msk.f32.gmra.mrb[40].mxu1 %vm164_vm1, %v18048_v48  ;;  %v10951_v48 = vld [vmem:[%s17922_s0 + $0x1fa] sm:$0xff] }
  0xe3   :  { %12592 = vmatprep.mubr.msk.f32.mxu1 %vm164_vm1, %v18049_v49  ;;  %v10952_v49 = vld [vmem:[%s17922_s0 + $0x202] sm:$0xff] }
  0xe4   :  { %12905 = vmatmul.mubr.msk.f32.gmra.mrb[54].mxu0 %vm164_vm1, %v15300_v22  ;;  %v10922_v22 = vld [vmem:[%s17922_s0 + $0x6a] sm:$0xff] }
  0xe5   :  { %12907 = vmatprep.mubr.msk.f32.mxu0 %vm164_vm1, %v15305_v24  ;;  %v18063_v24 = vld [vmem:[#allocation49_spill] sm:$0xff] }
  0xe6   :  { %12593 = vmatmul.mubr.msk.f32.gmra.mrb[42].mxu1 %vm164_vm1, %v18050_v50  ;;  %v10953_v50 = vld [vmem:[%s17922_s0 + $0x212] sm:$0xff] }
  0xe7   :  { %12595 = vmatprep.mubr.msk.f32.mxu1 %vm164_vm1, %v18051_v51  ;;  %v10954_v51 = vld [vmem:[%s17922_s0 + $0x21a] sm:$0xff] }
  0xe8   :  { %12908 = vmatmul.mubr.msk.f32.gmra.mrb[56].mxu0 %vm164_vm1, %v15318_v27  ;;  %v10923_v27 = vld [vmem:[%s17922_s0 + $0x7a] sm:$0xff] }
  0xe9   :  { %12910 = vmatprep.mubr.msk.f32.mxu0 %vm164_vm1, %v15323_v29  ;;  %v18064_v29 = vld [vmem:[#allocation51_spill] sm:$0xff] }
  0xea   :  { %12596 = vmatmul.mubr.msk.f32.gmra.mrb[44].mxu1 %vm164_vm1, %v18052_v53  ;;  %v10955_v53 = vld [vmem:[%s17922_s0 + $0x22a] sm:$0xff] }
  0xeb   :  { %12598 = vmatprep.mubr.msk.f32.mxu1 %vm164_vm1, %v18053_v54  ;;  %v10956_v54 = vld [vmem:[%s17922_s0 + $0x232] sm:$0xff] }
  0xec   :  { %12911 = vmatmul.mubr.msk.f32.gmra.mrb[58].mxu0 %vm164_vm1, %v15336_v31  ;;  %v10924_v31 = vld [vmem:[%s17922_s0 + $0x82] sm:$0xff] }
  0xed   :  { %12913 = vmatprep.mubr.msk.f32.mxu0 %vm164_vm1, %v15341_v33  ;;  %v18065_v33 = vld [vmem:[#allocation52_spill] sm:$0xff] }
  0xee   :  { %12599 = vmatmul.mubr.msk.f32.gmra.mrb[46].mxu1 %vm164_vm1, %v18054_v57  ;;  %v10958_v57 = vld [vmem:[%s17922_s0 + $0x24a] sm:$0xff] }
  0xef   :  { %12601 = vmatprep.mubr.msk.f32.mxu1 %vm164_vm1, %v18055_v60  ;;  %v10960_v60 = vld [vmem:[%s17922_s0 + $0x262] sm:$0xff] }
  0xf0   :  { %12914 = vmatmul.mubr.msk.f32.gmra.mrb[60].mxu0 %vm164_vm1, %v15354_v35  ;;  %v10925_v35 = vld [vmem:[%s17922_s0 + $0x92] sm:$0xff] }
  0xf1   :  { %12916 = vmatprep.mubr.msk.f32.mxu0 %vm164_vm1, %v10847_v55  ;;  %v10957_v55 = vld [vmem:[%s17922_s0 + $0x242] sm:$0xff] }
  0xf2   :  { %12602 = vmatmul.mubr.msk.f32.gmra.mrb[48].mxu1 %vm164_vm1, %v18056_v62  ;;  %v1358_v62 = vld [vmem:[%s17922_s0 + $0x1b2] sm:$0xff] }
  0xf3   :  { %12604 = vmatprep.mubr.msk.f32.mxu1 %vm164_vm1, %v18057_v3  ;;  %v1359_v3 = vld [vmem:[%s17922_s0 + $0x1ba] sm:$0xff] }
  0xf4   :  { %12917 = vmatmul.mubr.msk.f32.gmra.mrb[62].mxu0 %vm164_vm1, %v10848_v59  ;;  %v10959_v59 = vld [vmem:[%s17922_s0 + $0x25a] sm:$0xff] }
  0xf5   :  { %12921 = vmatprep.mubr.msk.f32.mxu0 %vm164_vm1, %v10915_v61 }
  0xf6   :  { %12605 = vmatmul.mubr.msk.f32.gmra.mrb[50].mxu1 %vm164_vm1, %v18058_v15  ;;  %v10964_v15 = vld [vmem:[%s17922_s0 + $0x292] sm:$0xff] }
  0xf7   :  { %12607 = vmatprep.mubr.msk.f32.mxu1 %vm164_vm1, %v18059_v52  ;;  %v10967_v52 = vld [vmem:[%s17922_s0 + $0x2ba] sm:$0xff] }
  0xf8   :  { %12922 = vmatmul.mubr.msk.f32.vlgmr.msra.gmra.mrb[0].mxu0 %vm164_vm1, %v10916_v63 }
  0xf9   :  { %13018 = vmatpush3.msk.msra.mxu0 %vm357_vm0, %v15251_v16  ;;  %12924 = vmatprep.mubr.msk.f32.mxu0 %vm164_vm1, %v15595_v12  ;;  %v10920_v16 = vld [vmem:[%s17922_s0 + $0x52] sm:$0xff] }
  0xfa   :  { %13115 = vmatprep.subr.msk.mxu0 %vm357_vm0, %v15603_v56  ;;  %12608 = vmatmul.mubr.msk.f32.gmra.mrb[52].mxu1 %vm164_vm1, %v18060_v46  ;;  %v10968_v46 = vld [vmem:[%s17922_s0 + $0x2c2] sm:$0xff] }
  0xfb   :  { %12610 = vmatprep.mubr.msk.f32.mxu1 %vm164_vm1, %v18061_v18  ;;  %v10970_v18 = vld [vmem:[%s17922_s0 + $0x2da] sm:$0xff] }
  0xfc   :  { %12925 = vmatmul.mubr.msk.f32.gmra.mrb[2].mxu0 %vm164_vm1, %v10918_v58 }
  0xfd   :  { %12927 = vmatprep.mubr.msk.f32.mxu0 %vm164_vm1, %v10919_v13 }
  0xfe   :  { %12611 = vmatmul.mubr.msk.f32.gmra.mrb[54].mxu1 %vm164_vm1, %v18062_v25  ;;  %v10972_v25 = vld [vmem:[%s17922_s0 + $0x2f2] sm:$0xff] }
  0xff   :  { %12613 = vmatprep.mubr.msk.f32.mxu1 %vm164_vm1, %v18063_v24  ;;  %v10974_v24 = vld [vmem:[%s17922_s0 + $0x30a] sm:$0xff] }
 0x100   :  { %12928 = vmatmul.mubr.msk.f32.gmra.mrb[4].mxu0 %vm164_vm1, %v10920_v16 }
 0x101   :  { %12930 = vmatprep.mubr.msk.f32.mxu0 %vm164_vm1, %v10921_v20 }
 0x102   :  { %12614 = vmatmul.mubr.msk.f32.gmra.mrb[56].mxu1 %vm164_vm1, %v18064_v29  ;;  %v10976_v29 = vld [vmem:[%s17922_s0 + $0x322] sm:$0xff] }
 0x103   :  { %12616 = vmatprep.mubr.msk.f32.mxu1 %vm164_vm1, %v18065_v33  ;;  %v10978_v33 = vld [vmem:[%s17922_s0 + $0x33a] sm:$0xff] }
 0x104   :  { %12931 = vmatmul.mubr.msk.f32.gmra.mrb[6].mxu0 %vm164_vm1, %v10922_v22 }
 0x105   :  { %12933 = vmatprep.mubr.msk.f32.mxu0 %vm164_vm1, %v10923_v27 }
 0x106   :  { %12617 = vmatmul.mubr.msk.f32.gmra.mrb[58].mxu1 %vm164_vm1, %v18066_v39  ;;  %v11046_v39 = vld [vmem:[%s17922_s0 + $0x38] sm:$0xff] }
 0x107   :  { %12619 = vmatprep.mubr.msk.f32.mxu1 %vm164_vm1, %v15658_v37 }
 0x108   :  { %12934 = vmatmul.mubr.msk.f32.gmra.mrb[8].mxu0 %vm164_vm1, %v10924_v31 }
 0x109   :  { %12936 = vmatprep.mubr.msk.f32.mxu0 %vm164_vm1, %v10925_v35 }
 0x10a   :  { %12620 = vmatmul.mubr.msk.f32.gmra.mrb[60].mxu1 %vm164_vm1, %v15672_v2 }
 0x10b   :  { %12622 = vmatprep.mubr.msk.f32.mxu1 %vm164_vm1, %v15680_v4 }
 0x10c   :  { %12937 = vmatmul.mubr.msk.f32.gmra.mrb[10].mxu0 %vm164_vm1, %v10926_v1 }
 0x10d   :  { %12939 = vmatprep.mubr.msk.f32.mxu0 %vm164_vm1, %v10927_v0 }
 0x10e   :  { %12623 = vmatmul.mubr.msk.f32.gmra.mrb[62].mxu1 %vm164_vm1, %v15694_v6 }
 0x10f   :  { %12627 = vmatprep.mubr.msk.f32.mxu1 %vm164_vm1, %v1326_v8  ;;  %v11051_v8 = vld [vmem:[%s17922_s0 + $0x78] sm:$0xff] }
 0x110   :  { %12940 = vmatmul.mubr.msk.f32.gmra.mrb[12].mxu0 %vm164_vm1, %v10928_v5 }
 0x111   :  { %12942 = vmatprep.mubr.msk.f32.mxu0 %vm164_vm1, %v10929_v7 }
 0x112   :  { %12628 = vmatmul.mubr.msk.f32.vlgmr.msra.gmra.mrb[0].mxu1 %vm164_vm1, %v1327_v10  ;;  %v11053_v10 = vld [vmem:[%s17922_s0 + $0x90] sm:$0xff] }
 0x113   :  { %12630 = vmatprep.mubr.msk.f32.mxu1 %vm164_vm1, %v10915_v61  ;;  %13723 = vmatpush3.msk.msra.mxu1 %vm357_vm0, %v18047_v47  ;;  %v10950_v47 = vld [vmem:[%s17922_s0 + $0x1ea] sm:$0xff]  ;;  %v10961_v61 = vld [vmem:[%s17922_s0 + $0x272] sm:$0xff] }
 0x114   :  { %12943 = vmatmul.mubr.msk.f32.gmra.mrb[14].mxu0 %vm164_vm1, %v10930_v9 }
 0x115   :  { %12945 = vmatprep.mubr.msk.f32.mxu0 %vm164_vm1, %v10931_v11 }
 0x116   :  { %12631 = vmatmul.mubr.msk.f32.gmra.mrb[2].mxu1 %vm164_vm1, %v10916_v63  ;;  %v10962_v63 = vld [vmem:[%s17922_s0 + $0x27a] sm:$0xff] }
 0x117   :  { %12633 = vmatprep.mubr.msk.f32.mxu1 %vm164_vm1, %v15595_v12  ;;  %v10963_v12 = vld [vmem:[%s17922_s0 + $0x28a] sm:$0xff] }
 0x118   :  { %12946 = vmatmul.mubr.msk.f32.gmra.mrb[16].mxu0 %vm164_vm1, %v10932_v14 }
 0x119   :  { %12948 = vmatprep.mubr.msk.f32.mxu0 %vm164_vm1, %v10933_v17 }
 0x11a   :  { %12634 = vmatmul.mubr.msk.f32.gmra.mrb[4].mxu1 %vm164_vm1, %v10918_v58  ;;  %v10965_v58 = vld [vmem:[%s17922_s0 + $0x2a2] sm:$0xff] }
 0x11b   :  { %12636 = vmatprep.mubr.msk.f32.mxu1 %vm164_vm1, %v10919_v13  ;;  %v10966_v13 = vld [vmem:[%s17922_s0 + $0x2aa] sm:$0xff] }
 0x11c   :  { %12949 = vmatmul.mubr.msk.f32.gmra.mrb[18].mxu0 %vm164_vm1, %v10934_v19 }
 0x11d   :  { %12951 = vmatprep.mubr.msk.f32.mxu0 %vm164_vm1, %v10935_v21 }
 0x11e   :  { %12637 = vmatmul.mubr.msk.f32.gmra.mrb[6].mxu1 %vm164_vm1, %v10920_v16  ;;  %v10969_v16 = vld [vmem:[%s17922_s0 + $0x2d2] sm:$0xff] }
 0x11f   :  { %12639 = vmatprep.mubr.msk.f32.mxu1 %vm164_vm1, %v10921_v20  ;;  %v10971_v20 = vld [vmem:[%s17922_s0 + $0x2ea] sm:$0xff] }
 0x120   :  { %12952 = vmatmul.mubr.msk.f32.gmra.mrb[20].mxu0 %vm164_vm1, %v10936_v23 }
 0x121   :  { %12954 = vmatprep.mubr.msk.f32.mxu0 %vm164_vm1, %v10937_v26 }
 0x122   :  { %12640 = vmatmul.mubr.msk.f32.gmra.mrb[8].mxu1 %vm164_vm1, %v10922_v22  ;;  %v10973_v22 = vld [vmem:[%s17922_s0 + $0x302] sm:$0xff] }
 0x123   :  { %12642 = vmatprep.mubr.msk.f32.mxu1 %vm164_vm1, %v10923_v27  ;;  %v10975_v27 = vld [vmem:[%s17922_s0 + $0x31a] sm:$0xff] }
 0x124   :  { %12955 = vmatmul.mubr.msk.f32.gmra.mrb[22].mxu0 %vm164_vm1, %v10938_v28 }
 0x125   :  { %12957 = vmatprep.mubr.msk.f32.mxu0 %vm164_vm1, %v10939_v30 }
 0x126   :  { %12643 = vmatmul.mubr.msk.f32.gmra.mrb[10].mxu1 %vm164_vm1, %v10924_v31  ;;  %v10977_v31 = vld [vmem:[%s17922_s0 + $0x332] sm:$0xff] }
 0x127   :  { %12645 = vmatprep.mubr.msk.f32.mxu1 %vm164_vm1, %v10925_v35  ;;  %v11045_v35 = vld [vmem:[%s17922_s0 + $0x30] sm:$0xff] }
 0x128   :  { %12958 = vmatmul.mubr.msk.f32.gmra.mrb[24].mxu0 %vm164_vm1, %v10940_v32 }
 0x129   :  { %12960 = vmatprep.mubr.msk.f32.mxu0 %vm164_vm1, %v10941_v34 }
 0x12a   :  { %12646 = vmatmul.mubr.msk.f32.gmra.mrb[12].mxu1 %vm164_vm1, %v10926_v1  ;;  %v11047_v1 = vld [vmem:[%s17922_s0 + $0x48] sm:$0xff] }
 0x12b   :  { %12648 = vmatprep.mubr.msk.f32.mxu1 %vm164_vm1, %v10927_v0  ;;  %v15980_v0 = vld [vmem:[%s17923_s1 + $0x20] sm:$0xf] }
 0x12c   :  { %12961 = vmatmul.mubr.msk.f32.gmra.mrb[26].mxu0 %vm164_vm1, %v10942_v36 }
 0x12d   :  { %12963 = vmatprep.mubr.msk.f32.mxu0 %vm164_vm1, %v10943_v38 }
 0x12e   :  { %12649 = vmatmul.mubr.msk.f32.gmra.mrb[14].mxu1 %vm164_vm1, %v10928_v5  ;;  %v11048_v5 = vld [vmem:[%s17922_s0 + $0x50] sm:$0xff] }
 0x12f   :  { %12651 = vmatprep.mubr.msk.f32.mxu1 %vm164_vm1, %v10929_v7  ;;  %v11049_v7 = vld [vmem:[%s17922_s0 + $0x60] sm:$0xff] }
 0x130   :  { %12964 = vmatmul.mubr.msk.f32.gmra.mrb[28].mxu0 %vm164_vm1, %v10944_v41 }
 0x131   :  { %12966 = vmatprep.mubr.msk.f32.mxu0 %vm164_vm1, %v10945_v43  ;;  %v11066_v43 = vld [vmem:[%s17922_s0 + $0x128] sm:$0xff] }
 0x132   :  { %12652 = vmatmul.mubr.msk.f32.gmra.mrb[16].mxu1 %vm164_vm1, %v10930_v9  ;;  %v11052_v9 = vld [vmem:[%s17922_s0 + $0x80] sm:$0xff] }
 0x133   :  { %12654 = vmatprep.mubr.msk.f32.mxu1 %vm164_vm1, %v10931_v11  ;;  %v11054_v11 = vld [vmem:[%s17922_s0 + $0x98] sm:$0xff] }
 0x134   :  { %12967 = vmatmul.mubr.msk.f32.gmra.mrb[30].mxu0 %vm164_vm1, %v10946_v44  ;;  %v11067_v44 = vld [vmem:[%s17922_s0 + $0x138] sm:$0xff] }
 0x135   :  { %12969 = vmatprep.mubr.msk.f32.mxu0 %vm164_vm1, %v10947_v42 }
 0x136   :  { %12655 = vmatmul.mubr.msk.f32.gmra.mrb[18].mxu1 %vm164_vm1, %v10932_v14  ;;  %v11055_v14 = vld [vmem:[%s17922_s0 + $0xa8] sm:$0xff] }
 0x137   :  { %12657 = vmatprep.mubr.msk.f32.mxu1 %vm164_vm1, %v10933_v17  ;;  %v11056_v17 = vld [vmem:[%s17922_s0 + $0xb0] sm:$0xff] }
 0x138   :  { %12970 = vmatmul.mubr.msk.f32.gmra.mrb[32].mxu0 %vm164_vm1, %v10948_v40 }
 0x139   :  { %12972 = vmatprep.mubr.msk.f32.mxu0 %vm164_vm1, %v10949_v45 }
 0x13a   :  { %12658 = vmatmul.mubr.msk.f32.gmra.mrb[20].mxu1 %vm164_vm1, %v10934_v19  ;;  %v11057_v19 = vld [vmem:[%s17922_s0 + $0xc0] sm:$0xff] }
 0x13b   :  { %12660 = vmatprep.mubr.msk.f32.mxu1 %vm164_vm1, %v10935_v21  ;;  %v11058_v21 = vld [vmem:[%s17922_s0 + $0xc8] sm:$0xff] }
 0x13c   :  { %12973 = vmatmul.mubr.msk.f32.gmra.mrb[34].mxu0 %vm164_vm1, %v10950_v47 }
 0x13d   :  { %12975 = vmatprep.mubr.msk.f32.mxu0 %vm164_vm1, %v10951_v48 }
 0x13e   :  { %12661 = vmatmul.mubr.msk.f32.gmra.mrb[22].mxu1 %vm164_vm1, %v10936_v23  ;;  %v11059_v23 = vld [vmem:[%s17922_s0 + $0xd8] sm:$0xff] }
 0x13f   :  { %12663 = vmatprep.mubr.msk.f32.mxu1 %vm164_vm1, %v10937_v26  ;;  %v11060_v26 = vld [vmem:[%s17922_s0 + $0xe0] sm:$0xff] }
 0x140   :  { %12976 = vmatmul.mubr.msk.f32.gmra.mrb[36].mxu0 %vm164_vm1, %v10952_v49 }
 0x141   :  { %12978 = vmatprep.mubr.msk.f32.mxu0 %vm164_vm1, %v10953_v50 }
 0x142   :  { %12664 = vmatmul.mubr.msk.f32.gmra.mrb[24].mxu1 %vm164_vm1, %v10938_v28  ;;  %v11061_v28 = vld [vmem:[%s17922_s0 + $0xf0] sm:$0xff] }
 0x143   :  { %12666 = vmatprep.mubr.msk.f32.mxu1 %vm164_vm1, %v10939_v30  ;;  %v11062_v30 = vld [vmem:[%s17922_s0 + $0xf8] sm:$0xff] }
 0x144   :  { %12979 = vmatmul.mubr.msk.f32.gmra.mrb[38].mxu0 %vm164_vm1, %v10954_v51 }
 0x145   :  { %12981 = vmatprep.mubr.msk.f32.mxu0 %vm164_vm1, %v10955_v53 }
 0x146   :  { %12667 = vmatmul.mubr.msk.f32.gmra.mrb[26].mxu1 %vm164_vm1, %v10940_v32  ;;  %v11063_v32 = vld [vmem:[%s17922_s0 + $0x108] sm:$0xff] }
 0x147   :  { %12669 = vmatprep.mubr.msk.f32.mxu1 %vm164_vm1, %v10941_v34  ;;  %v16070_v34 = vld [vmem:[%s17922_s0 + $0x330] sm:$0xff] }
 0x148   :  { %12982 = vmatmul.mubr.msk.f32.gmra.mrb[40].mxu0 %vm164_vm1, %v10956_v54 }
 0x149   :  { %12984 = vmatprep.mubr.msk.f32.mxu0 %vm164_vm1, %v10957_v55 }
 0x14a   :  { %12670 = vmatmul.mubr.msk.f32.gmra.mrb[28].mxu1 %vm164_vm1, %v10942_v36  ;;  %v11064_v36 = vld [vmem:[%s17922_s0 + $0x110] sm:$0xff] }
 0x14b   :  { %12672 = vmatprep.mubr.msk.f32.mxu1 %vm164_vm1, %v10943_v38  ;;  %v16084_v38 = vld [vmem:[%s17922_s0 + $0x338] sm:$0xff] }
 0x14c   :  { %12985 = vmatmul.mubr.msk.f32.gmra.mrb[42].mxu0 %vm164_vm1, %v10958_v57 }
 0x14d   :  { %12987 = vmatprep.mubr.msk.f32.mxu0 %vm164_vm1, %v10959_v59 }
 0x14e   :  { %12673 = vmatmul.mubr.msk.f32.gmra.mrb[30].mxu1 %vm164_vm1, %v10944_v41  ;;  %v11065_v41 = vld [vmem:[%s17922_s0 + $0x120] sm:$0xff] }
 0x14f   :  { %12675 = vmatprep.mubr.msk.f32.mxu1 %vm164_vm1, %v1358_v62  ;;  %v11083_v62 = vld [vmem:[%s17922_s0 + $0x228] sm:$0xff] }
 0x150   :  { %12988 = vmatmul.mubr.msk.f32.gmra.mrb[44].mxu0 %vm164_vm1, %v10960_v60 }
 0x151   :  { %12990 = vmatprep.mubr.msk.f32.mxu0 %vm164_vm1, %v10961_v61 }
 0x152   :  { %12676 = vmatmul.mubr.msk.f32.gmra.mrb[32].mxu1 %vm164_vm1, %v1359_v3  ;;  %v11085_v3 = vld [vmem:[%s17922_s0 + $0x240] sm:$0xff] }
 0x153   :  { %12678 = vmatprep.mubr.msk.f32.mxu1 %vm164_vm1, %v10947_v42  ;;  %v11068_v42 = vld [vmem:[%s17922_s0 + $0x140] sm:$0xff] }
 0x154   :  { %12991 = vmatmul.mubr.msk.f32.gmra.mrb[46].mxu0 %vm164_vm1, %v10962_v63 }
 0x155   :  { %12993 = vmatprep.mubr.msk.f32.mxu0 %vm164_vm1, %v10963_v12 }
 0x156   :  { %12679 = vmatmul.mubr.msk.f32.gmra.mrb[34].mxu1 %vm164_vm1, %v10948_v40  ;;  %v11069_v40 = vld [vmem:[%s17922_s0 + $0x150] sm:$0xff] }
 0x157   :  { %12681 = vmatprep.mubr.msk.f32.mxu1 %vm164_vm1, %v10949_v45  ;;  %v11070_v45 = vld [vmem:[%s17922_s0 + $0x158] sm:$0xff] }
 0x158   :  { %12994 = vmatmul.mubr.msk.f32.gmra.mrb[48].mxu0 %vm164_vm1, %v10964_v15 }
 0x159   :  { %12996 = vmatprep.mubr.msk.f32.mxu0 %vm164_vm1, %v10965_v58 }
 0x15a   :  { %12682 = vmatmul.mubr.msk.f32.gmra.mrb[36].mxu1 %vm164_vm1, %v10950_v47  ;;  %v11071_v47 = vld [vmem:[%s17922_s0 + $0x168] sm:$0xff] }
 0x15b   :  { %12684 = vmatprep.mubr.msk.f32.mxu1 %vm164_vm1, %v10951_v48  ;;  %v11072_v48 = vld [vmem:[%s17922_s0 + $0x170] sm:$0xff] }
 0x15c   :  { %12997 = vmatmul.mubr.msk.f32.gmra.mrb[50].mxu0 %vm164_vm1, %v10966_v13 }
 0x15d   :  { %12999 = vmatprep.mubr.msk.f32.mxu0 %vm164_vm1, %v10967_v52 }
 0x15e   :  { %12685 = vmatmul.mubr.msk.f32.gmra.mrb[38].mxu1 %vm164_vm1, %v10952_v49  ;;  %v11073_v49 = vld [vmem:[%s17922_s0 + $0x180] sm:$0xff] }
 0x15f   :  { %12687 = vmatprep.mubr.msk.f32.mxu1 %vm164_vm1, %v10953_v50  ;;  %v11074_v50 = vld [vmem:[%s17922_s0 + $0x188] sm:$0xff] }
 0x160   :  { %13000 = vmatmul.mubr.msk.f32.gmra.mrb[52].mxu0 %vm164_vm1, %v10968_v46 }
 0x161   :  { %13002 = vmatprep.mubr.msk.f32.mxu0 %vm164_vm1, %v10969_v16 }
 0x162   :  { %12688 = vmatmul.mubr.msk.f32.gmra.mrb[40].mxu1 %vm164_vm1, %v10954_v51  ;;  %v11075_v51 = vld [vmem:[%s17922_s0 + $0x198] sm:$0xff] }
 0x163   :  { %12690 = vmatprep.mubr.msk.f32.mxu1 %vm164_vm1, %v10955_v53  ;;  %v11076_v53 = vld [vmem:[%s17922_s0 + $0x1a0] sm:$0xff] }
 0x164   :  { %13003 = vmatmul.mubr.msk.f32.gmra.mrb[54].mxu0 %vm164_vm1, %v10970_v18 }
 0x165   :  { %13005 = vmatprep.mubr.msk.f32.mxu0 %vm164_vm1, %v10971_v20 }
 0x166   :  { %12691 = vmatmul.mubr.msk.f32.gmra.mrb[42].mxu1 %vm164_vm1, %v10956_v54  ;;  %v11077_v54 = vld [vmem:[%s17922_s0 + $0x1e0] sm:$0xff] }
 0x167   :  { %12693 = vmatprep.mubr.msk.f32.mxu1 %vm164_vm1, %v10957_v55  ;;  %v11078_v55 = vld [vmem:[%s17922_s0 + $0x1e8] sm:$0xff] }
 0x168   :  { %13006 = vmatmul.mubr.msk.f32.gmra.mrb[56].mxu0 %vm164_vm1, %v10972_v25 }
 0x169   :  { %13008 = vmatprep.mubr.msk.f32.mxu0 %vm164_vm1, %v10973_v22 }
 0x16a   :  { %12694 = vmatmul.mubr.msk.f32.gmra.mrb[44].mxu1 %vm164_vm1, %v10958_v57  ;;  %v11079_v57 = vld [vmem:[%s17922_s0 + $0x1f8] sm:$0xff] }
 0x16b   :  { %12696 = vmatprep.mubr.msk.f32.mxu1 %vm164_vm1, %v10959_v59  ;;  %v11080_v59 = vld [vmem:[%s17922_s0 + $0x200] sm:$0xff] }
 0x16c   :  { %13009 = vmatmul.mubr.msk.f32.gmra.mrb[58].mxu0 %vm164_vm1, %v10974_v24 }
 0x16d   :  { %13011 = vmatprep.mubr.msk.f32.mxu0 %vm164_vm1, %v10975_v27 }
 0x16e   :  { %12697 = vmatmul.mubr.msk.f32.gmra.mrb[46].mxu1 %vm164_vm1, %v10960_v60  ;;  %v11081_v60 = vld [vmem:[%s17922_s0 + $0x210] sm:$0xff] }
 0x16f   :  { %12699 = vmatprep.mubr.msk.f32.mxu1 %vm164_vm1, %v10961_v61  ;;  %v11082_v61 = vld [vmem:[%s17922_s0 + $0x218] sm:$0xff] }
 0x170   :  { %13012 = vmatmul.mubr.msk.f32.gmra.mrb[60].mxu0 %vm164_vm1, %v10976_v29 }
 0x171   :  { %13014 = vmatprep.mubr.msk.f32.mxu0 %vm164_vm1, %v10977_v31  ;;  %v11100_v31 = vld [vmem:[%s17922_s0 + $0x2f0] sm:$0xff] }
 0x172   :  { %12700 = vmatmul.mubr.msk.f32.gmra.mrb[48].mxu1 %vm164_vm1, %v10962_v63  ;;  %v11084_v63 = vld [vmem:[%s17922_s0 + $0x230] sm:$0xff] }
 0x173   :  { %12702 = vmatprep.mubr.msk.f32.mxu1 %vm164_vm1, %v10963_v12  ;;  %v11086_v12 = vld [vmem:[%s17922_s0 + $0x248] sm:$0xff] }
 0x174   :  { %13015 = vmatmul.mubr.msk.f32.gmra.mrb[62].mxu0 %vm164_vm1, %v10978_v33 }
 0x175   :  { %13019 = vmatprep.mubr.msk.f32.mxu0 %vm164_vm1, %v11045_v35 }
 0x176   :  { %12703 = vmatmul.mubr.msk.f32.gmra.mrb[50].mxu1 %vm164_vm1, %v10964_v15  ;;  %v11087_v15 = vld [vmem:[%s17922_s0 + $0x258] sm:$0xff] }
 0x177   :  { %12705 = vmatprep.mubr.msk.f32.mxu1 %vm164_vm1, %v10965_v58  ;;  %v11088_v58 = vld [vmem:[%s17922_s0 + $0x260] sm:$0xff] }
 0x178   :  { %13020 = vmatmul.mubr.msk.f32.vlgmr.msra.gmra.mrb[0].mxu0 %vm164_vm1, %v11046_v39 }
 0x179   :  { %13116 = vmatpush3.msk.msra.mxu0 %vm357_vm0, %v15603_v56  ;;  %13022 = vmatprep.mubr.msk.f32.mxu0 %vm164_vm1, %v11047_v1  ;;  %v11050_v56 = vld [vmem:[%s17922_s0 + $0x68] sm:$0xff] }
 0x17a   :  { %13213 = vmatprep.subr.msk.mxu0 %vm357_vm0, %v15980_v0  ;;  %12706 = vmatmul.mubr.msk.f32.gmra.mrb[52].mxu1 %vm164_vm1, %v10966_v13  ;;  %v11089_v13 = vld [vmem:[%s17922_s0 + $0x270] sm:$0xff] }
 0x17b   :  { %12708 = vmatprep.mubr.msk.f32.mxu1 %vm164_vm1, %v10967_v52  ;;  %v11090_v52 = vld [vmem:[%s17922_s0 + $0x278] sm:$0xff] }
 0x17c   :  { %13023 = vmatmul.mubr.msk.f32.gmra.mrb[2].mxu0 %vm164_vm1, %v11048_v5  ;;  %v11175_v5 = vld [vmem:[%s17922_s0 + $0x31] sm:$0xff] }
 0x17d   :  { %13025 = vmatprep.mubr.msk.f32.mxu0 %vm164_vm1, %v11049_v7 }
 0x17e   :  { %12709 = vmatmul.mubr.msk.f32.gmra.mrb[54].mxu1 %vm164_vm1, %v10968_v46  ;;  %v11091_v46 = vld [vmem:[%s17922_s0 + $0x288] sm:$0xff] }
 0x17f   :  { %12711 = vmatprep.mubr.msk.f32.mxu1 %vm164_vm1, %v10969_v16  ;;  %v11092_v16 = vld [vmem:[%s17922_s0 + $0x290] sm:$0xff] }
 0x180   :  { %13026 = vmatmul.mubr.msk.f32.gmra.mrb[4].mxu0 %vm164_vm1, %v11050_v56 }
 0x181   :  { %13028 = vmatprep.mubr.msk.f32.mxu0 %vm164_vm1, %v11051_v8  ;;  %v11176_v8 = vld [vmem:[%s17922_s0 + $0x39] sm:$0xff] }
 0x182   :  { %12712 = vmatmul.mubr.msk.f32.gmra.mrb[56].mxu1 %vm164_vm1, %v10970_v18  ;;  %v11093_v18 = vld [vmem:[%s17922_s0 + $0x2a0] sm:$0xff] }
 0x183   :  { %12714 = vmatprep.mubr.msk.f32.mxu1 %vm164_vm1, %v10971_v20  ;;  %v11094_v20 = vld [vmem:[%s17922_s0 + $0x2a8] sm:$0xff] }
 0x184   :  { %13029 = vmatmul.mubr.msk.f32.gmra.mrb[6].mxu0 %vm164_vm1, %v11052_v9  ;;  %v11177_v9 = vld [vmem:[%s17922_s0 + $0x49] sm:$0xff] }
 0x185   :  { %13031 = vmatprep.mubr.msk.f32.mxu0 %vm164_vm1, %v11053_v10 }
 0x186   :  { %12715 = vmatmul.mubr.msk.f32.gmra.mrb[58].mxu1 %vm164_vm1, %v10972_v25  ;;  %v11095_v25 = vld [vmem:[%s17922_s0 + $0x2b8] sm:$0xff] }
 0x187   :  { %12717 = vmatprep.mubr.msk.f32.mxu1 %vm164_vm1, %v10973_v22  ;;  %v11096_v22 = vld [vmem:[%s17922_s0 + $0x2c0] sm:$0xff] }
 0x188   :  { %13032 = vmatmul.mubr.msk.f32.gmra.mrb[8].mxu0 %vm164_vm1, %v11054_v11 }
 0x189   :  { %13034 = vmatprep.mubr.msk.f32.mxu0 %vm164_vm1, %v11055_v14  ;;  %v11178_v14 = vld [vmem:[%s17922_s0 + $0x51] sm:$0xff] }
 0x18a   :  { %12718 = vmatmul.mubr.msk.f32.gmra.mrb[60].mxu1 %vm164_vm1, %v10974_v24  ;;  %v11097_v24 = vld [vmem:[%s17922_s0 + $0x2d0] sm:$0xff] }
 0x18b   :  { %12720 = vmatprep.mubr.msk.f32.mxu1 %vm164_vm1, %v10975_v27  ;;  %v11098_v27 = vld [vmem:[%s17922_s0 + $0x2d8] sm:$0xff] }
 0x18c   :  { %13035 = vmatmul.mubr.msk.f32.gmra.mrb[10].mxu0 %vm164_vm1, %v11056_v17  ;;  %v11179_v17 = vld [vmem:[%s17922_s0 + $0x61] sm:$0xff] }
 0x18d   :  { %13037 = vmatprep.mubr.msk.f32.mxu0 %vm164_vm1, %v11057_v19 }
 0x18e   :  { %12721 = vmatmul.mubr.msk.f32.gmra.mrb[62].mxu1 %vm164_vm1, %v10976_v29  ;;  %v11099_v29 = vld [vmem:[%s17922_s0 + $0x2e8] sm:$0xff] }
 0x18f   :  { %12812 = vmatprep.mubr.msk.f32.mxu1 %vm164_vm1, %v15658_v37 }
 0x190   :  { %13038 = vmatmul.mubr.msk.f32.gmra.mrb[12].mxu0 %vm164_vm1, %v11058_v21 }
 0x191   :  { %13040 = vmatprep.mubr.msk.f32.mxu0 %vm164_vm1, %v11059_v23  ;;  %v11181_v23 = vld [vmem:[%s17922_s0 + $0x79] sm:$0xff] }
 0x192   :  { %12813 = vmatmul.mubr.msk.f32.vlgmr.msra.gmra.mrb[58].mxu1 %vm164_vm1, %v15672_v2 }
 0x193   :  { %12815 = vmatprep.mubr.msk.f32.mxu1 %vm164_vm1, %v15680_v4 }
 0x194   :  { %13041 = vmatmul.mubr.msk.f32.gmra.mrb[14].mxu0 %vm164_vm1, %v11060_v26 }
 0x195   :  { %13043 = vmatprep.mubr.msk.f32.mxu0 %vm164_vm1, %v11061_v28 }
 0x196   :  { %12816 = vmatmul.mubr.msk.f32.gmra.mrb[60].mxu1 %vm164_vm1, %v15694_v6 }
 0x197   :  { %12818 = vmatprep.mubr.msk.f32.mxu1 %vm164_vm1, %v16070_v34 }
 0x198   :  { %13044 = vmatmul.mubr.msk.f32.gmra.mrb[16].mxu0 %vm164_vm1, %v11062_v30  ;;  %v11182_v30 = vld [vmem:[%s17922_s0 + $0x81] sm:$0xff] }
 0x199   :  { %13046 = vmatprep.mubr.msk.f32.mxu0 %vm164_vm1, %v11063_v32  ;;  %v11183_v32 = vld [vmem:[%s17922_s0 + $0x91] sm:$0xff] }
 0x19a   :  { %12819 = vmatmul.mubr.msk.f32.gmra.mrb[62].mxu1 %vm164_vm1, %v16084_v38 }
 0x19c   :  { %13047 = vmatmul.mubr.msk.f32.gmra.mrb[18].mxu0 %vm164_vm1, %v11064_v36 }
 0x19d   :  { %13049 = vmatprep.mubr.msk.f32.mxu0 %vm164_vm1, %v11065_v41  ;;  %v11185_v41 = vld [vmem:[%s17922_s0 + $0xa9] sm:$0xff] }
 0x1a0   :  { %13050 = vmatmul.mubr.msk.f32.gmra.mrb[20].mxu0 %vm164_vm1, %v11066_v43 }
 0x1a1   :  { %13052 = vmatprep.mubr.msk.f32.mxu0 %vm164_vm1, %v11067_v44 }
 0x1a4   :  { %13053 = vmatmul.mubr.msk.f32.gmra.mrb[22].mxu0 %vm164_vm1, %v11068_v42  ;;  %v11186_v42 = vld [vmem:[%s17922_s0 + $0xb1] sm:$0xff] }
 0x1a5   :  { %13055 = vmatprep.mubr.msk.f32.mxu0 %vm164_vm1, %v11069_v40  ;;  %v11187_v40 = vld [vmem:[%s17922_s0 + $0xc1] sm:$0xff] }
 0x1a8   :  { %13056 = vmatmul.mubr.msk.f32.gmra.mrb[24].mxu0 %vm164_vm1, %v11070_v45 }
 0x1a9   :  { %13058 = vmatprep.mubr.msk.f32.mxu0 %vm164_vm1, %v11071_v47 }
 0x1ac   :  { %13059 = vmatmul.mubr.msk.f32.gmra.mrb[26].mxu0 %vm164_vm1, %v11072_v48  ;;  %v11188_v48 = vld [vmem:[%s17922_s0 + $0xc9] sm:$0xff] }
 0x1ad   :  { %13061 = vmatprep.mubr.msk.f32.mxu0 %vm164_vm1, %v11073_v49  ;;  %v11189_v49 = vld [vmem:[%s17922_s0 + $0xd9] sm:$0xff] }
 0x1b0   :  { %13062 = vmatmul.mubr.msk.f32.gmra.mrb[28].mxu0 %vm164_vm1, %v11074_v50 }
 0x1b1   :  { %13064 = vmatprep.mubr.msk.f32.mxu0 %vm164_vm1, %v11075_v51 }
 0x1b4   :  { %13065 = vmatmul.mubr.msk.f32.gmra.mrb[30].mxu0 %vm164_vm1, %v11076_v53  ;;  %v11190_v53 = vld [vmem:[%s17922_s0 + $0xe1] sm:$0xff] }
 0x1b5   :  { %13067 = vmatprep.mubr.msk.f32.mxu0 %vm164_vm1, %v11077_v54  ;;  %v11191_v54 = vld [vmem:[%s17922_s0 + $0xf1] sm:$0xff] }
 0x1b8   :  { %13068 = vmatmul.mubr.msk.f32.gmra.mrb[32].mxu0 %vm164_vm1, %v11078_v55 }
 0x1b9   :  { %13070 = vmatprep.mubr.msk.f32.mxu0 %vm164_vm1, %v11079_v57 }
 0x1bc   :  { %13071 = vmatmul.mubr.msk.f32.gmra.mrb[34].mxu0 %vm164_vm1, %v11080_v59  ;;  %v11192_v59 = vld [vmem:[%s17922_s0 + $0xf9] sm:$0xff] }
 0x1bd   :  { %13073 = vmatprep.mubr.msk.f32.mxu0 %vm164_vm1, %v11081_v60  ;;  %v11193_v60 = vld [vmem:[%s17922_s0 + $0x109] sm:$0xff] }
 0x1c0   :  { %13074 = vmatmul.mubr.msk.f32.gmra.mrb[36].mxu0 %vm164_vm1, %v11082_v61 }
 0x1c1   :  { %13076 = vmatprep.mubr.msk.f32.mxu0 %vm164_vm1, %v11083_v62 }
 0x1c4   :  { %13077 = vmatmul.mubr.msk.f32.gmra.mrb[38].mxu0 %vm164_vm1, %v11084_v63  ;;  %v11194_v63 = vld [vmem:[%s17922_s0 + $0x111] sm:$0xff] }
 0x1c5   :  { %13079 = vmatprep.mubr.msk.f32.mxu0 %vm164_vm1, %v11085_v3  ;;  %v11195_v3 = vld [vmem:[%s17922_s0 + $0x121] sm:$0xff] }
 0x1c8   :  { %13080 = vmatmul.mubr.msk.f32.gmra.mrb[40].mxu0 %vm164_vm1, %v11086_v12 }
 0x1c9   :  { %13082 = vmatprep.mubr.msk.f32.mxu0 %vm164_vm1, %v11087_v15 }
 0x1cc   :  { %13083 = vmatmul.mubr.msk.f32.gmra.mrb[42].mxu0 %vm164_vm1, %v11088_v58  ;;  %v11196_v58 = vld [vmem:[%s17922_s0 + $0x129] sm:$0xff] }
 0x1cd   :  { %13085 = vmatprep.mubr.msk.f32.mxu0 %vm164_vm1, %v11089_v13  ;;  %v11197_v13 = vld [vmem:[%s17922_s0 + $0x139] sm:$0xff] }
 0x1d0   :  { %13086 = vmatmul.mubr.msk.f32.gmra.mrb[44].mxu0 %vm164_vm1, %v11090_v52 }
 0x1d1   :  { %13088 = vmatprep.mubr.msk.f32.mxu0 %vm164_vm1, %v11091_v46 }
 0x1d4   :  { %13089 = vmatmul.mubr.msk.f32.gmra.mrb[46].mxu0 %vm164_vm1, %v11092_v16  ;;  %v11198_v16 = vld [vmem:[%s17922_s0 + $0x141] sm:$0xff] }
 0x1d5   :  { %13091 = vmatprep.mubr.msk.f32.mxu0 %vm164_vm1, %v11093_v18  ;;  %v11199_v18 = vld [vmem:[%s17922_s0 + $0x151] sm:$0xff] }
 0x1d8   :  { %13092 = vmatmul.mubr.msk.f32.gmra.mrb[48].mxu0 %vm164_vm1, %v11094_v20 }
 0x1d9   :  { %13094 = vmatprep.mubr.msk.f32.mxu0 %vm164_vm1, %v11095_v25 }
 0x1dc   :  { %13095 = vmatmul.mubr.msk.f32.gmra.mrb[50].mxu0 %vm164_vm1, %v11096_v22  ;;  %v11200_v22 = vld [vmem:[%s17922_s0 + $0x159] sm:$0xff] }
 0x1dd   :  { %13097 = vmatprep.mubr.msk.f32.mxu0 %vm164_vm1, %v11097_v24  ;;  %v11201_v24 = vld [vmem:[%s17922_s0 + $0x169] sm:$0xff] }
 0x1e0   :  { %13098 = vmatmul.mubr.msk.f32.gmra.mrb[52].mxu0 %vm164_vm1, %v11098_v27 }
 0x1e1   :  { %13100 = vmatprep.mubr.msk.f32.mxu0 %vm164_vm1, %v11099_v29 }
 0x1e4   :  { %13101 = vmatmul.mubr.msk.f32.gmra.mrb[54].mxu0 %vm164_vm1, %v11100_v31  ;;  %v11202_v31 = vld [vmem:[%s17922_s0 + $0x171] sm:$0xff] }
 0x1e5   :  { %13103 = vmatprep.mubr.msk.f32.mxu0 %vm164_vm1, %v15658_v37  ;;  %v16235_v33 = vpop.f32.mrb[0].mxu1  ;;  %v11107_v37 = vld [vmem:[%s17922_s0 + $0x348] sm:$0xff] }
 0x1e6   :  { %v16239_v35 = vpop.f32.mrb[1].mxu1 }
 0x1e8   :  { %13104 = vmatmul.mubr.msk.f32.gmra.mrb[56].mxu0 %vm164_vm1, %v15672_v2 }
 0x1e9   :  { %13106 = vmatprep.mubr.msk.f32.mxu0 %vm164_vm1, %v15680_v4  ;;  %v16243_v39 = vpop.f32.mrb[2].mxu1 }
 0x1ea   :  { %v16247_v1 = vpop.f32.mrb[3].mxu1 }
 0x1ec   :  { %13107 = vmatmul.mubr.msk.f32.gmra.mrb[58].mxu0 %vm164_vm1, %v15694_v6  ;;  %v11108_v6 = vld [vmem:[%s17922_s0 + $0x350] sm:$0xff] }
 0x1ed   :  { %13109 = vmatprep.mubr.msk.f32.mxu0 %vm164_vm1, %v16070_v34  ;;  %v16254_v2 = vpop.f32.mrb[4].mxu1 }
 0x1ee   :  { %v16258_v4 = vpop.f32.mrb[5].mxu1 }
 0x1f0   :  { %13110 = vmatmul.mubr.msk.f32.gmra.mrb[60].mxu0 %vm164_vm1, %v16084_v38  ;;  %v11184_v38 = vld [vmem:[%s17922_s0 + $0x99] sm:$0xff] }
 0x1f1   :  { %13112 = vmatprep.mubr.msk.f32.mxu0 %vm164_vm1, %v11107_v37  ;;  %v16267_v7 = vpop.f32.mrb[6].mxu1  ;;  %v11203_v37 = vld [vmem:[%s17922_s0 + $0x181] sm:$0xff] }
 0x1f2   :  { %v16270_v56 = vpop.f32.mrb[7].mxu1 }
 0x1f4   :  { %13113 = vmatmul.mubr.msk.f32.gmra.mrb[62].mxu0 %vm164_vm1, %v11108_v6 }
 0x1f5   :  { %13117 = vmatprep.mubr.msk.f32.mxu0 %vm164_vm1, %v11175_v5  ;;  %v16279_v10 = vpop.f32.mrb[8].mxu1 }
 0x1f6   :  { %v16282_v11 = vpop.f32.mrb[9].mxu1 }
 0x1f8   :  { %13118 = vmatmul.mubr.msk.f32.vlgmr.msra.gmra.mrb[0].mxu0 %vm164_vm1, %v11176_v8  ;;  %v11204_v8 = vld [vmem:[%s17922_s0 + $0x189] sm:$0xff] }
 0x1f9   :  { %13214 = vmatpush3.msk.msra.mxu0 %vm357_vm0, %v15980_v0  ;;  %13120 = vmatprep.mubr.msk.f32.mxu0 %vm164_vm1, %v11177_v9  ;;  %v16293_v19 = vpop.f32.mrb[10].mxu1  ;;  %v11180_v0 = vld [vmem:[%s17922_s0 + $0x69] sm:$0xff]  ;;  %v11205_v9 = vld [vmem:[%s17922_s0 + $0x199] sm:$0xff] }
 0x1fa   :  { %v16296_v21 = vpop.f32.mrb[11].mxu1 }
 0x1fc   :  { %13121 = vmatmul.mubr.msk.f32.gmra.mrb[2].mxu0 %vm164_vm1, %v11178_v14 }
 0x1fd   :  { %13123 = vmatprep.mubr.msk.f32.mxu0 %vm164_vm1, %v11179_v17  ;;  %v16305_v26 = vpop.f32.mrb[12].mxu1 }
 0x1fe   :  { %v16308_v28 = vpop.f32.mrb[13].mxu1 }
 0x200   :  { %13124 = vmatmul.mubr.msk.f32.gmra.mrb[4].mxu0 %vm164_vm1, %v11180_v0  ;;  %v11206_v0 = vld [vmem:[%s17922_s0 + $0x1a1] sm:$0xff] }
 0x201   :  { %13126 = vmatprep.mubr.msk.f32.mxu0 %vm164_vm1, %v11181_v23  ;;  %v16317_v34 = vpop.f32.mrb[14].mxu1  ;;  %v11207_v23 = vld [vmem:[%s17922_s0 + $0x1e1] sm:$0xff] }
 0x202   :  { %v16320_v36 = vpop.f32.mrb[15].mxu1 }
 0x204   :  { %13127 = vmatmul.mubr.msk.f32.gmra.mrb[6].mxu0 %vm164_vm1, %v11182_v30 }
 0x205   :  { %13129 = vmatprep.mubr.msk.f32.mxu0 %vm164_vm1, %v11183_v32  ;;  %v16329_v43 = vpop.f32.mrb[16].mxu1 }
 0x206   :  { %v16332_v44 = vpop.f32.mrb[17].mxu1 }
 0x208   :  { %13130 = vmatmul.mubr.msk.f32.gmra.mrb[8].mxu0 %vm164_vm1, %v11184_v38  ;;  %v11208_v38 = vld [vmem:[%s17922_s0 + $0x1e9] sm:$0xff] }
 0x209   :  { %13132 = vmatprep.mubr.msk.f32.mxu0 %vm164_vm1, %v11185_v41  ;;  %v16341_v45 = vpop.f32.mrb[18].mxu1  ;;  %v11209_v41 = vld [vmem:[%s17922_s0 + $0x1f9] sm:$0xff] }
 0x20a   :  { %v16344_v47 = vpop.f32.mrb[19].mxu1 }
 0x20c   :  { %13133 = vmatmul.mubr.msk.f32.gmra.mrb[10].mxu0 %vm164_vm1, %v11186_v42 }
 0x20d   :  { %13135 = vmatprep.mubr.msk.f32.mxu0 %vm164_vm1, %v11187_v40  ;;  %v16353_v50 = vpop.f32.mrb[20].mxu1 }
 0x20e   :  { %v16356_v51 = vpop.f32.mrb[21].mxu1 }
 0x210   :  { %13136 = vmatmul.mubr.msk.f32.gmra.mrb[12].mxu0 %vm164_vm1, %v11188_v48  ;;  %v11210_v48 = vld [vmem:[%s17922_s0 + $0x201] sm:$0xff] }
 0x211   :  { %13138 = vmatprep.mubr.msk.f32.mxu0 %vm164_vm1, %v11189_v49  ;;  %v16365_v55 = vpop.f32.mrb[22].mxu1  ;;  %v11211_v49 = vld [vmem:[%s17922_s0 + $0x211] sm:$0xff] }
 0x212   :  { %v16368_v57 = vpop.f32.mrb[23].mxu1 }
 0x214   :  { %13139 = vmatmul.mubr.msk.f32.gmra.mrb[14].mxu0 %vm164_vm1, %v11190_v53 }
 0x215   :  { %13141 = vmatprep.mubr.msk.f32.mxu0 %vm164_vm1, %v11191_v54  ;;  %v16377_v61 = vpop.f32.mrb[24].mxu1 }
 0x216   :  { %v16380_v62 = vpop.f32.mrb[25].mxu1 }
 0x218   :  { %13142 = vmatmul.mubr.msk.f32.gmra.mrb[16].mxu0 %vm164_vm1, %v11192_v59  ;;  %v11212_v59 = vld [vmem:[%s17922_s0 + $0x219] sm:$0xff] }
 0x219   :  { %13144 = vmatprep.mubr.msk.f32.mxu0 %vm164_vm1, %v11193_v60  ;;  %v16389_v12 = vpop.f32.mrb[26].mxu1  ;;  %v11213_v60 = vld [vmem:[%s17922_s0 + $0x229] sm:$0xff] }
 0x21a   :  { %v16392_v15 = vpop.f32.mrb[27].mxu1 }
 0x21c   :  { %13145 = vmatmul.mubr.msk.f32.gmra.mrb[18].mxu0 %vm164_vm1, %v11194_v63 }
 0x21d   :  { %13147 = vmatprep.mubr.msk.f32.mxu0 %vm164_vm1, %v11195_v3  ;;  %v16401_v52 = vpop.f32.mrb[28].mxu1 }
 0x21e   :  { %v16404_v46 = vpop.f32.mrb[29].mxu1 }
 0x220   :  { %13148 = vmatmul.mubr.msk.f32.gmra.mrb[20].mxu0 %vm164_vm1, %v11196_v58  ;;  %v11214_v58 = vld [vmem:[%s17922_s0 + $0x231] sm:$0xff] }
 0x221   :  { %13150 = vmatprep.mubr.msk.f32.mxu0 %vm164_vm1, %v11197_v13  ;;  %v16413_v20 = vpop.f32.mrb[30].mxu1  ;;  %v11215_v13 = vld [vmem:[%s17922_s0 + $0x241] sm:$0xff] }
 0x222   :  { %v16416_v25 = vpop.f32.mrb[31].mxu1 }
 0x224   :  { %13151 = vmatmul.mubr.msk.f32.gmra.mrb[22].mxu0 %vm164_vm1, %v11198_v16 }
 0x225   :  { %13153 = vmatprep.mubr.msk.f32.mxu0 %vm164_vm1, %v11199_v18  ;;  %v16425_v27 = vpop.f32.mrb[32].mxu1 }
 0x226   :  { %v16428_v29 = vpop.f32.mrb[33].mxu1 }
 0x228   :  { %13154 = vmatmul.mubr.msk.f32.gmra.mrb[24].mxu0 %vm164_vm1, %v11200_v22  ;;  %v11216_v22 = vld [vmem:[%s17922_s0 + $0x249] sm:$0xff] }
 0x229   :  { %13156 = vmatprep.mubr.msk.f32.mxu0 %vm164_vm1, %v11201_v24  ;;  %v16437_v6 = vpop.f32.mrb[34].mxu1  ;;  %v11217_v24 = vld [vmem:[%s17922_s0 + $0x259] sm:$0xff] }
 0x22a   :  { %v16440_v5 = vpop.f32.mrb[35].mxu1 }
 0x22c   :  { %13157 = vmatmul.mubr.msk.f32.gmra.mrb[26].mxu0 %vm164_vm1, %v11202_v31 }
 0x22d   :  { %13159 = vmatprep.mubr.msk.f32.mxu0 %vm164_vm1, %v11203_v37  ;;  %v16449_v14 = vpop.f32.mrb[36].mxu1 }
 0x22e   :  { %v16452_v17 = vpop.f32.mrb[37].mxu1 }
 0x230   :  { %13160 = vmatmul.mubr.msk.f32.gmra.mrb[28].mxu0 %vm164_vm1, %v11204_v8  ;;  %v11218_v8 = vld [vmem:[%s17922_s0 + $0x261] sm:$0xff] }
 0x231   :  { %13162 = vmatprep.mubr.msk.f32.mxu0 %vm164_vm1, %v11205_v9  ;;  %v16461_v30 = vpop.f32.mrb[38].mxu1  ;;  %v11219_v9 = vld [vmem:[%s17922_s0 + $0x271] sm:$0xff] }
 0x232   :  { %v16464_v32 = vpop.f32.mrb[39].mxu1 }
 0x234   :  { %13163 = vmatmul.mubr.msk.f32.gmra.mrb[30].mxu0 %vm164_vm1, %v11206_v0 }
 0x235   :  { %13165 = vmatprep.mubr.msk.f32.mxu0 %vm164_vm1, %v11207_v23  ;;  %v16473_v42 = vpop.f32.mrb[40].mxu1 }
 0x236   :  { %v16476_v40 = vpop.f32.mrb[41].mxu1 }
 0x238   :  { %13166 = vmatmul.mubr.msk.f32.gmra.mrb[32].mxu0 %vm164_vm1, %v11208_v38  ;;  %v11220_v38 = vld [vmem:[%s17922_s0 + $0x279] sm:$0xff] }
 0x239   :  { %13168 = vmatprep.mubr.msk.f32.mxu0 %vm164_vm1, %v11209_v41  ;;  %v16485_v53 = vpop.f32.mrb[42].mxu1  ;;  %v11221_v41 = vld [vmem:[%s17922_s0 + $0x289] sm:$0xff] }
 0x23a   :  { %v16488_v54 = vpop.f32.mrb[43].mxu1 }
 0x23c   :  { %13169 = vmatmul.mubr.msk.f32.gmra.mrb[34].mxu0 %vm164_vm1, %v11210_v48 }
 0x23d   :  { %13171 = vmatprep.mubr.msk.f32.mxu0 %vm164_vm1, %v11211_v49  ;;  %v16497_v63 = vpop.f32.mrb[44].mxu1 }
 0x23e   :  { %v16500_v3 = vpop.f32.mrb[45].mxu1 }
 0x240   :  { %13172 = vmatmul.mubr.msk.f32.gmra.mrb[36].mxu0 %vm164_vm1, %v11212_v59  ;;  %v11222_v59 = vld [vmem:[%s17922_s0 + $0x291] sm:$0xff] }
 0x241   :  { %13174 = vmatprep.mubr.msk.f32.mxu0 %vm164_vm1, %v11213_v60  ;;  %v16509_v16 = vpop.f32.mrb[46].mxu1  ;;  %v11223_v60 = vld [vmem:[%s17922_s0 + $0x2a1] sm:$0xff] }
 0x242   :  { %v16512_v18 = vpop.f32.mrb[47].mxu1 }
 0x244   :  { %13175 = vmatmul.mubr.msk.f32.gmra.mrb[38].mxu0 %vm164_vm1, %v11214_v58 }
 0x245   :  { %13177 = vmatprep.mubr.msk.f32.mxu0 %vm164_vm1, %v11215_v13  ;;  %v16521_v31 = vpop.f32.mrb[48].mxu1 }
 0x246   :  { %v16524_v37 = vpop.f32.mrb[49].mxu1 }
 0x248   :  { %13178 = vmatmul.mubr.msk.f32.gmra.mrb[40].mxu0 %vm164_vm1, %v11216_v22  ;;  %v11224_v22 = vld [vmem:[%s17922_s0 + $0x2a9] sm:$0xff] }
 0x249   :  { %13180 = vmatprep.mubr.msk.f32.mxu0 %vm164_vm1, %v11217_v24  ;;  %v16533_v0 = vpop.f32.mrb[50].mxu1  ;;  %v11225_v24 = vld [vmem:[%s17922_s0 + $0x2b9] sm:$0xff] }
 0x24a   :  { %18067 = vst [vmem:[#allocation12_spill] sm:$0xff] %v16533_v0  ;;  %v16536_v23 = vpop.f32.mrb[51].mxu1 }
 0x24b   :  { %18068 = vst [vmem:[#allocation38_spill] sm:$0xff] %v16536_v23 }
 0x24c   :  { %13181 = vmatmul.mubr.msk.f32.gmra.mrb[42].mxu0 %vm164_vm1, %v11218_v8 }
 0x24d   :  { %13183 = vmatprep.mubr.msk.f32.mxu0 %vm164_vm1, %v11219_v9  ;;  %v16545_v48 = vpop.f32.mrb[52].mxu1 }
 0x24e   :  { %18069 = vst [vmem:[#allocation13_spill] sm:$0xff] %v16545_v48  ;;  %v16548_v49 = vpop.f32.mrb[53].mxu1 }
 0x24f   :  { %18070 = vst [vmem:[#allocation40_spill] sm:$0xff] %v16548_v49 }
 0x250   :  { %13184 = vmatmul.mubr.msk.f32.gmra.mrb[44].mxu0 %vm164_vm1, %v11220_v38  ;;  %v11226_v38 = vld [vmem:[%s17922_s0 + $0x2c1] sm:$0xff] }
 0x251   :  { %13186 = vmatprep.mubr.msk.f32.mxu0 %vm164_vm1, %v11221_v41  ;;  %v16557_v58 = vpop.f32.mrb[54].mxu1  ;;  %v11227_v41 = vld [vmem:[%s17922_s0 + $0x2d1] sm:$0xff] }
 0x252   :  { %18071 = vst [vmem:[#allocation14_spill] sm:$0xff] %v16557_v58  ;;  %v16560_v13 = vpop.f32.mrb[55].mxu1 }
 0x253   :  { %18072 = vst [vmem:[#allocation42_spill] sm:$0xff] %v16560_v13 }
 0x254   :  { %13187 = vmatmul.mubr.msk.f32.gmra.mrb[46].mxu0 %vm164_vm1, %v11222_v59  ;;  %v11228_v59 = vld [vmem:[%s17922_s0 + $0x2d9] sm:$0xff] }
 0x255   :  { %13189 = vmatprep.mubr.msk.f32.mxu0 %vm164_vm1, %v11223_v60  ;;  %v16569_v8 = vpop.f32.mrb[56].mxu1  ;;  %v11229_v60 = vld [vmem:[%s17922_s0 + $0x2e9] sm:$0xff] }
 0x256   :  { %18073 = vst [vmem:[#allocation15_spill] sm:$0xff] %v16569_v8  ;;  %v16572_v9 = vpop.f32.mrb[57].mxu1 }
 0x257   :  { %18074 = vst [vmem:[#allocation44_spill] sm:$0xff] %v16572_v9 }
 0x258   :  { %13190 = vmatmul.mubr.msk.f32.gmra.mrb[48].mxu0 %vm164_vm1, %v11224_v22  ;;  %v11230_v22 = vld [vmem:[%s17922_s0 + $0x2f1] sm:$0xff] }
 0x259   :  { %13192 = vmatprep.mubr.msk.f32.mxu0 %vm164_vm1, %v11225_v24  ;;  %v11231_v24 = vld [vmem:[%s17922_s0 + $0x301] sm:$0xff] }
 0x25c   :  { %13193 = vmatmul.mubr.msk.f32.gmra.mrb[50].mxu0 %vm164_vm1, %v11226_v38  ;;  %v11232_v38 = vld [vmem:[%s17922_s0 + $0x309] sm:$0xff] }
 0x25d   :  { %13195 = vmatprep.mubr.msk.f32.mxu0 %vm164_vm1, %v11227_v41  ;;  %v11233_v41 = vld [vmem:[%s17922_s0 + $0x319] sm:$0xff] }
 0x260   :  { %13196 = vmatmul.mubr.msk.f32.gmra.mrb[52].mxu0 %vm164_vm1, %v11228_v59 }
 0x261   :  { %13198 = vmatprep.mubr.msk.f32.mxu0 %vm164_vm1, %v11229_v60 }
 0x264   :  { %13199 = vmatmul.mubr.msk.f32.gmra.mrb[54].mxu0 %vm164_vm1, %v11230_v22  ;;  %v11234_v22 = vld [vmem:[%s17922_s0 + $0x321] sm:$0xff] }
 0x265   :  { %13201 = vmatprep.mubr.msk.f32.mxu0 %vm164_vm1, %v11231_v24  ;;  %v16605_v59 = vpop.f32.mrb[58].mxu1  ;;  %v11235_v24 = vld [vmem:[%s17922_s0 + $0x331] sm:$0xff] }
 0x266   :  { %18075 = vst [vmem:[#allocation16_spill] sm:$0xff] %v16605_v59  ;;  %v16608_v60 = vpop.f32.mrb[59].mxu1 }
 0x267   :  { %18076 = vst [vmem:[#allocation46_spill] sm:$0xff] %v16608_v60 }
 0x268   :  { %13202 = vmatmul.mubr.msk.f32.gmra.mrb[56].mxu0 %vm164_vm1, %v11232_v38  ;;  %v11236_v38 = vld [vmem:[%s17922_s0 + $0x339] sm:$0xff] }
 0x269   :  { %13204 = vmatprep.mubr.msk.f32.mxu0 %vm164_vm1, %v11233_v41  ;;  %v16617_v9 = vpop.f32.mrb[60].mxu1  ;;  %v11237_v41 = vld [vmem:[%s17922_s0 + $0x349] sm:$0xff] }
 0x26a   :  { %18077 = vst [vmem:[#allocation17_spill] sm:$0xff] %v16617_v9  ;;  %v16620_v8 = vpop.f32.mrb[61].mxu1 }
 0x26b   :  { %18078 = vst [vmem:[#allocation48_spill] sm:$0xff] %v16620_v8 }
 0x26c   :  { %13205 = vmatmul.mubr.msk.f32.gmra.mrb[58].mxu0 %vm164_vm1, %v11234_v22  ;;  %v11238_v22 = vld [vmem:[%s17922_s0 + $0x351] sm:$0xff] }
 0x26d   :  { %13207 = vmatprep.mubr.msk.f32.mxu0 %vm164_vm1, %v11235_v24  ;;  %v16629_v60 = vpop.f32.mrb[62].mxu1  ;;  %v11305_v24 = vld [vmem:[%s17922_s0 + $0x32] sm:$0xff] }
 0x26e   :  { %18079 = vst [vmem:[#allocation18_spill] sm:$0xff] %v16629_v60  ;;  %v16632_v59 = vpop.f32.mrb[63].mxu1 }
 0x26f   :  { %18080 = vst [vmem:[#allocation50_spill] sm:$0xff] %v16632_v59  ;;  %v11308_v59 = vld [vmem:[%s17922_s0 + $0x52] sm:$0xff] }
 0x270   :  { %13208 = vmatmul.mubr.msk.f32.gmra.mrb[60].mxu0 %vm164_vm1, %v11236_v38  ;;  %v11306_v38 = vld [vmem:[%s17922_s0 + $0x3a] sm:$0xff] }
 0x271   :  { %13210 = vmatprep.mubr.msk.f32.mxu0 %vm164_vm1, %v11237_v41  ;;  %v11307_v41 = vld [vmem:[%s17922_s0 + $0x4a] sm:$0xff] }
 0x274   :  { %13211 = vmatmul.mubr.msk.f32.gmra.mrb[62].mxu0 %vm164_vm1, %v11238_v22  ;;  %v11309_v22 = vld [vmem:[%s17922_s0 + $0x62] sm:$0xff] }
 0x275   :  { %13215 = vmatprep.mubr.msk.f32.mxu0 %vm164_vm1, %v11305_v24  ;;  %v11310_v24 = vld [vmem:[%s17922_s0 + $0x6a] sm:$0xff] }
 0x278   :  { %13216 = vmatmul.mubr.msk.f32.vlgmr.msra.gmra.mrb[0].mxu0 %vm164_vm1, %v11306_v38  ;;  %v11311_v38 = vld [vmem:[%s17922_s0 + $0x7a] sm:$0xff] }
 0x279   :  { %13218 = vmatprep.mubr.msk.f32.mxu0 %vm164_vm1, %v11307_v41  ;;  %v11312_v41 = vld [vmem:[%s17922_s0 + $0x82] sm:$0xff] }
 0x27c   :  { %13219 = vmatmul.mubr.msk.f32.gmra.mrb[2].mxu0 %vm164_vm1, %v11308_v59  ;;  %v11313_v59 = vld [vmem:[%s17922_s0 + $0x92] sm:$0xff] }
 0x27d   :  { %13221 = vmatprep.mubr.msk.f32.mxu0 %vm164_vm1, %v11309_v22  ;;  %v11314_v22 = vld [vmem:[%s17922_s0 + $0x9a] sm:$0xff] }
 0x280   :  { %13222 = vmatmul.mubr.msk.f32.gmra.mrb[4].mxu0 %vm164_vm1, %v11310_v24  ;;  %v11315_v24 = vld [vmem:[%s17922_s0 + $0xaa] sm:$0xff] }
 0x281   :  { %13224 = vmatprep.mubr.msk.f32.mxu0 %vm164_vm1, %v11311_v38  ;;  %v11316_v38 = vld [vmem:[%s17922_s0 + $0xb2] sm:$0xff] }
 0x284   :  { %13225 = vmatmul.mubr.msk.f32.gmra.mrb[6].mxu0 %vm164_vm1, %v11312_v41  ;;  %v11317_v41 = vld [vmem:[%s17922_s0 + $0xc2] sm:$0xff] }
 0x285   :  { %13227 = vmatprep.mubr.msk.f32.mxu0 %vm164_vm1, %v11313_v59  ;;  %v11318_v59 = vld [vmem:[%s17922_s0 + $0xca] sm:$0xff] }
 0x288   :  { %13228 = vmatmul.mubr.msk.f32.gmra.mrb[8].mxu0 %vm164_vm1, %v11314_v22  ;;  %v11319_v22 = vld [vmem:[%s17922_s0 + $0xda] sm:$0xff] }
 0x289   :  { %13230 = vmatprep.mubr.msk.f32.mxu0 %vm164_vm1, %v11315_v24  ;;  %v11320_v24 = vld [vmem:[%s17922_s0 + $0xe2] sm:$0xff] }
 0x28c   :  { %13231 = vmatmul.mubr.msk.f32.gmra.mrb[10].mxu0 %vm164_vm1, %v11316_v38  ;;  %v11321_v38 = vld [vmem:[%s17922_s0 + $0xf2] sm:$0xff] }
 0x28d   :  { %13233 = vmatprep.mubr.msk.f32.mxu0 %vm164_vm1, %v11317_v41  ;;  %v11322_v41 = vld [vmem:[%s17922_s0 + $0xfa] sm:$0xff] }
 0x290   :  { %13234 = vmatmul.mubr.msk.f32.gmra.mrb[12].mxu0 %vm164_vm1, %v11318_v59  ;;  %v11323_v59 = vld [vmem:[%s17922_s0 + $0x10a] sm:$0xff] }
 0x291   :  { %13236 = vmatprep.mubr.msk.f32.mxu0 %vm164_vm1, %v11319_v22  ;;  %v11324_v22 = vld [vmem:[%s17922_s0 + $0x112] sm:$0xff] }
 0x294   :  { %13237 = vmatmul.mubr.msk.f32.gmra.mrb[14].mxu0 %vm164_vm1, %v11320_v24  ;;  %v11325_v24 = vld [vmem:[%s17922_s0 + $0x122] sm:$0xff] }
 0x295   :  { %13239 = vmatprep.mubr.msk.f32.mxu0 %vm164_vm1, %v11321_v38  ;;  %v11326_v38 = vld [vmem:[%s17922_s0 + $0x12a] sm:$0xff] }
 0x298   :  { %13240 = vmatmul.mubr.msk.f32.gmra.mrb[16].mxu0 %vm164_vm1, %v11322_v41  ;;  %v11327_v41 = vld [vmem:[%s17922_s0 + $0x13a] sm:$0xff] }
 0x299   :  { %13242 = vmatprep.mubr.msk.f32.mxu0 %vm164_vm1, %v11323_v59  ;;  %v11328_v59 = vld [vmem:[%s17922_s0 + $0x142] sm:$0xff] }
 0x29c   :  { %13243 = vmatmul.mubr.msk.f32.gmra.mrb[18].mxu0 %vm164_vm1, %v11324_v22  ;;  %v11329_v22 = vld [vmem:[%s17922_s0 + $0x152] sm:$0xff] }
 0x29d   :  { %13245 = vmatprep.mubr.msk.f32.mxu0 %vm164_vm1, %v11325_v24  ;;  %v11330_v24 = vld [vmem:[%s17922_s0 + $0x15a] sm:$0xff] }
 0x2a0   :  { %13246 = vmatmul.mubr.msk.f32.gmra.mrb[20].mxu0 %vm164_vm1, %v11326_v38  ;;  %v11331_v38 = vld [vmem:[%s17922_s0 + $0x16a] sm:$0xff] }
 0x2a1   :  { %13248 = vmatprep.mubr.msk.f32.mxu0 %vm164_vm1, %v11327_v41  ;;  %v11332_v41 = vld [vmem:[%s17922_s0 + $0x172] sm:$0xff] }
 0x2a4   :  { %13249 = vmatmul.mubr.msk.f32.gmra.mrb[22].mxu0 %vm164_vm1, %v11328_v59  ;;  %v11333_v59 = vld [vmem:[%s17922_s0 + $0x182] sm:$0xff] }
 0x2a5   :  { %13251 = vmatprep.mubr.msk.f32.mxu0 %vm164_vm1, %v11329_v22  ;;  %v11334_v22 = vld [vmem:[%s17922_s0 + $0x18a] sm:$0xff] }
 0x2a8   :  { %13252 = vmatmul.mubr.msk.f32.gmra.mrb[24].mxu0 %vm164_vm1, %v11330_v24  ;;  %v11335_v24 = vld [vmem:[%s17922_s0 + $0x19a] sm:$0xff] }
 0x2a9   :  { %13254 = vmatprep.mubr.msk.f32.mxu0 %vm164_vm1, %v11331_v38  ;;  %v11336_v38 = vld [vmem:[%s17922_s0 + $0x1a2] sm:$0xff] }
 0x2ac   :  { %13255 = vmatmul.mubr.msk.f32.gmra.mrb[26].mxu0 %vm164_vm1, %v11332_v41  ;;  %v11337_v41 = vld [vmem:[%s17922_s0 + $0x1e2] sm:$0xff] }
 0x2ad   :  { %13257 = vmatprep.mubr.msk.f32.mxu0 %vm164_vm1, %v11333_v59  ;;  %v11338_v59 = vld [vmem:[%s17922_s0 + $0x1ea] sm:$0xff] }
 0x2b0   :  { %13258 = vmatmul.mubr.msk.f32.gmra.mrb[28].mxu0 %vm164_vm1, %v11334_v22  ;;  %v11339_v22 = vld [vmem:[%s17922_s0 + $0x1fa] sm:$0xff] }
 0x2b1   :  { %13260 = vmatprep.mubr.msk.f32.mxu0 %vm164_vm1, %v11335_v24  ;;  %v11340_v24 = vld [vmem:[%s17922_s0 + $0x202] sm:$0xff] }
 0x2b4   :  { %13261 = vmatmul.mubr.msk.f32.gmra.mrb[30].mxu0 %vm164_vm1, %v11336_v38  ;;  %v11341_v38 = vld [vmem:[%s17922_s0 + $0x212] sm:$0xff] }
 0x2b5   :  { %13263 = vmatprep.mubr.msk.f32.mxu0 %vm164_vm1, %v11337_v41  ;;  %v11342_v41 = vld [vmem:[%s17922_s0 + $0x21a] sm:$0xff] }
 0x2b8   :  { %13264 = vmatmul.mubr.msk.f32.gmra.mrb[32].mxu0 %vm164_vm1, %v11338_v59  ;;  %v11343_v59 = vld [vmem:[%s17922_s0 + $0x22a] sm:$0xff] }
 0x2b9   :  { %13266 = vmatprep.mubr.msk.f32.mxu0 %vm164_vm1, %v11339_v22  ;;  %v11344_v22 = vld [vmem:[%s17922_s0 + $0x232] sm:$0xff] }
 0x2bc   :  { %13267 = vmatmul.mubr.msk.f32.gmra.mrb[34].mxu0 %vm164_vm1, %v11340_v24  ;;  %v11345_v24 = vld [vmem:[%s17922_s0 + $0x242] sm:$0xff] }
 0x2bd   :  { %13269 = vmatprep.mubr.msk.f32.mxu0 %vm164_vm1, %v11341_v38  ;;  %v11346_v38 = vld [vmem:[%s17922_s0 + $0x24a] sm:$0xff] }
 0x2c0   :  { %13270 = vmatmul.mubr.msk.f32.gmra.mrb[36].mxu0 %vm164_vm1, %v11342_v41  ;;  %v11347_v41 = vld [vmem:[%s17922_s0 + $0x25a] sm:$0xff] }
 0x2c1   :  { %13272 = vmatprep.mubr.msk.f32.mxu0 %vm164_vm1, %v11343_v59  ;;  %v11348_v59 = vld [vmem:[%s17922_s0 + $0x262] sm:$0xff] }
 0x2c4   :  { %13273 = vmatmul.mubr.msk.f32.gmra.mrb[38].mxu0 %vm164_vm1, %v11344_v22  ;;  %v11349_v22 = vld [vmem:[%s17922_s0 + $0x272] sm:$0xff] }
 0x2c5   :  { %13275 = vmatprep.mubr.msk.f32.mxu0 %vm164_vm1, %v11345_v24  ;;  %v11350_v24 = vld [vmem:[%s17922_s0 + $0x27a] sm:$0xff] }
 0x2c8   :  { %13276 = vmatmul.mubr.msk.f32.gmra.mrb[40].mxu0 %vm164_vm1, %v11346_v38  ;;  %v11351_v38 = vld [vmem:[%s17922_s0 + $0x28a] sm:$0xff] }
 0x2c9   :  { %13278 = vmatprep.mubr.msk.f32.mxu0 %vm164_vm1, %v11347_v41  ;;  %v11352_v41 = vld [vmem:[%s17922_s0 + $0x292] sm:$0xff] }
 0x2cc   :  { %13279 = vmatmul.mubr.msk.f32.gmra.mrb[42].mxu0 %vm164_vm1, %v11348_v59  ;;  %v11353_v59 = vld [vmem:[%s17922_s0 + $0x2a2] sm:$0xff] }
 0x2cd   :  { %13281 = vmatprep.mubr.msk.f32.mxu0 %vm164_vm1, %v11349_v22  ;;  %v11354_v22 = vld [vmem:[%s17922_s0 + $0x2aa] sm:$0xff] }
 0x2d0   :  { %13282 = vmatmul.mubr.msk.f32.gmra.mrb[44].mxu0 %vm164_vm1, %v11350_v24  ;;  %v11355_v24 = vld [vmem:[%s17922_s0 + $0x2ba] sm:$0xff] }
 0x2d1   :  { %13284 = vmatprep.mubr.msk.f32.mxu0 %vm164_vm1, %v11351_v38  ;;  %v11356_v38 = vld [vmem:[%s17922_s0 + $0x2c2] sm:$0xff] }
 0x2d4   :  { %13285 = vmatmul.mubr.msk.f32.gmra.mrb[46].mxu0 %vm164_vm1, %v11352_v41  ;;  %v11357_v41 = vld [vmem:[%s17922_s0 + $0x2d2] sm:$0xff] }
 0x2d5   :  { %13287 = vmatprep.mubr.msk.f32.mxu0 %vm164_vm1, %v11353_v59  ;;  %v11358_v59 = vld [vmem:[%s17922_s0 + $0x2da] sm:$0xff] }
 0x2d8   :  { %13288 = vmatmul.mubr.msk.f32.gmra.mrb[48].mxu0 %vm164_vm1, %v11354_v22  ;;  %v11359_v22 = vld [vmem:[%s17922_s0 + $0x2ea] sm:$0xff] }
 0x2d9   :  { %13290 = vmatprep.mubr.msk.f32.mxu0 %vm164_vm1, %v11355_v24  ;;  %v11360_v24 = vld [vmem:[%s17922_s0 + $0x2f2] sm:$0xff] }
 0x2dc   :  { %13291 = vmatmul.mubr.msk.f32.gmra.mrb[50].mxu0 %vm164_vm1, %v11356_v38  ;;  %v11361_v38 = vld [vmem:[%s17922_s0 + $0x302] sm:$0xff] }
 0x2dd   :  { %13293 = vmatprep.mubr.msk.f32.mxu0 %vm164_vm1, %v11357_v41  ;;  %v11362_v41 = vld [vmem:[%s17922_s0 + $0x30a] sm:$0xff] }
 0x2e0   :  { %13294 = vmatmul.mubr.msk.f32.gmra.mrb[52].mxu0 %vm164_vm1, %v11358_v59  ;;  %v11363_v59 = vld [vmem:[%s17922_s0 + $0x31a] sm:$0xff] }
 0x2e1   :  { %13296 = vmatprep.mubr.msk.f32.mxu0 %vm164_vm1, %v11359_v22  ;;  %v11364_v22 = vld [vmem:[%s17922_s0 + $0x322] sm:$0xff] }
 0x2e4   :  { %13297 = vmatmul.mubr.msk.f32.gmra.mrb[54].mxu0 %vm164_vm1, %v11360_v24  ;;  %v16881_v24 = vld [vmem:[%s17922_s0 + $0x332] sm:$0xff] }
 0x2e5   :  { %13299 = vmatprep.mubr.msk.f32.mxu0 %vm164_vm1, %v11361_v38  ;;  %v17977_v38 = vmov 0.0  }
 0x2e6   :  { %6739 = vst.msk [vmem:[#allocation4 + $0x8] sm:$0xff] %vm6433_vm2, %v17977_v38  ;;  %6738 = vst.msk [vmem:[#allocation4] sm:$0xff] %vm6433_vm2, %v17977_v38 }
 0x2e7   :  { %6742 = vst.msk [vmem:[#allocation4 + $0x18] sm:$0xff] %vm6433_vm2, %v17977_v38  ;;  %6743 = vst.msk [vmem:[#allocation4 + $0x20] sm:$0xff] %vm6433_vm2, %v17977_v38 }
 0x2e8   :  { %13300 = vmatmul.mubr.msk.f32.gmra.mrb[56].mxu0 %vm164_vm1, %v11362_v41  ;;  %6745 = vst.msk [vmem:[#allocation4 + $0x30] sm:$0xff] %vm6433_vm2, %v17977_v38  ;;  %6746 = vst.msk [vmem:[#allocation4 + $0x38] sm:$0xff] %vm6433_vm2, %v17977_v38  ;;  %v11366_v41 = vld [vmem:[%s17922_s0 + $0x33a] sm:$0xff] }
 0x2e9   :  { %13302 = vmatprep.mubr.msk.f32.mxu0 %vm164_vm1, %v11363_v59  ;;  %6748 = vst.msk [vmem:[#allocation4 + $0x48] sm:$0xff] %vm6433_vm2, %v17977_v38  ;;  %6749 = vst.msk [vmem:[#allocation4 + $0x50] sm:$0xff] %vm6433_vm2, %v17977_v38  ;;  %v11367_v59 = vld [vmem:[%s17922_s0 + $0x34a] sm:$0xff] }
 0x2ea   :  { %6751 = vst.msk [vmem:[#allocation4 + $0x60] sm:$0xff] %vm6433_vm2, %v17977_v38  ;;  %6752 = vst.msk [vmem:[#allocation4 + $0x68] sm:$0xff] %vm6433_vm2, %v17977_v38 }
 0x2eb   :  { %6754 = vst.msk [vmem:[#allocation4 + $0x78] sm:$0xff] %vm6433_vm2, %v17977_v38  ;;  %6755 = vst.msk [vmem:[#allocation4 + $0x80] sm:$0xff] %vm6433_vm2, %v17977_v38 }
 0x2ec   :  { %6757 = vst.msk [vmem:[#allocation4 + $0x90] sm:$0xff] %vm6433_vm2, %v17977_v38  ;;  %6758 = vst.msk [vmem:[#allocation4 + $0x98] sm:$0xff] %vm6433_vm2, %v17977_v38  ;;  %13303 = vmatmul.mubr.msk.f32.gmra.mrb[58].mxu0 %vm164_vm1, %v11364_v22  ;;  %v11436_v22 = vld [vmem:[%s17925_s3 + $0x8] sm:$0xff] }
 0x2ed   :  { %6760 = vst.msk [vmem:[#allocation4 + $0xa8] sm:$0xff] %vm6433_vm2, %v17977_v38  ;;  %6761 = vst.msk [vmem:[#allocation4 + $0xb0] sm:$0xff] %vm6433_vm2, %v17977_v38  ;;  %13305 = vmatprep.mubr.msk.f32.mxu0 %vm164_vm1, %v16881_v24  ;;  %v11368_v24 = vld [vmem:[%s17922_s0 + $0x352] sm:$0xff]  ;;  %13311 = vmatprep.subr.mxu1 %v11436_v22 }
 0x2ee   :  { %6763 = vst.msk [vmem:[#allocation4 + $0xc0] sm:$0xff] %vm6433_vm2, %v17977_v38  ;;  %6764 = vst.msk [vmem:[#allocation4 + $0xc8] sm:$0xff] %vm6433_vm2, %v17977_v38  ;;  %13312 = vmatpush3.msra.mxu1 %v11436_v22 }
 0x2ef   :  { %6766 = vst.msk [vmem:[#allocation4 + $0xd8] sm:$0xff] %vm6433_vm2, %v17977_v38  ;;  %6767 = vst.msk [vmem:[#allocation4 + $0xe0] sm:$0xff] %vm6433_vm2, %v17977_v38 }
 0x2f0   :  { %6769 = vst.msk [vmem:[#allocation4 + $0xf0] sm:$0xff] %vm6433_vm2, %v17977_v38  ;;  %6770 = vst.msk [vmem:[#allocation4 + $0xf8] sm:$0xff] %vm6433_vm2, %v17977_v38  ;;  %13306 = vmatmul.mubr.msk.f32.gmra.mrb[60].mxu0 %vm164_vm1, %v11366_v41  ;;  %v17025_v41 = vld [vmem:[%s17924_s2] ss:$0 sm:$0xff] }
 0x2f1   :  { %6772 = vst.msk [vmem:[#allocation4 + $0x108] sm:$0xff] %vm6433_vm2, %v17977_v38  ;;  %6773 = vst.msk [vmem:[#allocation4 + $0x110] sm:$0xff] %vm6433_vm2, %v17977_v38  ;;  %13308 = vmatprep.mubr.msk.f32.mxu0 %vm164_vm1, %v11367_v59 }
 0x2f2   :  { %6775 = vst.msk [vmem:[#allocation4 + $0x120] sm:$0xff] %vm6433_vm2, %v17977_v38  ;;  %6776 = vst.msk [vmem:[#allocation4 + $0x128] sm:$0xff] %vm6433_vm2, %v17977_v38 }
 0x2f3   :  { %6778 = vst.msk [vmem:[#allocation4 + $0x138] sm:$0xff] %vm6433_vm2, %v17977_v38  ;;  %6779 = vst.msk [vmem:[#allocation4 + $0x140] sm:$0xff] %vm6433_vm2, %v17977_v38 }
 0x2f4   :  { %6781 = vst.msk [vmem:[#allocation4 + $0x150] sm:$0xff] %vm6433_vm2, %v17977_v38  ;;  %6782 = vst.msk [vmem:[#allocation4 + $0x158] sm:$0xff] %vm6433_vm2, %v17977_v38  ;;  %13309 = vmatmul.mubr.msk.f32.gmra.mrb[62].mxu0 %vm164_vm1, %v11368_v24 }
 0x2f5   :  { %6784 = vst.msk [vmem:[#allocation4 + $0x168] sm:$0xff] %vm6433_vm2, %v17977_v38  ;;  %6785 = vst.msk [vmem:[#allocation4 + $0x170] sm:$0xff] %vm6433_vm2, %v17977_v38 }
 0x2f6   :  { %6787 = vst.msk [vmem:[#allocation4 + $0x180] sm:$0xff] %vm6433_vm2, %v17977_v38  ;;  %6788 = vst.msk [vmem:[#allocation4 + $0x188] sm:$0xff] %vm6433_vm2, %v17977_v38 }
 0x2f7   :  { %6790 = vst.msk [vmem:[#allocation4 + $0x198] sm:$0xff] %vm6433_vm2, %v17977_v38  ;;  %6791 = vst.msk [vmem:[#allocation4 + $0x1a0] sm:$0xff] %vm6433_vm2, %v17977_v38 }
 0x2f8   :  { %6793 = vst.msk [vmem:[#allocation4 + $0x1b0] sm:$0xff] %vm6433_vm2, %v17977_v38  ;;  %6794 = vst.msk [vmem:[#allocation4 + $0x1b8] sm:$0xff] %vm6433_vm2, %v17977_v38 }
 0x2f9   :  { %6796 = vst.msk [vmem:[#allocation4 + $0x1c8] sm:$0xff] %vm6433_vm2, %v17977_v38  ;;  %6797 = vst.msk [vmem:[#allocation4 + $0x1d0] sm:$0xff] %vm6433_vm2, %v17977_v38 }
 0x2fa   :  { %6741 = vst.msk [vmem:[#allocation4 + $0x10] sm:$0x1] %vm6740_vm3, %v17977_v38  ;;  %6744 = vst.msk [vmem:[#allocation4 + $0x28] sm:$0x1] %vm6740_vm3, %v17977_v38 }
 0x2fb   :  { %6747 = vst.msk [vmem:[#allocation4 + $0x40] sm:$0x1] %vm6740_vm3, %v17977_v38  ;;  %6750 = vst.msk [vmem:[#allocation4 + $0x58] sm:$0x1] %vm6740_vm3, %v17977_v38 }
 0x2fc   :  { %6753 = vst.msk [vmem:[#allocation4 + $0x70] sm:$0x1] %vm6740_vm3, %v17977_v38  ;;  %6756 = vst.msk [vmem:[#allocation4 + $0x88] sm:$0x1] %vm6740_vm3, %v17977_v38 }
 0x2fd   :  { %6759 = vst.msk [vmem:[#allocation4 + $0xa0] sm:$0x1] %vm6740_vm3, %v17977_v38  ;;  %6762 = vst.msk [vmem:[#allocation4 + $0xb8] sm:$0x1] %vm6740_vm3, %v17977_v38 }
 0x2fe   :  { %6765 = vst.msk [vmem:[#allocation4 + $0xd0] sm:$0x1] %vm6740_vm3, %v17977_v38  ;;  %6768 = vst.msk [vmem:[#allocation4 + $0xe8] sm:$0x1] %vm6740_vm3, %v17977_v38 }
 0x2ff   :  { %6771 = vst.msk [vmem:[#allocation4 + $0x100] sm:$0x1] %vm6740_vm3, %v17977_v38  ;;  %6774 = vst.msk [vmem:[#allocation4 + $0x118] sm:$0x1] %vm6740_vm3, %v17977_v38 }
 0x300   :  { %6777 = vst.msk [vmem:[#allocation4 + $0x130] sm:$0x1] %vm6740_vm3, %v17977_v38  ;;  %6780 = vst.msk [vmem:[#allocation4 + $0x148] sm:$0x1] %vm6740_vm3, %v17977_v38 }
 0x301   :  { %6783 = vst.msk [vmem:[#allocation4 + $0x160] sm:$0x1] %vm6740_vm3, %v17977_v38  ;;  %6786 = vst.msk [vmem:[#allocation4 + $0x178] sm:$0x1] %vm6740_vm3, %v17977_v38 }
 0x302   :  { %6789 = vst.msk [vmem:[#allocation4 + $0x190] sm:$0x1] %vm6740_vm3, %v17977_v38  ;;  %6792 = vst.msk [vmem:[#allocation4 + $0x1a8] sm:$0x1] %vm6740_vm3, %v17977_v38 }
 0x303   :  { %6795 = vst.msk [vmem:[#allocation4 + $0x1c0] sm:$0x1] %vm6740_vm3, %v17977_v38  ;;  %6798 = vst.msk [vmem:[#allocation4 + $0x1d8] sm:$0x1] %vm6740_vm3, %v17977_v38  ;;  %v6833_v38 = vld [vmem:[#allocation4 + $0x8] sm:$0xff] }
 0x304   :  { %13313 = vmatprep.mubr.msk.f32.mxu1 %vm6433_vm2, %v6833_v38 }
 0x34b   :  { %v13217_v60 = vpop.f32.mrb[0].mxu0 }
 0x34c   :  { %v13724_v8 = vadd.f32 %v13217_v60, %v16235_v33  ;;  %v5915_v59 = vpop.f32.mrb[1].mxu0 }
 0x34d   :  { %v13725_v9 = vadd.f32 %v5915_v59, %v16239_v35 }
 0x34e   :  { %v6306_v13 = vadd.f32 %v13724_v8, %v17025_v41 }
 0x34f   :  { %v6305_v58 = vadd.f32 %v13725_v9, %v17025_v41  ;;  %v13220_v22 = vpop.f32.mrb[2].mxu0 }
 0x350   :  { %v6370_v49 = vmax.f32 %v6306_v13, 0.0  ;;  %v13726_v38 = vadd.f32 %v13220_v22, %v16243_v39  ;;  %v5925_v24 = vpop.f32.mrb[3].mxu0 }
 0x351   :  { %v6369_v48 = vmax.f32 %v6305_v58, 0.0  ;;  %v13727_v23 = vadd.f32 %v5925_v24, %v16247_v1  ;;  %v17042_v1 = vld [vmem:[%s17925_s3] sm:$0xff] }
 0x352   :  { %6435 = vst.msk [vmem:[#allocation2 + $0x8] sm:$0xff] %vm6433_vm2, %v6370_v49  ;;  %v6308_v0 = vadd.f32 %v13726_v38, %v17025_v41  ;;  %13337 = vmatprep.subr.mxu1 %v17042_v1 }
 0x353   :  { %6434 = vst.msk [vmem:[#allocation2] sm:$0xff] %vm6433_vm2, %v6369_v48  ;;  %v6307_v33 = vadd.f32 %v13727_v23, %v17025_v41  ;;  %v13223_v35 = vpop.f32.mrb[4].mxu0 }
 0x354   :  { %v6372_v8 = vmax.f32 %v6308_v0, 0.0  ;;  %v13728_v9 = vadd.f32 %v13223_v35, %v16254_v2  ;;  %v5935_v60 = vpop.f32.mrb[5].mxu0 }
 0x355   :  { %v6371_v13 = vmax.f32 %v6307_v33, 0.0  ;;  %v13729_v39 = vadd.f32 %v5935_v60, %v16258_v4 }
 0x356   :  { %6437 = vst.msk [vmem:[#allocation2 + $0x18] sm:$0xff] %vm6433_vm2, %v6372_v8  ;;  %v6310_v49 = vadd.f32 %v13728_v9, %v17025_v41 }
 0x357   :  { %6436 = vst.msk [vmem:[#allocation2 + $0x10] sm:$0xff] %vm6433_vm2, %v6371_v13  ;;  %v6309_v0 = vadd.f32 %v13729_v39, %v17025_v41  ;;  %v13226_v2 = vpop.f32.mrb[6].mxu0 }
 0x358   :  { %v6374_v23 = vmax.f32 %v6310_v49, 0.0  ;;  %v13730_v48 = vadd.f32 %v13226_v2, %v16267_v7  ;;  %v5945_v4 = vpop.f32.mrb[7].mxu0 }
 0x359   :  { %v6373_v58 = vmax.f32 %v6309_v0, 0.0  ;;  %v13731_v59 = vadd.f32 %v5945_v4, %v16270_v56 }
 0x35a   :  { %v6498_v22 = vld [vmem:[#allocation2] ss:$2 sm:$0xff]  ;;  %v6562_v38 = vld [vmem:[#allocation2 + $0x1] ss:$2 sm:$0xff]  ;;  %6439 = vst.msk [vmem:[#allocation2 + $0x28] sm:$0xff] %vm6433_vm2, %v6374_v23  ;;  %v6312_v24 = vadd.f32 %v13730_v48, %v17025_v41 }
 0x35b   :  { %v6625_v33 = vmax.f32 %v6498_v22, %v6562_v38  ;;  %6438 = vst.msk [vmem:[#allocation2 + $0x20] sm:$0xff] %vm6433_vm2, %v6373_v58  ;;  %v6311_v35 = vadd.f32 %v13731_v59, %v17025_v41  ;;  %v13229_v8 = vpop.f32.mrb[8].mxu0 }
 0x35c   :  { %v6376_v9 = vmax.f32 %v6312_v24, 0.0  ;;  %v13732_v60 = vadd.f32 %v13229_v8, %v16279_v10  ;;  %v5955_v7 = vpop.f32.mrb[9].mxu0 }
 0x35d   :  { %6657 = vst.msk [vmem:[#allocation3] sm:$0xff] %vm6433_vm2, %v6625_v33  ;;  %v6375_v13 = vmax.f32 %v6311_v35, 0.0  ;;  %v13733_v56 = vadd.f32 %v5955_v7, %v16282_v11 }
 0x35e   :  { %v6500_v39 = vld [vmem:[#allocation2 + $0x10] ss:$2 sm:$0xff]  ;;  %v6564_v49 = vld [vmem:[#allocation2 + $0x11] ss:$2 sm:$0xff]  ;;  %6441 = vst.msk [vmem:[#allocation2 + $0x38] sm:$0xff] %vm6433_vm2, %v6376_v9  ;;  %v6314_v0 = vadd.f32 %v13732_v60, %v17025_v41 }
 0x35f   :  { %v6626_v2 = vmax.f32 %v6500_v39, %v6564_v49  ;;  %6440 = vst.msk [vmem:[#allocation2 + $0x30] sm:$0xff] %vm6433_vm2, %v6375_v13  ;;  %v6313_v23 = vadd.f32 %v13733_v56, %v17025_v41  ;;  %v13232_v48 = vpop.f32.mrb[10].mxu0 }
 0x360   :  { %v6378_v4 = vmax.f32 %v6314_v0, 0.0  ;;  %v13734_v10 = vadd.f32 %v13232_v48, %v16293_v19  ;;  %v5965_v58 = vpop.f32.mrb[11].mxu0 }
 0x361   :  { %6658 = vst.msk [vmem:[#allocation3 + $0x8] sm:$0xff] %vm6433_vm2, %v6626_v2  ;;  %v6377_v59 = vmax.f32 %v6313_v23, 0.0  ;;  %v13735_v11 = vadd.f32 %v5965_v58, %v16296_v21 }
 0x362   :  { %v6502_v22 = vld [vmem:[#allocation2 + $0x20] ss:$2 sm:$0xff]  ;;  %v6566_v38 = vld [vmem:[#allocation2 + $0x21] ss:$2 sm:$0xff]  ;;  %6443 = vst.msk [vmem:[#allocation2 + $0x48] sm:$0xff] %vm6433_vm2, %v6378_v4  ;;  %v6316_v24 = vadd.f32 %v13734_v10, %v17025_v41 }
 0x363   :  { %v6627_v33 = vmax.f32 %v6502_v22, %v6566_v38  ;;  %6442 = vst.msk [vmem:[#allocation2 + $0x40] sm:$0xff] %vm6433_vm2, %v6377_v59  ;;  %v6315_v35 = vadd.f32 %v13735_v11, %v17025_v41  ;;  %v13235_v8 = vpop.f32.mrb[12].mxu0 }
 0x364   :  { %v6380_v9 = vmax.f32 %v6316_v24, 0.0  ;;  %v13736_v19 = vadd.f32 %v13235_v8, %v16305_v26  ;;  %v5975_v60 = vpop.f32.mrb[13].mxu0  ;;  %v6689_v4 = vld [vmem:[#allocation3] sm:$0xff] }
 0x365   :  { %6659 = vst.msk [vmem:[#allocation3 + $0x10] sm:$0xff] %vm6433_vm2, %v6627_v33  ;;  %v6379_v7 = vmax.f32 %v6315_v35, 0.0  ;;  %v13737_v21 = vadd.f32 %v5975_v60, %v16308_v28 }
 0x366   :  { %v6504_v13 = vld [vmem:[#allocation2 + $0x30] ss:$2 sm:$0xff]  ;;  %v6568_v56 = vld [vmem:[#allocation2 + $0x31] ss:$2 sm:$0xff]  ;;  %6445 = vst.msk [vmem:[#allocation2 + $0x58] sm:$0xff] %vm6433_vm2, %v6380_v9  ;;  %v6318_v39 = vadd.f32 %v13736_v19, %v17025_v41 }
 0x367   :  { %v6628_v49 = vmax.f32 %v6504_v13, %v6568_v56  ;;  %6444 = vst.msk [vmem:[#allocation2 + $0x50] sm:$0xff] %vm6433_vm2, %v6379_v7  ;;  %v6317_v0 = vadd.f32 %v13737_v21, %v17025_v41  ;;  %v13238_v2 = vpop.f32.mrb[14].mxu0 }
 0x368   :  { %v6382_v23 = vmax.f32 %v6318_v39, 0.0  ;;  %v13738_v26 = vadd.f32 %v13238_v2, %v16317_v34  ;;  %v5985_v48 = vpop.f32.mrb[15].mxu0  ;;  %v6706_v10 = vld [vmem:[#allocation3 + $0x8] sm:$0xff] }
 0x369   :  { %6660 = vst.msk [vmem:[#allocation3 + $0x18] sm:$0xff] %vm6433_vm2, %v6628_v49  ;;  %v6381_v28 = vmax.f32 %v6317_v0, 0.0  ;;  %v13739_v58 = vadd.f32 %v5985_v48, %v16320_v36  ;;  %v6722_v59 = vmax.f32 %v6689_v4, %v6706_v10  ;;  %v17097_v4 = vld [vmem:[%s17925_s3 + $0x10] sm:$0xff] }
 0x36a   :  { %v6506_v11 = vld [vmem:[#allocation2 + $0x40] ss:$2 sm:$0xff]  ;;  %v6570_v22 = vld [vmem:[#allocation2 + $0x41] ss:$2 sm:$0xff]  ;;  %6447 = vst.msk [vmem:[#allocation2 + $0x68] sm:$0xff] %vm6433_vm2, %v6382_v23  ;;  %v6320_v38 = vadd.f32 %v13738_v26, %v17025_v41 }
 0x36b   :  { %v6629_v24 = vmax.f32 %v6506_v11, %v6570_v22  ;;  %6446 = vst.msk [vmem:[#allocation2 + $0x60] sm:$0xff] %vm6433_vm2, %v6381_v28  ;;  %v6319_v34 = vadd.f32 %v13739_v58, %v17025_v41  ;;  %v13241_v33 = vpop.f32.mrb[16].mxu0  ;;  %6800 = vst.msk [vmem:[#allocation4 + $0x20] sm:$0xff] %vm6433_vm2, %v6722_v59 }
 0x36c   :  { %v6384_v35 = vmax.f32 %v6320_v38, 0.0  ;;  %v13740_v8 = vadd.f32 %v13241_v33, %v16329_v43  ;;  %v5995_v9 = vpop.f32.mrb[17].mxu0  ;;  %v6690_v2 = vld [vmem:[#allocation3 + $0x10] sm:$0xff] }
 0x36d   :  { %6661 = vst.msk [vmem:[#allocation3 + $0x20] sm:$0xff] %vm6433_vm2, %v6629_v24  ;;  %v6383_v36 = vmax.f32 %v6319_v34, 0.0  ;;  %v13741_v19 = vadd.f32 %v5995_v9, %v16332_v44 }
 0x36e   :  { %v6508_v60 = vld [vmem:[#allocation2 + $0x50] ss:$2 sm:$0xff]  ;;  %v6572_v7 = vld [vmem:[#allocation2 + $0x51] ss:$2 sm:$0xff]  ;;  %6449 = vst.msk [vmem:[#allocation2 + $0x78] sm:$0xff] %vm6433_vm2, %v6384_v35  ;;  %v6322_v21 = vadd.f32 %v13740_v8, %v17025_v41 }
 0x36f   :  { %v6630_v13 = vmax.f32 %v6508_v60, %v6572_v7  ;;  %6448 = vst.msk [vmem:[#allocation2 + $0x70] sm:$0xff] %vm6433_vm2, %v6383_v36  ;;  %v6321_v56 = vadd.f32 %v13741_v19, %v17025_v41  ;;  %v13244_v39 = vpop.f32.mrb[18].mxu0 }
 0x370   :  { %v6386_v49 = vmax.f32 %v6322_v21, 0.0  ;;  %v13742_v43 = vadd.f32 %v13244_v39, %v16341_v45  ;;  %v6005_v0 = vpop.f32.mrb[19].mxu0  ;;  %v6707_v23 = vld [vmem:[#allocation3 + $0x18] sm:$0xff] }
 0x371   :  { %6662 = vst.msk [vmem:[#allocation3 + $0x28] sm:$0xff] %vm6433_vm2, %v6630_v13  ;;  %v6385_v44 = vmax.f32 %v6321_v56, 0.0  ;;  %v13743_v26 = vadd.f32 %v6005_v0, %v16344_v47  ;;  %v6723_v48 = vmax.f32 %v6690_v2, %v6707_v23 }
 0x372   :  { %v6510_v10 = vld [vmem:[#allocation2 + $0x60] ss:$2 sm:$0xff]  ;;  %v6574_v28 = vld [vmem:[#allocation2 + $0x61] ss:$2 sm:$0xff]  ;;  %6451 = vst.msk [vmem:[#allocation2 + $0x88] sm:$0xff] %vm6433_vm2, %v6386_v49  ;;  %v6324_v45 = vadd.f32 %v13742_v43, %v17025_v41 }
 0x373   :  { %v6834_v58 = vld [vmem:[#allocation4 + $0x20] sm:$0xff]  ;;  %v6631_v59 = vmax.f32 %v6510_v10, %v6574_v28  ;;  %6450 = vst.msk [vmem:[#allocation2 + $0x80] sm:$0xff] %vm6433_vm2, %v6385_v44  ;;  %v6323_v11 = vadd.f32 %v13743_v26, %v17025_v41  ;;  %v13247_v22 = vpop.f32.mrb[20].mxu0  ;;  %6801 = vst.msk [vmem:[#allocation4 + $0x38] sm:$0xff] %vm6433_vm2, %v6723_v48 }
 0x374   :  { %13314 = vmatmul.mubr.msk.f32.vlgmr.msra.gmra.mrb[64].mxu1 %vm6433_vm2, %v6834_v58  ;;  %v6388_v47 = vmax.f32 %v6324_v45, 0.0  ;;  %v13744_v38 = vadd.f32 %v13247_v22, %v16353_v50  ;;  %v6015_v24 = vpop.f32.mrb[21].mxu0  ;;  %v6691_v21 = vld [vmem:[#allocation3 + $0x20] sm:$0xff] }
 0x375   :  { %13338 = vmatpush3.msra.mxu1 %v17042_v1  ;;  %6663 = vst.msk [vmem:[#allocation3 + $0x30] sm:$0xff] %vm6433_vm2, %v6631_v59  ;;  %v6387_v34 = vmax.f32 %v6323_v11, 0.0  ;;  %v13745_v33 = vadd.f32 %v6015_v24, %v16356_v51 }
 0x376   :  { %13363 = vmatprep.subr.mxu1 %v17097_v4  ;;  %v6512_v35 = vld [vmem:[#allocation2 + $0x70] ss:$2 sm:$0xff]  ;;  %v6576_v8 = vld [vmem:[#allocation2 + $0x71] ss:$2 sm:$0xff]  ;;  %6453 = vst.msk [vmem:[#allocation2 + $0x98] sm:$0xff] %vm6433_vm2, %v6388_v47  ;;  %v6326_v9 = vadd.f32 %v13744_v38, %v17025_v41 }
 0x377   :  { %v6632_v36 = vmax.f32 %v6512_v35, %v6576_v8  ;;  %6452 = vst.msk [vmem:[#allocation2 + $0x90] sm:$0xff] %vm6433_vm2, %v6387_v34  ;;  %v6325_v50 = vadd.f32 %v13745_v33, %v17025_v41  ;;  %v13250_v19 = vpop.f32.mrb[22].mxu0 }
 0x378   :  { %v6390_v1 = vmax.f32 %v6326_v9, 0.0  ;;  %v13746_v60 = vadd.f32 %v13250_v19, %v16365_v55  ;;  %v6025_v7 = vpop.f32.mrb[23].mxu0  ;;  %v6708_v51 = vld [vmem:[#allocation3 + $0x28] sm:$0xff] }
 0x379   :  { %6664 = vst.msk [vmem:[#allocation3 + $0x38] sm:$0xff] %vm6433_vm2, %v6632_v36  ;;  %v6389_v13 = vmax.f32 %v6325_v50, 0.0  ;;  %v13747_v56 = vadd.f32 %v6025_v7, %v16368_v57  ;;  %v6724_v39 = vmax.f32 %v6691_v21, %v6708_v51 }
 0x37a   :  { %v6514_v49 = vld [vmem:[#allocation2 + $0x80] ss:$2 sm:$0xff]  ;;  %v6578_v43 = vld [vmem:[#allocation2 + $0x81] ss:$2 sm:$0xff]  ;;  %6455 = vst.msk [vmem:[#allocation2 + $0xa8] sm:$0xff] %vm6433_vm2, %v6390_v1  ;;  %v6328_v0 = vadd.f32 %v13746_v60, %v17025_v41  ;;  %v17119_v2 = vld [vmem:[#allocation4 + $0x38] sm:$0xff] }
 0x37b   :  { %v6633_v23 = vmax.f32 %v6514_v49, %v6578_v43  ;;  %6454 = vst.msk [vmem:[#allocation2 + $0xa0] sm:$0xff] %vm6433_vm2, %v6389_v13  ;;  %v6327_v55 = vadd.f32 %v13747_v56, %v17025_v41  ;;  %v13253_v44 = vpop.f32.mrb[24].mxu0  ;;  %13316 = vmatprep.mubr.msk.f32.mxu1 %vm6433_vm2, %v17119_v2  ;;  %6802 = vst.msk [vmem:[#allocation4 + $0x50] sm:$0xff] %vm6433_vm2, %v6724_v39 }
 0x37c   :  { %v6392_v57 = vmax.f32 %v6328_v0, 0.0  ;;  %v13748_v26 = vadd.f32 %v13253_v44, %v16377_v61  ;;  %v6035_v48 = vpop.f32.mrb[25].mxu0  ;;  %v6692_v34 = vld [vmem:[#allocation3 + $0x30] sm:$0xff] }
 0x37d   :  { %6665 = vst.msk [vmem:[#allocation3 + $0x40] sm:$0xff] %vm6433_vm2, %v6633_v23  ;;  %v6391_v10 = vmax.f32 %v6327_v55, 0.0  ;;  %v13749_v28 = vadd.f32 %v6035_v48, %v16380_v62 }
 0x37e   :  { %v6516_v45 = vld [vmem:[#allocation2 + $0x90] ss:$2 sm:$0xff]  ;;  %v6580_v58 = vld [vmem:[#allocation2 + $0x91] ss:$2 sm:$0xff]  ;;  %6457 = vst.msk [vmem:[#allocation2 + $0xb8] sm:$0xff] %vm6433_vm2, %v6392_v57  ;;  %v6330_v59 = vadd.f32 %v13748_v26, %v17025_v41 }
 0x37f   :  { %v6634_v11 = vmax.f32 %v6516_v45, %v6580_v58  ;;  %6456 = vst.msk [vmem:[#allocation2 + $0xb0] sm:$0xff] %vm6433_vm2, %v6391_v10  ;;  %v6329_v22 = vadd.f32 %v13749_v28, %v17025_v41  ;;  %v13256_v47 = vpop.f32.mrb[26].mxu0 }
 0x380   :  { %v6394_v38 = vmax.f32 %v6330_v59, 0.0  ;;  %v13750_v61 = vadd.f32 %v13256_v47, %v16389_v12  ;;  %v6045_v24 = vpop.f32.mrb[27].mxu0  ;;  %v6709_v33 = vld [vmem:[#allocation3 + $0x38] sm:$0xff] }
 0x381   :  { %6666 = vst.msk [vmem:[#allocation3 + $0x48] sm:$0xff] %vm6433_vm2, %v6634_v11  ;;  %v6393_v62 = vmax.f32 %v6329_v22, 0.0  ;;  %v13751_v35 = vadd.f32 %v6045_v24, %v16392_v15  ;;  %v6725_v8 = vmax.f32 %v6692_v34, %v6709_v33 }
 0x382   :  { %v6518_v9 = vld [vmem:[#allocation2 + $0xa0] ss:$2 sm:$0xff]  ;;  %v6582_v36 = vld [vmem:[#allocation2 + $0xa1] ss:$2 sm:$0xff]  ;;  %6459 = vst.msk [vmem:[#allocation2 + $0xc8] sm:$0xff] %vm6433_vm2, %v6394_v38  ;;  %v6332_v50 = vadd.f32 %v13750_v61, %v17025_v41  ;;  %v17138_v19 = vld [vmem:[#allocation4 + $0x50] sm:$0xff] }
 0x383   :  { %v6635_v1 = vmax.f32 %v6518_v9, %v6582_v36  ;;  %6458 = vst.msk [vmem:[#allocation2 + $0xc0] sm:$0xff] %vm6433_vm2, %v6393_v62  ;;  %v6331_v12 = vadd.f32 %v13751_v35, %v17025_v41  ;;  %v13259_v60 = vpop.f32.mrb[28].mxu0  ;;  %13317 = vmatmul.mubr.msk.f32.gmra.mrb[66].mxu1 %vm6433_vm2, %v17138_v19  ;;  %6803 = vst.msk [vmem:[#allocation4 + $0x68] sm:$0xff] %vm6433_vm2, %v6725_v8 }
 0x384   :  { %v6396_v15 = vmax.f32 %v6332_v50, 0.0  ;;  %v13752_v7 = vadd.f32 %v13259_v60, %v16401_v52  ;;  %v6055_v21 = vpop.f32.mrb[29].mxu0  ;;  %v6693_v57 = vld [vmem:[#allocation3 + $0x40] sm:$0xff] }
 0x385   :  { %6667 = vst.msk [vmem:[#allocation3 + $0x50] sm:$0xff] %vm6433_vm2, %v6635_v1  ;;  %v6395_v51 = vmax.f32 %v6331_v12, 0.0  ;;  %v13753_v13 = vadd.f32 %v6055_v21, %v16404_v46 }
 0x386   :  { %v6520_v56 = vld [vmem:[#allocation2 + $0xb0] ss:$2 sm:$0xff]  ;;  %v6584_v39 = vld [vmem:[#allocation2 + $0xb1] ss:$2 sm:$0xff]  ;;  %6461 = vst.msk [vmem:[#allocation2 + $0xd8] sm:$0xff] %vm6433_vm2, %v6396_v15  ;;  %v6334_v49 = vadd.f32 %v13752_v7, %v17025_v41 }
 0x387   :  { %v6636_v43 = vmax.f32 %v6520_v56, %v6584_v39  ;;  %6460 = vst.msk [vmem:[#allocation2 + $0xd0] sm:$0xff] %vm6433_vm2, %v6395_v51  ;;  %v6333_v0 = vadd.f32 %v13753_v13, %v17025_v41  ;;  %v13262_v23 = vpop.f32.mrb[30].mxu0 }
 0x388   :  { %v6398_v55 = vmax.f32 %v6334_v49, 0.0  ;;  %v13754_v52 = vadd.f32 %v13262_v23, %v16413_v20  ;;  %v6065_v44 = vpop.f32.mrb[31].mxu0  ;;  %v6710_v26 = vld [vmem:[#allocation3 + $0x48] sm:$0xff] }
 0x389   :  { %6668 = vst.msk [vmem:[#allocation3 + $0x58] sm:$0xff] %vm6433_vm2, %v6636_v43  ;;  %v6397_v46 = vmax.f32 %v6333_v0, 0.0  ;;  %v13755_v48 = vadd.f32 %v6065_v44, %v16416_v25  ;;  %v6726_v10 = vmax.f32 %v6693_v57, %v6710_v26 }
 0x38a   :  { %v6522_v28 = vld [vmem:[#allocation2 + $0xc0] ss:$2 sm:$0xff]  ;;  %v6586_v45 = vld [vmem:[#allocation2 + $0xc1] ss:$2 sm:$0xff]  ;;  %6463 = vst.msk [vmem:[#allocation2 + $0xe8] sm:$0xff] %vm6433_vm2, %v6398_v55  ;;  %v6336_v58 = vadd.f32 %v13754_v52, %v17025_v41 }
 0x38b   :  { %v17157_v59 = vld [vmem:[#allocation4 + $0x68] sm:$0xff]  ;;  %v6637_v11 = vmax.f32 %v6522_v28, %v6586_v45  ;;  %6462 = vst.msk [vmem:[#allocation2 + $0xe0] sm:$0xff] %vm6433_vm2, %v6397_v46  ;;  %v6335_v20 = vadd.f32 %v13755_v48, %v17025_v41  ;;  %v13265_v22 = vpop.f32.mrb[32].mxu0  ;;  %6804 = vst.msk [vmem:[#allocation4 + $0x80] sm:$0xff] %vm6433_vm2, %v6726_v10 }
 0x38c   :  { %13319 = vmatprep.mubr.msk.f32.mxu1 %vm6433_vm2, %v17157_v59  ;;  %v6400_v25 = vmax.f32 %v6336_v58, 0.0  ;;  %v13756_v47 = vadd.f32 %v13265_v22, %v16425_v27  ;;  %v6075_v38 = vpop.f32.mrb[33].mxu0  ;;  %v6694_v1 = vld [vmem:[#allocation3 + $0x50] sm:$0xff] }
 0x38d   :  { %6669 = vst.msk [vmem:[#allocation3 + $0x60] sm:$0xff] %vm6433_vm2, %v6637_v11  ;;  %v6399_v61 = vmax.f32 %v6335_v20, 0.0  ;;  %v13757_v24 = vadd.f32 %v6075_v38, %v16428_v29 }
 0x38e   :  { %v6524_v34 = vld [vmem:[#allocation2 + $0xd0] ss:$2 sm:$0xff]  ;;  %v6588_v33 = vld [vmem:[#allocation2 + $0xd1] ss:$2 sm:$0xff]  ;;  %6465 = vst.msk [vmem:[#allocation2 + $0xf8] sm:$0xff] %vm6433_vm2, %v6400_v25  ;;  %v6338_v62 = vadd.f32 %v13756_v47, %v17025_v41 }
 0x38f   :  { %v6638_v35 = vmax.f32 %v6524_v34, %v6588_v33  ;;  %6464 = vst.msk [vmem:[#allocation2 + $0xf0] sm:$0xff] %vm6433_vm2, %v6399_v61  ;;  %v6337_v8 = vadd.f32 %v13757_v24, %v17025_v41  ;;  %v13268_v9 = vpop.f32.mrb[34].mxu0 }
 0x390   :  { %v6402_v36 = vmax.f32 %v6338_v62, 0.0  ;;  %v13758_v27 = vadd.f32 %v13268_v9, %v16437_v6  ;;  %v6085_v50 = vpop.f32.mrb[35].mxu0  ;;  %v6711_v12 = vld [vmem:[#allocation3 + $0x58] sm:$0xff] }
 0x391   :  { %6670 = vst.msk [vmem:[#allocation3 + $0x68] sm:$0xff] %vm6433_vm2, %v6638_v35  ;;  %v6401_v29 = vmax.f32 %v6337_v8, 0.0  ;;  %v13759_v60 = vadd.f32 %v6085_v50, %v16440_v5  ;;  %v6727_v15 = vmax.f32 %v6694_v1, %v6711_v12 }
 0x392   :  { %v6526_v7 = vld [vmem:[#allocation2 + $0xe0] ss:$2 sm:$0xff]  ;;  %v6590_v21 = vld [vmem:[#allocation2 + $0xe1] ss:$2 sm:$0xff]  ;;  %6467 = vst.msk [vmem:[#allocation2 + $0x108] sm:$0xff] %vm6433_vm2, %v6402_v36  ;;  %v6340_v51 = vadd.f32 %v13758_v27, %v17025_v41 }
 0x393   :  { %v17176_v13 = vld [vmem:[#allocation4 + $0x80] sm:$0xff]  ;;  %v6639_v56 = vmax.f32 %v6526_v7, %v6590_v21  ;;  %6466 = vst.msk [vmem:[#allocation2 + $0x100] sm:$0xff] %vm6433_vm2, %v6401_v29  ;;  %v6339_v6 = vadd.f32 %v13759_v60, %v17025_v41  ;;  %v13271_v39 = vpop.f32.mrb[36].mxu0  ;;  %6805 = vst.msk [vmem:[#allocation4 + $0x98] sm:$0xff] %vm6433_vm2, %v6727_v15  ;;  %v6841_v7 = vld [vmem:[#allocation4 + $0xf8] sm:$0xff] }
 0x394   :  { %13320 = vmatmul.mubr.msk.f32.gmra.mrb[68].mxu1 %vm6433_vm2, %v17176_v13  ;;  %v6404_v5 = vmax.f32 %v6340_v51, 0.0  ;;  %v13760_v49 = vadd.f32 %v13271_v39, %v16449_v14  ;;  %v6095_v43 = vpop.f32.mrb[37].mxu0  ;;  %v6695_v28 = vld [vmem:[#allocation3 + $0x60] sm:$0xff] }
 0x395   :  { %6671 = vst.msk [vmem:[#allocation3 + $0x70] sm:$0xff] %vm6433_vm2, %v6639_v56  ;;  %v6403_v0 = vmax.f32 %v6339_v6, 0.0  ;;  %v13761_v23 = vadd.f32 %v6095_v43, %v16452_v17 }
 0x396   :  { %v6528_v55 = vld [vmem:[#allocation2 + $0xf0] ss:$2 sm:$0xff]  ;;  %v6592_v52 = vld [vmem:[#allocation2 + $0xf1] ss:$2 sm:$0xff]  ;;  %6469 = vst.msk [vmem:[#allocation2 + $0x118] sm:$0xff] %vm6433_vm2, %v6404_v5  ;;  %v6342_v44 = vadd.f32 %v13760_v49, %v17025_v41 }
 0x397   :  { %v6640_v57 = vmax.f32 %v6528_v55, %v6592_v52  ;;  %6468 = vst.msk [vmem:[#allocation2 + $0x110] sm:$0xff] %vm6433_vm2, %v6403_v0  ;;  %v6341_v26 = vadd.f32 %v13761_v23, %v17025_v41  ;;  %v13274_v46 = vpop.f32.mrb[38].mxu0 }
 0x398   :  { %v6406_v48 = vmax.f32 %v6342_v44, 0.0  ;;  %v13762_v14 = vadd.f32 %v13274_v46, %v16461_v30  ;;  %v6105_v10 = vpop.f32.mrb[39].mxu0  ;;  %v6712_v45 = vld [vmem:[#allocation3 + $0x68] sm:$0xff] }
 0x399   :  { %6672 = vst.msk [vmem:[#allocation3 + $0x78] sm:$0xff] %vm6433_vm2, %v6640_v57  ;;  %v6405_v17 = vmax.f32 %v6341_v26, 0.0  ;;  %v13763_v58 = vadd.f32 %v6105_v10, %v16464_v32  ;;  %v6728_v11 = vmax.f32 %v6695_v28, %v6712_v45 }
 0x39a   :  { %v6530_v20 = vld [vmem:[#allocation2 + $0x100] ss:$2 sm:$0xff]  ;;  %v6594_v22 = vld [vmem:[#allocation2 + $0x101] ss:$2 sm:$0xff]  ;;  %6471 = vst.msk [vmem:[#allocation2 + $0x128] sm:$0xff] %vm6433_vm2, %v6406_v48  ;;  %v6344_v25 = vadd.f32 %v13762_v14, %v17025_v41  ;;  %v17195_v47 = vld [vmem:[#allocation4 + $0x98] sm:$0xff] }
 0x39b   :  { %v6641_v38 = vmax.f32 %v6530_v20, %v6594_v22  ;;  %6470 = vst.msk [vmem:[#allocation2 + $0x120] sm:$0xff] %vm6433_vm2, %v6405_v17  ;;  %v6343_v30 = vadd.f32 %v13763_v58, %v17025_v41  ;;  %v13277_v61 = vpop.f32.mrb[40].mxu0  ;;  %13322 = vmatprep.mubr.msk.f32.mxu1 %vm6433_vm2, %v17195_v47  ;;  %6806 = vst.msk [vmem:[#allocation4 + $0xb0] sm:$0xff] %vm6433_vm2, %v6728_v11 }
 0x39c   :  { %v6408_v32 = vmax.f32 %v6344_v25, 0.0  ;;  %v13764_v24 = vadd.f32 %v13277_v61, %v16473_v42  ;;  %v6115_v34 = vpop.f32.mrb[41].mxu0  ;;  %v6696_v29 = vld [vmem:[#allocation3 + $0x70] sm:$0xff] }
 0x39d   :  { %6673 = vst.msk [vmem:[#allocation3 + $0x80] sm:$0xff] %vm6433_vm2, %v6641_v38  ;;  %v6407_v33 = vmax.f32 %v6343_v30, 0.0  ;;  %v13765_v62 = vadd.f32 %v6115_v34, %v16476_v40 }
 0x39e   :  { %v6532_v35 = vld [vmem:[#allocation2 + $0x110] ss:$2 sm:$0xff]  ;;  %v6596_v8 = vld [vmem:[#allocation2 + $0x111] ss:$2 sm:$0xff]  ;;  %6473 = vst.msk [vmem:[#allocation2 + $0x138] sm:$0xff] %vm6433_vm2, %v6408_v32  ;;  %v6346_v9 = vadd.f32 %v13764_v24, %v17025_v41 }
 0x39f   :  { %v6642_v36 = vmax.f32 %v6532_v35, %v6596_v8  ;;  %6472 = vst.msk [vmem:[#allocation2 + $0x130] sm:$0xff] %vm6433_vm2, %v6407_v33  ;;  %v6345_v27 = vadd.f32 %v13765_v62, %v17025_v41  ;;  %v13280_v50 = vpop.f32.mrb[42].mxu0 }
 0x3a0   :  { %v6410_v1 = vmax.f32 %v6346_v9, 0.0  ;;  %v13766_v42 = vadd.f32 %v13280_v50, %v16485_v53  ;;  %v6125_v12 = vpop.f32.mrb[43].mxu0  ;;  %v6713_v60 = vld [vmem:[#allocation3 + $0x78] sm:$0xff] }
 0x3a1   :  { %6674 = vst.msk [vmem:[#allocation3 + $0x88] sm:$0xff] %vm6433_vm2, %v6642_v36  ;;  %v6409_v40 = vmax.f32 %v6345_v27, 0.0  ;;  %v13767_v15 = vadd.f32 %v6125_v12, %v16488_v54  ;;  %v6729_v21 = vmax.f32 %v6696_v29, %v6713_v60  ;;  %v18082_v12 = vld [vmem:[#allocation38_spill] sm:$0xff] }
 0x3a2   :  { %v6534_v51 = vld [vmem:[#allocation2 + $0x120] ss:$2 sm:$0xff]  ;;  %v6598_v56 = vld [vmem:[#allocation2 + $0x121] ss:$2 sm:$0xff]  ;;  %6475 = vst.msk [vmem:[#allocation2 + $0x148] sm:$0xff] %vm6433_vm2, %v6410_v1  ;;  %v6348_v6 = vadd.f32 %v13766_v42, %v17025_v41  ;;  %v17214_v39 = vld [vmem:[#allocation4 + $0xb0] sm:$0xff] }
 0x3a3   :  { %v6643_v5 = vmax.f32 %v6534_v51, %v6598_v56  ;;  %6474 = vst.msk [vmem:[#allocation2 + $0x140] sm:$0xff] %vm6433_vm2, %v6409_v40  ;;  %v6347_v53 = vadd.f32 %v13767_v15, %v17025_v41  ;;  %v13283_v49 = vpop.f32.mrb[44].mxu0  ;;  %13323 = vmatmul.mubr.msk.f32.gmra.mrb[70].mxu1 %vm6433_vm2, %v17214_v39  ;;  %6807 = vst.msk [vmem:[#allocation4 + $0xc8] sm:$0xff] %vm6433_vm2, %v6729_v21 }
 0x3a4   :  { %v6412_v54 = vmax.f32 %v6348_v6, 0.0  ;;  %v13768_v43 = vadd.f32 %v13283_v49, %v16497_v63  ;;  %v6135_v0 = vpop.f32.mrb[45].mxu0  ;;  %13325 = vmatprep.mubr.msk.f32.mxu1 %vm6433_vm2, %v6841_v7  ;;  %v6697_v28 = vld [vmem:[#allocation3 + $0x80] sm:$0xff] }
 0x3a5   :  { %6675 = vst.msk [vmem:[#allocation3 + $0x90] sm:$0xff] %vm6433_vm2, %v6643_v5  ;;  %v6411_v23 = vmax.f32 %v6347_v53, 0.0  ;;  %v13769_v55 = vadd.f32 %v6135_v0, %v16500_v3  ;;  %v18083_v53 = vld [vmem:[#allocation13_spill] sm:$0xff]  ;;  %v18084_v0 = vld [vmem:[#allocation40_spill] sm:$0xff] }
 0x3a6   :  { %v6536_v52 = vld [vmem:[#allocation2 + $0x130] ss:$2 sm:$0xff]  ;;  %v6600_v44 = vld [vmem:[#allocation2 + $0x131] ss:$2 sm:$0xff]  ;;  %6477 = vst.msk [vmem:[#allocation2 + $0x158] sm:$0xff] %vm6433_vm2, %v6412_v54  ;;  %v6350_v57 = vadd.f32 %v13768_v43, %v17025_v41 }
 0x3a7   :  { %v6644_v26 = vmax.f32 %v6536_v52, %v6600_v44  ;;  %6476 = vst.msk [vmem:[#allocation2 + $0x150] sm:$0xff] %vm6433_vm2, %v6411_v23  ;;  %v6349_v46 = vadd.f32 %v13769_v55, %v17025_v41  ;;  %v13286_v63 = vpop.f32.mrb[46].mxu0 }
 0x3a8   :  { %v6414_v48 = vmax.f32 %v6350_v57, 0.0  ;;  %v13770_v14 = vadd.f32 %v13286_v63, %v16509_v16  ;;  %v6145_v10 = vpop.f32.mrb[47].mxu0  ;;  %v6714_v45 = vld [vmem:[#allocation3 + $0x88] sm:$0xff] }
 0x3a9   :  { %6676 = vst.msk [vmem:[#allocation3 + $0x98] sm:$0xff] %vm6433_vm2, %v6644_v26  ;;  %v6413_v3 = vmax.f32 %v6349_v46, 0.0  ;;  %v13771_v17 = vadd.f32 %v6145_v10, %v16512_v18  ;;  %v6730_v58 = vmax.f32 %v6697_v28, %v6714_v45 }
 0x3aa   :  { %v6538_v11 = vld [vmem:[#allocation2 + $0x140] ss:$2 sm:$0xff]  ;;  %v6602_v20 = vld [vmem:[#allocation2 + $0x141] ss:$2 sm:$0xff]  ;;  %6479 = vst.msk [vmem:[#allocation2 + $0x168] sm:$0xff] %vm6433_vm2, %v6414_v48  ;;  %v6352_v22 = vadd.f32 %v13770_v14, %v17025_v41 }
 0x3ab   :  { %v6645_v25 = vmax.f32 %v6538_v11, %v6602_v20  ;;  %6478 = vst.msk [vmem:[#allocation2 + $0x160] sm:$0xff] %vm6433_vm2, %v6413_v3  ;;  %v6351_v16 = vadd.f32 %v13771_v17, %v17025_v41  ;;  %v13289_v38 = vpop.f32.mrb[48].mxu0  ;;  %6808 = vst.msk [vmem:[#allocation4 + $0x110] sm:$0xff] %vm6433_vm2, %v6730_v58  ;;  %v18085_v48 = vld [vmem:[#allocation14_spill] sm:$0xff] }
 0x3ac   :  { %v6416_v30 = vmax.f32 %v6352_v22, 0.0  ;;  %v13772_v61 = vadd.f32 %v13289_v38, %v16521_v31  ;;  %v6155_v32 = vpop.f32.mrb[49].mxu0  ;;  %v18081_v31 = vld [vmem:[#allocation12_spill] sm:$0xff]  ;;  %v18086_v17 = vld [vmem:[#allocation42_spill] sm:$0xff] }
 0x3ad   :  { %6677 = vst.msk [vmem:[#allocation3 + $0xa0] sm:$0xff] %vm6433_vm2, %v6645_v25  ;;  %v6415_v18 = vmax.f32 %v6351_v16, 0.0  ;;  %v13773_v24 = vadd.f32 %v6155_v32, %v16524_v37  ;;  %v6698_v1 = vld [vmem:[#allocation3 + $0x90] sm:$0xff] }
 0x3ae   :  { %v6540_v34 = vld [vmem:[#allocation2 + $0x150] ss:$2 sm:$0xff]  ;;  %v6604_v33 = vld [vmem:[#allocation2 + $0x151] ss:$2 sm:$0xff]  ;;  %6481 = vst.msk [vmem:[#allocation2 + $0x178] sm:$0xff] %vm6433_vm2, %v6416_v30  ;;  %v6354_v62 = vadd.f32 %v13772_v61, %v17025_v41 }
 0x3af   :  { %v6646_v35 = vmax.f32 %v6540_v34, %v6604_v33  ;;  %6480 = vst.msk [vmem:[#allocation2 + $0x170] sm:$0xff] %vm6433_vm2, %v6415_v18  ;;  %v6353_v8 = vadd.f32 %v13773_v24, %v17025_v41  ;;  %v13292_v9 = vpop.f32.mrb[50].mxu0  ;;  %v18087_v18 = vld [vmem:[#allocation15_spill] sm:$0xff] }
 0x3b0   :  { %v6418_v36 = vmax.f32 %v6354_v62, 0.0  ;;  %v13774_v27 = vadd.f32 %v13292_v9, %v18081_v31  ;;  %v6165_v50 = vpop.f32.mrb[51].mxu0  ;;  %v6715_v42 = vld [vmem:[#allocation3 + $0x98] sm:$0xff]  ;;  %v18088_v62 = vld [vmem:[#allocation44_spill] sm:$0xff] }
 0x3b1   :  { %6678 = vst.msk [vmem:[#allocation3 + $0xa8] sm:$0xff] %vm6433_vm2, %v6646_v35  ;;  %v6417_v37 = vmax.f32 %v6353_v8, 0.0  ;;  %v13775_v29 = vadd.f32 %v6165_v50, %v18082_v12  ;;  %v6731_v60 = vmax.f32 %v6698_v1, %v6715_v42  ;;  %v18089_v42 = vld [vmem:[#allocation16_spill] sm:$0xff] }
 0x3b2   :  { %v6542_v40 = vld [vmem:[#allocation2 + $0x160] ss:$2 sm:$0xff]  ;;  %v6606_v15 = vld [vmem:[#allocation2 + $0x161] ss:$2 sm:$0xff]  ;;  %6483 = vst.msk [vmem:[#allocation2 + $0x188] sm:$0xff] %vm6433_vm2, %v6418_v36  ;;  %v6356_v7 = vadd.f32 %v13774_v27, %v17025_v41  ;;  %v17249_v21 = vld [vmem:[#allocation4 + $0x110] sm:$0xff] }
 0x3b3   :  { %v6647_v51 = vmax.f32 %v6542_v40, %v6606_v15  ;;  %6482 = vst.msk [vmem:[#allocation2 + $0x180] sm:$0xff] %vm6433_vm2, %v6417_v37  ;;  %v6355_v56 = vadd.f32 %v13775_v29, %v17025_v41  ;;  %v13295_v6 = vpop.f32.mrb[52].mxu0  ;;  %13326 = vmatmul.mubr.msk.f32.gmra.mrb[72].mxu1 %vm6433_vm2, %v17249_v21  ;;  %6809 = vst.msk [vmem:[#allocation4 + $0x128] sm:$0xff] %vm6433_vm2, %v6731_v60  ;;  %v18090_v15 = vld [vmem:[#allocation46_spill] sm:$0xff] }
 0x3b4   :  { %v6420_v5 = vmax.f32 %v6356_v7, 0.0  ;;  %v13776_v49 = vadd.f32 %v13295_v6, %v18083_v53  ;;  %v6175_v54 = vpop.f32.mrb[53].mxu0  ;;  %v6699_v28 = vld [vmem:[#allocation3 + $0xa0] sm:$0xff] }
 0x3b5   :  { %6679 = vst.msk [vmem:[#allocation3 + $0xb0] sm:$0xff] %vm6433_vm2, %v6647_v51  ;;  %v6419_v43 = vmax.f32 %v6355_v56, 0.0  ;;  %v13777_v23 = vadd.f32 %v6175_v54, %v18084_v0 }
 0x3b6   :  { %v6544_v55 = vld [vmem:[#allocation2 + $0x170] ss:$2 sm:$0xff]  ;;  %v6608_v52 = vld [vmem:[#allocation2 + $0x171] ss:$2 sm:$0xff]  ;;  %6485 = vst.msk [vmem:[#allocation2 + $0x198] sm:$0xff] %vm6433_vm2, %v6420_v5  ;;  %v6358_v44 = vadd.f32 %v13776_v49, %v17025_v41 }
 0x3b7   :  { %v6648_v57 = vmax.f32 %v6544_v55, %v6608_v52  ;;  %6484 = vst.msk [vmem:[#allocation2 + $0x190] sm:$0xff] %vm6433_vm2, %v6419_v43  ;;  %v6357_v26 = vadd.f32 %v13777_v23, %v17025_v41  ;;  %v13298_v46 = vpop.f32.mrb[54].mxu0  ;;  %v18091_v23 = vld [vmem:[#allocation17_spill] sm:$0xff] }
 0x3b8   :  { %v6422_v63 = vmax.f32 %v6358_v44, 0.0  ;;  %v13778_v14 = vadd.f32 %v13298_v46, %v18085_v48  ;;  %v6185_v10 = vpop.f32.mrb[55].mxu0  ;;  %v6716_v45 = vld [vmem:[#allocation3 + $0xa8] sm:$0xff] }
 0x3b9   :  { %6680 = vst.msk [vmem:[#allocation3 + $0xb8] sm:$0xff] %vm6433_vm2, %v6648_v57  ;;  %v6421_v3 = vmax.f32 %v6357_v26, 0.0  ;;  %v13779_v58 = vadd.f32 %v6185_v10, %v18086_v17  ;;  %v6732_v11 = vmax.f32 %v6699_v28, %v6716_v45  ;;  %v18092_v57 = vld [vmem:[#allocation48_spill] sm:$0xff] }
 0x3ba   :  { %v6546_v20 = vld [vmem:[#allocation2 + $0x180] ss:$2 sm:$0xff]  ;;  %v6610_v22 = vld [vmem:[#allocation2 + $0x181] ss:$2 sm:$0xff]  ;;  %6487 = vst.msk [vmem:[#allocation2 + $0x1a8] sm:$0xff] %vm6433_vm2, %v6422_v63  ;;  %v6360_v25 = vadd.f32 %v13778_v14, %v17025_v41 }
 0x3bb   :  { %v17268_v16 = vld [vmem:[#allocation4 + $0x128] sm:$0xff]  ;;  %v6649_v38 = vmax.f32 %v6546_v20, %v6610_v22  ;;  %6486 = vst.msk [vmem:[#allocation2 + $0x1a0] sm:$0xff] %vm6433_vm2, %v6421_v3  ;;  %v6359_v30 = vadd.f32 %v13779_v58, %v17025_v41  ;;  %v13301_v61 = vpop.f32.mrb[56].mxu0  ;;  %6810 = vst.msk [vmem:[#allocation4 + $0x140] sm:$0xff] %vm6433_vm2, %v6732_v11  ;;  %v18093_v3 = vld [vmem:[#allocation18_spill] sm:$0xff] }
 0x3bc   :  { %13328 = vmatprep.mubr.msk.f32.mxu1 %vm6433_vm2, %v17268_v16  ;;  %v6424_v32 = vmax.f32 %v6360_v25, 0.0  ;;  %v13780_v24 = vadd.f32 %v13301_v61, %v18087_v18  ;;  %v6195_v34 = vpop.f32.mrb[57].mxu0  ;;  %v6700_v29 = vld [vmem:[#allocation3 + $0xb0] sm:$0xff]  ;;  %v18094_v25 = vld [vmem:[#allocation50_spill] sm:$0xff] }
 0x3bd   :  { %6681 = vst.msk [vmem:[#allocation3 + $0xc0] sm:$0xff] %vm6433_vm2, %v6649_v38  ;;  %v6423_v33 = vmax.f32 %v6359_v30, 0.0  ;;  %v13781_v35 = vadd.f32 %v6195_v34, %v18088_v62 }
 0x3be   :  { %v6548_v8 = vld [vmem:[#allocation2 + $0x190] ss:$2 sm:$0xff]  ;;  %v6612_v9 = vld [vmem:[#allocation2 + $0x191] ss:$2 sm:$0xff]  ;;  %6489 = vst.msk [vmem:[#allocation2 + $0x1b8] sm:$0xff] %vm6433_vm2, %v6424_v32  ;;  %v6362_v36 = vadd.f32 %v13780_v24, %v17025_v41 }
 0x3bf   :  { %v6650_v31 = vmax.f32 %v6548_v8, %v6612_v9  ;;  %6488 = vst.msk [vmem:[#allocation2 + $0x1b0] sm:$0xff] %vm6433_vm2, %v6423_v33  ;;  %v6361_v27 = vadd.f32 %v13781_v35, %v17025_v41  ;;  %v13304_v50 = vpop.f32.mrb[58].mxu0 }
 0x3c0   :  { %v6426_v1 = vmax.f32 %v6362_v36, 0.0  ;;  %v13782_v37 = vadd.f32 %v13304_v50, %v18089_v42  ;;  %v6205_v12 = vpop.f32.mrb[59].mxu0  ;;  %v6717_v60 = vld [vmem:[#allocation3 + $0xb8] sm:$0xff] }
 0x3c1   :  { %6682 = vst.msk [vmem:[#allocation3 + $0xc8] sm:$0xff] %vm6433_vm2, %v6650_v31  ;;  %v6425_v40 = vmax.f32 %v6361_v27, 0.0  ;;  %v13783_v7 = vadd.f32 %v6205_v12, %v18090_v15  ;;  %v6733_v51 = vmax.f32 %v6700_v29, %v6717_v60 }
 0x3c2   :  { %v6550_v56 = vld [vmem:[#allocation2 + $0x1a0] ss:$2 sm:$0xff]  ;;  %v6614_v6 = vld [vmem:[#allocation2 + $0x1a1] ss:$2 sm:$0xff]  ;;  %6491 = vst.msk [vmem:[#allocation2 + $0x1c8] sm:$0xff] %vm6433_vm2, %v6426_v1  ;;  %v6364_v5 = vadd.f32 %v13782_v37, %v17025_v41 }
 0x3c3   :  { %v17287_v53 = vld [vmem:[#allocation4 + $0x140] sm:$0xff]  ;;  %v6651_v49 = vmax.f32 %v6550_v56, %v6614_v6  ;;  %6490 = vst.msk [vmem:[#allocation2 + $0x1c0] sm:$0xff] %vm6433_vm2, %v6425_v40  ;;  %v6363_v54 = vadd.f32 %v13783_v7, %v17025_v41  ;;  %v13307_v43 = vpop.f32.mrb[60].mxu0  ;;  %6811 = vst.msk [vmem:[#allocation4 + $0x158] sm:$0xff] %vm6433_vm2, %v6733_v51 }
 0x3c4   :  { %13329 = vmatmul.mubr.msk.f32.gmra.mrb[74].mxu1 %vm6433_vm2, %v17287_v53  ;;  %v6428_v0 = vmax.f32 %v6364_v5, 0.0  ;;  %v13784_v55 = vadd.f32 %v13307_v43, %v18091_v23  ;;  %v6215_v52 = vpop.f32.mrb[61].mxu0  ;;  %v6701_v11 = vld [vmem:[#allocation3 + $0xc0] sm:$0xff]  ;;  %v17342_v23 = vld [vmem:[#allocation4 + $0x37] sm:$0xff] }
 0x3c5   :  { %6683 = vst.msk [vmem:[#allocation3 + $0xd0] sm:$0xff] %vm6433_vm2, %v6651_v49  ;;  %v6427_v44 = vmax.f32 %v6363_v54, 0.0  ;;  %v13785_v26 = vadd.f32 %v6215_v52, %v18092_v57  ;;  %v6816_v5 = vld [vmem:[#allocation4 + $0x7] sm:$0xff]  ;;  %v17335_v43 = vld [vmem:[#allocation4 + $0x1f] sm:$0xff]  ;;  %v17359_v57 = vld [vmem:[#allocation4 + $0x97] sm:$0xff] }
 0x3c6   :  { %v6552_v46 = vld [vmem:[#allocation2 + $0x1b0] ss:$2 sm:$0xff]  ;;  %v6616_v63 = vld [vmem:[#allocation2 + $0x1b1] ss:$2 sm:$0xff]  ;;  %6493 = vst.msk [vmem:[#allocation2 + $0x1d8] sm:$0xff] %vm6433_vm2, %v6428_v0  ;;  %v6366_v48 = vadd.f32 %v13784_v55, %v17025_v41  ;;  %v17351_v52 = vld [vmem:[#allocation4 + $0x67] sm:$0xff] }
 0x3c7   :  { %v6652_v14 = vmax.f32 %v6552_v46, %v6616_v63  ;;  %6492 = vst.msk [vmem:[#allocation2 + $0x1d0] sm:$0xff] %vm6433_vm2, %v6427_v44  ;;  %v6365_v10 = vadd.f32 %v13785_v26, %v17025_v41  ;;  %v13310_v28 = vpop.f32.mrb[62].mxu0  ;;  %v11486_v0 = vld [vmem:[%s17925_s3 + $0x18] sm:$0xff]  ;;  %v17347_v55 = vld [vmem:[#allocation4 + $0x4f] sm:$0xff]  ;;  %v17369_v63 = vld [vmem:[#allocation4 + $0x127] sm:$0xff] }
 0x3c8   :  { %v6430_v45 = vmax.f32 %v6366_v48, 0.0  ;;  %v13786_v17 = vadd.f32 %v13310_v28, %v18093_v3  ;;  %v6225_v58 = vpop.f32.mrb[63].mxu0  ;;  %v6718_v20 = vld [vmem:[#allocation3 + $0xc8] sm:$0xff]  ;;  %v17355_v44 = vld [vmem:[#allocation4 + $0x7f] sm:$0xff] }
 0x3c9   :  { %6684 = vst.msk [vmem:[#allocation3 + $0xd8] sm:$0xff] %vm6433_vm2, %v6652_v14  ;;  %v6429_v22 = vmax.f32 %v6365_v10, 0.0  ;;  %v13787_v38 = vadd.f32 %v6225_v58, %v18094_v25  ;;  %v6734_v30 = vmax.f32 %v6701_v11, %v6718_v20  ;;  %v17363_v26 = vld [vmem:[#allocation4 + $0xaf] sm:$0xff]  ;;  %v17373_v48 = vld [vmem:[#allocation4 + $0x13f] sm:$0xff] }
 0x3ca   :  { %v6554_v61 = vld [vmem:[#allocation2 + $0x1c0] ss:$2 sm:$0xff]  ;;  %v6618_v32 = vld [vmem:[#allocation2 + $0x1c1] ss:$2 sm:$0xff]  ;;  %6495 = vst.msk [vmem:[#allocation2 + $0x1e8] sm:$0xff] %vm6433_vm2, %v6430_v45  ;;  %v6368_v18 = vadd.f32 %v13786_v17, %v17025_v41  ;;  %v17306_v24 = vld [vmem:[#allocation4 + $0x158] sm:$0xff] }
 0x3cb   :  { %v6653_v34 = vmax.f32 %v6554_v61, %v6618_v32  ;;  %6494 = vst.msk [vmem:[#allocation2 + $0x1e0] sm:$0xff] %vm6433_vm2, %v6429_v22  ;;  %v6367_v33 = vadd.f32 %v13787_v38, %v17025_v41  ;;  %13331 = vmatprep.mubr.msk.f32.mxu1 %vm6433_vm2, %v17306_v24  ;;  %6812 = vst.msk [vmem:[#allocation4 + $0x170] sm:$0xff] %vm6433_vm2, %v6734_v30  ;;  %v6825_v46 = vld [vmem:[#allocation4 + $0x10f] sm:$0xff]  ;;  %v17377_v14 = vld [vmem:[#allocation4 + $0x157] sm:$0xff] }
 0x3cc   :  { %v6432_v62 = vmax.f32 %v6368_v18, 0.0  ;;  %v6702_v31 = vld [vmem:[#allocation3 + $0xd0] sm:$0xff]  ;;  %v17394_v17 = vld [vmem:[#allocation4 + $0x21] sm:$0xff]  ;;  %v17401_v11 = vld [vmem:[#allocation4 + $0x39] sm:$0xff] }
 0x3cd   :  { %6685 = vst.msk [vmem:[#allocation3 + $0xe0] sm:$0xff] %vm6433_vm2, %v6653_v34  ;;  %v6431_v35 = vmax.f32 %v6367_v33, 0.0  ;;  %v7237_v45 = vld [vmem:[#allocation4 + $0x9] sm:$0xff]  ;;  %v11503_v58 = vld [vmem:[%s17925_s3 + $0x20] sm:$0xff]  ;;  %v17405_v20 = vld [vmem:[#allocation4 + $0x51] sm:$0xff] }
 0x3ce   :  { %v6556_v8 = vld [vmem:[#allocation2 + $0x1d0] ss:$2 sm:$0xff]  ;;  %v6620_v9 = vld [vmem:[#allocation2 + $0x1d1] ss:$2 sm:$0xff]  ;;  %6497 = vst.msk [vmem:[#allocation2 + $0x1f8] sm:$0xff] %vm6433_vm2, %v6432_v62  ;;  %v17413_v25 = vld [vmem:[#allocation4 + $0x81] sm:$0xff] }
 0x3cf   :  { %v6654_v36 = vmax.f32 %v6556_v8, %v6620_v9  ;;  %6496 = vst.msk [vmem:[#allocation2 + $0x1f0] sm:$0xff] %vm6433_vm2, %v6431_v35  ;;  %v17409_v22 = vld [vmem:[#allocation4 + $0x69] sm:$0xff]  ;;  %v17417_v38 = vld [vmem:[#allocation4 + $0x99] sm:$0xff]  ;;  %v17421_v61 = vld [vmem:[#allocation4 + $0xb1] sm:$0xff] }
 0x3d0   :  { %v6719_v27 = vld [vmem:[#allocation3 + $0xd8] sm:$0xff]  ;;  %v17430_v18 = vld [vmem:[#allocation4 + $0x129] sm:$0xff]  ;;  %v17434_v34 = vld [vmem:[#allocation4 + $0x141] sm:$0xff] }
 0x3d1   :  { %6686 = vst.msk [vmem:[#allocation3 + $0xe8] sm:$0xff] %vm6433_vm2, %v6654_v36  ;;  %v6735_v41 = vmax.f32 %v6702_v31, %v6719_v27  ;;  %v7245_v30 = vld [vmem:[#allocation4 + $0xf9] sm:$0xff]  ;;  %v17426_v32 = vld [vmem:[#allocation4 + $0x111] sm:$0xff]  ;;  %v11520_v9 = vld [vmem:[%s17925_s3 + $0x28] sm:$0xff] }
 0x3d2   :  { %v6558_v50 = vld [vmem:[#allocation2 + $0x1e0] ss:$2 sm:$0xff]  ;;  %v6622_v1 = vld [vmem:[#allocation2 + $0x1e1] ss:$2 sm:$0xff]  ;;  %v17317_v42 = vld [vmem:[#allocation4 + $0x170] sm:$0xff] }
 0x3d3   :  { %v6655_v37 = vmax.f32 %v6558_v50, %v6622_v1  ;;  %13332 = vmatmul.mubr.msk.f32.gmra.mrb[76].mxu1 %vm6433_vm2, %v17317_v42  ;;  %6813 = vst.msk [vmem:[#allocation4 + $0x188] sm:$0xff] %vm6433_vm2, %v6735_v41  ;;  %v17381_v10 = vld [vmem:[#allocation4 + $0x16f] sm:$0xff]  ;;  %v17438_v33 = vld [vmem:[#allocation4 + $0x159] sm:$0xff]  ;;  %v17471_v36 = vld [vmem:[#allocation4 + $0xc7] sm:$0xff] }
 0x3d4   :  { %v6703_v40 = vld [vmem:[#allocation3 + $0xe0] sm:$0xff]  ;;  %v17442_v62 = vld [vmem:[#allocation4 + $0x171] sm:$0xff]  ;;  %v17508_v50 = vld [vmem:[#allocation4 + $0xc8] sm:$0xff] }
 0x3d5   :  { %6687 = vst.msk [vmem:[#allocation3 + $0xf0] sm:$0xff] %vm6433_vm2, %v6655_v37  ;;  %v7691_v27 = vld [vmem:[#allocation4 + $0x20] sm:$0xff]  ;;  %v11537_v41 = vld [vmem:[%s17925_s3 + $0x30] sm:$0xff] }
 0x3d6   :  { %v6560_v12 = vld [vmem:[#allocation2 + $0x1f0] ss:$2 sm:$0xff]  ;;  %v6624_v29 = vld [vmem:[#allocation2 + $0x1f1] ss:$2 sm:$0xff]  ;;  %v11571_v1 = vld [vmem:[%s17925_s3 + $0x40] sm:$0xff] }
 0x3d7   :  { %v6656_v60 = vmax.f32 %v6560_v12, %v6624_v29  ;;  %v8153_v37 = vld [vmem:[#allocation4 + $0xdf] sm:$0xff]  ;;  %v8161_v12 = vld [vmem:[#allocation4 + $0x1cf] sm:$0xff] }
 0x3d8   :  { %v6720_v15 = vld [vmem:[#allocation3 + $0xe8] sm:$0xff]  ;;  %v8373_v29 = vld [vmem:[#allocation4 + $0x38] sm:$0xff] }
 0x3d9   :  { %6688 = vst.msk [vmem:[#allocation3 + $0xf8] sm:$0xff] %vm6433_vm2, %v6656_v60  ;;  %v6736_v7 = vmax.f32 %v6703_v40, %v6720_v15  ;;  %v8374_v60 = vld [vmem:[#allocation4 + $0x50] sm:$0xff]  ;;  %v8375_v40 = vld [vmem:[#allocation4 + $0x68] sm:$0xff]  ;;  %v8380_v15 = vld [vmem:[#allocation4 + $0xe0] sm:$0xff] }
 0x3da   :  { %v17324_v51 = vld [vmem:[#allocation4 + $0x188] sm:$0xff] }
 0x3db   :  { %13334 = vmatprep.mubr.msk.f32.mxu1 %vm6433_vm2, %v17324_v51  ;;  %6814 = vst.msk [vmem:[#allocation4 + $0x1a0] sm:$0xff] %vm6433_vm2, %v6736_v7  ;;  %v17385_v28 = vld [vmem:[#allocation4 + $0x187] sm:$0xff]  ;;  %v18095_v7 = vmov 0.0  }
 0x3dc   :  { %v6704_v56 = vld [vmem:[#allocation3 + $0xf0] sm:$0xff] }
 0x3dd   :  { %v17446_v35 = vld [vmem:[#allocation4 + $0x189] sm:$0xff] }
 0x3e0   :  { %v6721_v6 = vld [vmem:[#allocation3 + $0xf8] sm:$0xff] }
 0x3e1   :  { %v6737_v49 = vmax.f32 %v6704_v56, %v6721_v6 }
 0x3e2   :  { %v17329_v54 = vld [vmem:[#allocation4 + $0x1a0] sm:$0xff] }
 0x3e3   :  { %13335 = vmatmul.mubr.msk.f32.gmra.mrb[78].mxu1 %vm6433_vm2, %v17329_v54  ;;  %6815 = vst.msk [vmem:[#allocation4 + $0x1b8] sm:$0xff] %vm6433_vm2, %v6737_v49  ;;  %v17389_v3 = vld [vmem:[#allocation4 + $0x19f] sm:$0xff] }
 0x3e4   :  { %13339 = vmatprep.mubr.msk.f32.mxu1 %vm6433_vm2, %v6816_v5  ;;  %v17450_v8 = vld [vmem:[#allocation4 + $0x1a1] sm:$0xff] }
 0x3e7   :  { %13340 = vmatmul.mubr.msk.f32.vlgmr.msra.gmra.mrb[64].mxu1 %vm6433_vm2, %v17335_v43 }
 0x3e8   :  { %13342 = vmatprep.mubr.msk.f32.mxu1 %vm6433_vm2, %v17342_v23  ;;  %13364 = vmatpush3.msra.mxu1 %v17097_v4  ;;  %v6824_v4 = vld [vmem:[#allocation4 + $0xf7] sm:$0xff] }
 0x3e9   :  { %13389 = vmatprep.subr.mxu1 %v11486_v0 }
 0x3ea   :  { %v17488_v31 = vld [vmem:[#allocation4 + $0x1b7] sm:$0xff] }
 0x3eb   :  { %13343 = vmatmul.mubr.msk.f32.gmra.mrb[66].mxu1 %vm6433_vm2, %v17347_v55 }
 0x3ec   :  { %13345 = vmatprep.mubr.msk.f32.mxu1 %vm6433_vm2, %v17351_v52 }
 0x3ef   :  { %13346 = vmatmul.mubr.msk.f32.gmra.mrb[68].mxu1 %vm6433_vm2, %v17355_v44 }
 0x3f0   :  { %13348 = vmatprep.mubr.msk.f32.mxu1 %vm6433_vm2, %v17359_v57 }
 0x3f3   :  { %13349 = vmatmul.mubr.msk.f32.gmra.mrb[70].mxu1 %vm6433_vm2, %v17363_v26 }
 0x3f4   :  { %13351 = vmatprep.mubr.msk.f32.mxu1 %vm6433_vm2, %v6824_v4 }
 0x3f7   :  { %13352 = vmatmul.mubr.msk.f32.gmra.mrb[72].mxu1 %vm6433_vm2, %v6825_v46 }
 0x3f8   :  { %13354 = vmatprep.mubr.msk.f32.mxu1 %vm6433_vm2, %v17369_v63 }
 0x3fb   :  { %13355 = vmatmul.mubr.msk.f32.gmra.mrb[74].mxu1 %vm6433_vm2, %v17373_v48 }
 0x3fc   :  { %13357 = vmatprep.mubr.msk.f32.mxu1 %vm6433_vm2, %v17377_v14 }
 0x3ff   :  { %13358 = vmatmul.mubr.msk.f32.gmra.mrb[76].mxu1 %vm6433_vm2, %v17381_v10 }
 0x400   :  { %13360 = vmatprep.mubr.msk.f32.mxu1 %vm6433_vm2, %v17385_v28 }
 0x403   :  { %13361 = vmatmul.mubr.msk.f32.gmra.mrb[78].mxu1 %vm6433_vm2, %v17389_v3 }
 0x404   :  { %13365 = vmatprep.mubr.msk.f32.mxu1 %vm6433_vm2, %v7237_v45 }
 0x407   :  { %13366 = vmatmul.mubr.msk.f32.vlgmr.msra.gmra.mrb[64].mxu1 %vm6433_vm2, %v17394_v17 }
 0x408   :  { %13368 = vmatprep.mubr.msk.f32.mxu1 %vm6433_vm2, %v17401_v11  ;;  %13390 = vmatpush3.msra.mxu1 %v11486_v0 }
 0x409   :  { %13415 = vmatprep.subr.mxu1 %v11503_v58 }
 0x40b   :  { %13369 = vmatmul.mubr.msk.f32.gmra.mrb[66].mxu1 %vm6433_vm2, %v17405_v20 }
 0x40c   :  { %13371 = vmatprep.mubr.msk.f32.mxu1 %vm6433_vm2, %v17409_v22 }
 0x40f   :  { %13372 = vmatmul.mubr.msk.f32.gmra.mrb[68].mxu1 %vm6433_vm2, %v17413_v25 }
 0x410   :  { %13374 = vmatprep.mubr.msk.f32.mxu1 %vm6433_vm2, %v17417_v38 }
 0x413   :  { %13375 = vmatmul.mubr.msk.f32.gmra.mrb[70].mxu1 %vm6433_vm2, %v17421_v61 }
 0x414   :  { %13377 = vmatprep.mubr.msk.f32.mxu1 %vm6433_vm2, %v7245_v30 }
 0x417   :  { %13378 = vmatmul.mubr.msk.f32.gmra.mrb[72].mxu1 %vm6433_vm2, %v17426_v32 }
 0x418   :  { %13380 = vmatprep.mubr.msk.f32.mxu1 %vm6433_vm2, %v17430_v18 }
 0x41b   :  { %13381 = vmatmul.mubr.msk.f32.gmra.mrb[74].mxu1 %vm6433_vm2, %v17434_v34 }
 0x41c   :  { %13383 = vmatprep.mubr.msk.f32.mxu1 %vm6433_vm2, %v17438_v33 }
 0x41f   :  { %13384 = vmatmul.mubr.msk.f32.gmra.mrb[76].mxu1 %vm6433_vm2, %v17442_v62 }
 0x420   :  { %13386 = vmatprep.mubr.msk.f32.mxu1 %vm6433_vm2, %v17446_v35 }
 0x423   :  { %13387 = vmatmul.mubr.msk.f32.gmra.mrb[78].mxu1 %vm6433_vm2, %v17450_v8 }
 0x424   :  { %13391 = vmatprep.mubr.msk.f32.mxu1 %vm6433_vm2, %v17335_v43 }
 0x427   :  { %13392 = vmatmul.mubr.msk.f32.vlgmr.msra.gmra.mrb[64].mxu1 %vm6433_vm2, %v17342_v23 }
 0x428   :  { %13394 = vmatprep.mubr.msk.f32.mxu1 %vm6433_vm2, %v17347_v55  ;;  %13416 = vmatpush3.msra.mxu1 %v11503_v58 }
 0x429   :  { %13441 = vmatprep.subr.mxu1 %v11520_v9 }
 0x42b   :  { %13395 = vmatmul.mubr.msk.f32.gmra.mrb[66].mxu1 %vm6433_vm2, %v17351_v52 }
 0x42c   :  { %13397 = vmatprep.mubr.msk.f32.mxu1 %vm6433_vm2, %v17355_v44 }
 0x42f   :  { %13398 = vmatmul.mubr.msk.f32.gmra.mrb[68].mxu1 %vm6433_vm2, %v17359_v57 }
 0x430   :  { %13400 = vmatprep.mubr.msk.f32.mxu1 %vm6433_vm2, %v17363_v26 }
 0x433   :  { %13401 = vmatmul.mubr.msk.f32.gmra.mrb[70].mxu1 %vm6433_vm2, %v17471_v36 }
 0x434   :  { %13403 = vmatprep.mubr.msk.f32.mxu1 %vm6433_vm2, %v6825_v46 }
 0x437   :  { %13404 = vmatmul.mubr.msk.f32.gmra.mrb[72].mxu1 %vm6433_vm2, %v17369_v63 }
 0x438   :  { %13406 = vmatprep.mubr.msk.f32.mxu1 %vm6433_vm2, %v17373_v48 }
 0x43b   :  { %13407 = vmatmul.mubr.msk.f32.gmra.mrb[74].mxu1 %vm6433_vm2, %v17377_v14 }
 0x43c   :  { %13409 = vmatprep.mubr.msk.f32.mxu1 %vm6433_vm2, %v17381_v10 }
 0x43f   :  { %13410 = vmatmul.mubr.msk.f32.gmra.mrb[76].mxu1 %vm6433_vm2, %v17385_v28 }
 0x440   :  { %13412 = vmatprep.mubr.msk.f32.mxu1 %vm6433_vm2, %v17389_v3 }
 0x443   :  { %13413 = vmatmul.mubr.msk.f32.gmra.mrb[78].mxu1 %vm6433_vm2, %v17488_v31 }
 0x444   :  { %13417 = vmatprep.mubr.msk.f32.mxu1 %vm6433_vm2, %v7691_v27 }
 0x447   :  { %13418 = vmatmul.mubr.msk.f32.vlgmr.msra.gmra.mrb[64].mxu1 %vm6433_vm2, %v17119_v2  ;;  %v17526_v2 = vld [vmem:[#allocation4 + $0x1b8] sm:$0xff] }
 0x448   :  { %13420 = vmatprep.mubr.msk.f32.mxu1 %vm6433_vm2, %v17138_v19  ;;  %13442 = vmatpush3.msra.mxu1 %v11520_v9  ;;  %v11554_v19 = vld [vmem:[%s17925_s3 + $0x38] sm:$0xff] }
 0x449   :  { %13467 = vmatprep.subr.mxu1 %v11537_v41 }
 0x44b   :  { %13421 = vmatmul.mubr.msk.f32.gmra.mrb[66].mxu1 %vm6433_vm2, %v17157_v59  ;;  %v7925_v59 = vld [vmem:[#allocation4 + $0xc9] sm:$0xff] }
 0x44c   :  { %13423 = vmatprep.mubr.msk.f32.mxu1 %vm6433_vm2, %v17176_v13 }
 0x44f   :  { %13424 = vmatmul.mubr.msk.f32.gmra.mrb[68].mxu1 %vm6433_vm2, %v17195_v47 }
 0x450   :  { %13426 = vmatprep.mubr.msk.f32.mxu1 %vm6433_vm2, %v17214_v39 }
 0x453   :  { %13427 = vmatmul.mubr.msk.f32.gmra.mrb[70].mxu1 %vm6433_vm2, %v17508_v50 }
 0x454   :  { %13429 = vmatprep.mubr.msk.f32.mxu1 %vm6433_vm2, %v17249_v21  ;;  %v7933_v21 = vld [vmem:[#allocation4 + $0x1b9] sm:$0xff] }
 0x457   :  { %13430 = vmatmul.mubr.msk.f32.gmra.mrb[72].mxu1 %vm6433_vm2, %v17268_v16 }
 0x458   :  { %13432 = vmatprep.mubr.msk.f32.mxu1 %vm6433_vm2, %v17287_v53 }
 0x45b   :  { %13433 = vmatmul.mubr.msk.f32.gmra.mrb[74].mxu1 %vm6433_vm2, %v17306_v24 }
 0x45c   :  { %13435 = vmatprep.mubr.msk.f32.mxu1 %vm6433_vm2, %v17317_v42 }
 0x45f   :  { %13436 = vmatmul.mubr.msk.f32.gmra.mrb[76].mxu1 %vm6433_vm2, %v17324_v51 }
 0x460   :  { %13438 = vmatprep.mubr.msk.f32.mxu1 %vm6433_vm2, %v17329_v54 }
 0x463   :  { %13439 = vmatmul.mubr.msk.f32.gmra.mrb[78].mxu1 %vm6433_vm2, %v17526_v2 }
 0x464   :  { %13443 = vmatprep.mubr.msk.f32.mxu1 %vm6433_vm2, %v17394_v17 }
 0x467   :  { %13444 = vmatmul.mubr.msk.f32.vlgmr.msra.gmra.mrb[64].mxu1 %vm6433_vm2, %v17401_v11 }
 0x468   :  { %13446 = vmatprep.mubr.msk.f32.mxu1 %vm6433_vm2, %v17405_v20  ;;  %13468 = vmatpush3.msra.mxu1 %v11537_v41 }
 0x469   :  { %13493 = vmatprep.subr.mxu1 %v11554_v19 }
 0x46b   :  { %13447 = vmatmul.mubr.msk.f32.gmra.mrb[66].mxu1 %vm6433_vm2, %v17409_v22 }
 0x46c   :  { %13449 = vmatprep.mubr.msk.f32.mxu1 %vm6433_vm2, %v17413_v25 }
 0x46f   :  { %13450 = vmatmul.mubr.msk.f32.gmra.mrb[68].mxu1 %vm6433_vm2, %v17417_v38 }
 0x470   :  { %13452 = vmatprep.mubr.msk.f32.mxu1 %vm6433_vm2, %v17421_v61 }
 0x473   :  { %13453 = vmatmul.mubr.msk.f32.gmra.mrb[70].mxu1 %vm6433_vm2, %v7925_v59 }
 0x474   :  { %13455 = vmatprep.mubr.msk.f32.mxu1 %vm6433_vm2, %v17426_v32 }
 0x477   :  { %13456 = vmatmul.mubr.msk.f32.gmra.mrb[72].mxu1 %vm6433_vm2, %v17430_v18 }
 0x478   :  { %13458 = vmatprep.mubr.msk.f32.mxu1 %vm6433_vm2, %v17434_v34 }
 0x47b   :  { %13459 = vmatmul.mubr.msk.f32.gmra.mrb[74].mxu1 %vm6433_vm2, %v17438_v33 }
 0x47c   :  { %13461 = vmatprep.mubr.msk.f32.mxu1 %vm6433_vm2, %v17442_v62 }
 0x47f   :  { %13462 = vmatmul.mubr.msk.f32.gmra.mrb[76].mxu1 %vm6433_vm2, %v17446_v35 }
 0x480   :  { %13464 = vmatprep.mubr.msk.f32.mxu1 %vm6433_vm2, %v17450_v8 }
 0x483   :  { %13465 = vmatmul.mubr.msk.f32.gmra.mrb[78].mxu1 %vm6433_vm2, %v7933_v21 }
 0x484   :  { %13469 = vmatprep.mubr.msk.f32.mxu1 %vm6433_vm2, %v17342_v23 }
 0x487   :  { %13470 = vmatmul.mubr.msk.f32.vlgmr.msra.gmra.mrb[64].mxu1 %vm6433_vm2, %v17347_v55 }
 0x488   :  { %13472 = vmatprep.mubr.msk.f32.mxu1 %vm6433_vm2, %v17351_v52  ;;  %13494 = vmatpush3.msra.mxu1 %v11554_v19 }
 0x489   :  { %13519 = vmatprep.subr.mxu1 %v11571_v1 }
 0x48b   :  { %13473 = vmatmul.mubr.msk.f32.gmra.mrb[66].mxu1 %vm6433_vm2, %v17355_v44 }
 0x48c   :  { %13475 = vmatprep.mubr.msk.f32.mxu1 %vm6433_vm2, %v17359_v57 }
 0x48f   :  { %13476 = vmatmul.mubr.msk.f32.gmra.mrb[68].mxu1 %vm6433_vm2, %v17363_v26 }
 0x490   :  { %13478 = vmatprep.mubr.msk.f32.mxu1 %vm6433_vm2, %v17471_v36 }
 0x493   :  { %13479 = vmatmul.mubr.msk.f32.gmra.mrb[70].mxu1 %vm6433_vm2, %v8153_v37 }
 0x494   :  { %13481 = vmatprep.mubr.msk.f32.mxu1 %vm6433_vm2, %v17369_v63 }
 0x497   :  { %13482 = vmatmul.mubr.msk.f32.gmra.mrb[72].mxu1 %vm6433_vm2, %v17373_v48 }
 0x498   :  { %13484 = vmatprep.mubr.msk.f32.mxu1 %vm6433_vm2, %v17377_v14 }
 0x49b   :  { %13485 = vmatmul.mubr.msk.f32.gmra.mrb[74].mxu1 %vm6433_vm2, %v17381_v10 }
 0x49c   :  { %13487 = vmatprep.mubr.msk.f32.mxu1 %vm6433_vm2, %v17385_v28 }
 0x49f   :  { %13488 = vmatmul.mubr.msk.f32.gmra.mrb[76].mxu1 %vm6433_vm2, %v17389_v3 }
 0x4a0   :  { %13490 = vmatprep.mubr.msk.f32.mxu1 %vm6433_vm2, %v17488_v31 }
 0x4a3   :  { %13491 = vmatmul.mubr.msk.f32.gmra.mrb[78].mxu1 %vm6433_vm2, %v8161_v12 }
 0x4a4   :  { %13495 = vmatprep.mubr.msk.f32.mxu1 %vm6433_vm2, %v8373_v29 }
 0x4a7   :  { %13496 = vmatmul.mubr.msk.f32.vlgmr.msra.gmra.mrb[64].mxu1 %vm6433_vm2, %v8374_v60 }
 0x4a8   :  { %13498 = vmatprep.mubr.msk.f32.mxu1 %vm6433_vm2, %v8375_v40  ;;  %13520 = vmatpush3.msra.mxu1 %v11571_v1 }
 0x4ab   :  { %13499 = vmatmul.mubr.msk.f32.gmra.mrb[66].mxu1 %vm6433_vm2, %v17176_v13  ;;  %v8388_v13 = vld [vmem:[#allocation4 + $0x1d0] sm:$0xff] }
 0x4ac   :  { %13501 = vmatprep.mubr.msk.f32.mxu1 %vm6433_vm2, %v17195_v47  ;;  %v8607_v47 = vld [vmem:[#allocation4 + $0xe1] sm:$0xff] }
 0x4af   :  { %13502 = vmatmul.mubr.msk.f32.gmra.mrb[68].mxu1 %vm6433_vm2, %v17214_v39  ;;  %v8615_v39 = vld [vmem:[#allocation4 + $0x1d1] sm:$0xff] }
 0x4b0   :  { %13504 = vmatprep.mubr.msk.f32.mxu1 %vm6433_vm2, %v17508_v50 }
 0x4b3   :  { %13505 = vmatmul.mubr.msk.f32.gmra.mrb[70].mxu1 %vm6433_vm2, %v8380_v15 }
 0x4b4   :  { %13507 = vmatprep.mubr.msk.f32.mxu1 %vm6433_vm2, %v17268_v16  ;;  %v11589_v16 = vld [vmem:[%s17927_s5 + $0x10] sm:$0xff] }
 0x4b7   :  { %13508 = vmatmul.mubr.msk.f32.gmra.mrb[72].mxu1 %vm6433_vm2, %v17287_v53  ;;  %v11590_v53 = vld [vmem:[%s17927_s5 + $0x18] sm:$0xff] }
 0x4b8   :  { %13510 = vmatprep.mubr.msk.f32.mxu1 %vm6433_vm2, %v17306_v24  ;;  %v14400_v24 = vmov 0.0|0.0  }
 0x4b9   :  { %13668 = vmatprep.subr.bf16.mxu1 %v14400_v24 }
 0x4bb   :  { %13511 = vmatmul.mubr.msk.f32.gmra.mrb[74].mxu1 %vm6433_vm2, %v17317_v42  ;;  %v13669_v42 = vpack.c.bf16 %v11590_v53, %v11589_v16 }
 0x4bc   :  { %13513 = vmatprep.mubr.msk.f32.mxu1 %vm6433_vm2, %v17324_v51  ;;  %v17664_v51 = vld [vmem:[%s17926_s4] ss:$0 sm:$0xff] }
 0x4bf   :  { %13514 = vmatmul.mubr.msk.f32.gmra.mrb[76].mxu1 %vm6433_vm2, %v17329_v54 }
 0x4c0   :  { %13516 = vmatprep.mubr.msk.f32.mxu1 %vm6433_vm2, %v17526_v2 }
 0x4c3   :  { %13517 = vmatmul.mubr.msk.f32.gmra.mrb[78].mxu1 %vm6433_vm2, %v8388_v13 }
 0x4c4   :  { %13521 = vmatprep.mubr.msk.f32.mxu1 %vm6433_vm2, %v17401_v11 }
 0x4c7   :  { %13522 = vmatmul.mubr.msk.f32.vlgmr.msra.gmra.mrb[64].mxu1 %vm6433_vm2, %v17405_v20 }
 0x4c8   :  { %13524 = vmatprep.mubr.msk.f32.mxu1 %vm6433_vm2, %v17409_v22  ;;  %13670 = vmatpush3.bf16.msra.mxu1 %v13669_v42 }
 0x4c9   :  { %13671 = vmatprep.subr.bf16.mxu1 %v14400_v24 }
 0x4cb   :  { %13525 = vmatmul.mubr.msk.f32.gmra.mrb[66].mxu1 %vm6433_vm2, %v17413_v25 }
 0x4cc   :  { %13527 = vmatprep.mubr.msk.f32.mxu1 %vm6433_vm2, %v17417_v38 }
 0x4cf   :  { %13528 = vmatmul.mubr.msk.f32.gmra.mrb[68].mxu1 %vm6433_vm2, %v17421_v61 }
 0x4d0   :  { %13530 = vmatprep.mubr.msk.f32.mxu1 %vm6433_vm2, %v7925_v59 }
 0x4d3   :  { %13531 = vmatmul.mubr.msk.f32.gmra.mrb[70].mxu1 %vm6433_vm2, %v8607_v47 }
 0x4d4   :  { %13533 = vmatprep.mubr.msk.f32.mxu1 %vm6433_vm2, %v17430_v18 }
 0x4d7   :  { %13534 = vmatmul.mubr.msk.f32.gmra.mrb[72].mxu1 %vm6433_vm2, %v17434_v34 }
 0x4d8   :  { %13536 = vmatprep.mubr.msk.f32.mxu1 %vm6433_vm2, %v17438_v33 }
 0x4db   :  { %13537 = vmatmul.mubr.msk.f32.gmra.mrb[74].mxu1 %vm6433_vm2, %v17442_v62 }
 0x4dc   :  { %13539 = vmatprep.mubr.msk.f32.mxu1 %vm6433_vm2, %v17446_v35 }
 0x4df   :  { %13540 = vmatmul.mubr.msk.f32.gmra.mrb[76].mxu1 %vm6433_vm2, %v17450_v8 }
 0x4e0   :  { %13542 = vmatprep.mubr.msk.f32.mxu1 %vm6433_vm2, %v7933_v21 }
 0x4e3   :  { %13543 = vmatmul.mubr.msk.f32.gmra.mrb[78].mxu1 %vm6433_vm2, %v8615_v39 }
 0x4e4   :  { %13549 = vmatprep.mubr.msk.f32.mxu1 %vm14401_vm4, %v18095_v7 }
 0x59a   :  { %v13523_v56 = vpop.f32.mrb[64].mxu1 }
 0x59b   :  { %v8835_v6 = vadd.f32 %v13523_v56, %v17664_v51  ;;  %v8732_v5 = vpop.f32.mrb[65].mxu1 }
 0x59c   :  { %v8834_v49 = vadd.f32 %v17664_v51, %v8732_v5 }
 0x59d   :  { %v8851_v54 = vmax.f32 %v8835_v6, 0.0 }
 0x59e   :  { %v8850_v43 = vmax.f32 %v8834_v49, 0.0  ;;  %v13526_v0 = vpop.f32.mrb[66].mxu1 }
 0x59f   :  { %8868 = vst.msk [vmem:[#allocation5 + $0x8] sm:$0xff] %vm8866_vm5, %v8851_v54  ;;  %v8837_v23 = vadd.f32 %v13526_v0, %v17664_v51  ;;  %v8742_v55 = vpop.f32.mrb[67].mxu1 }
 0x5a0   :  { %8867 = vst.msk [vmem:[#allocation5] sm:$0xff] %vm8866_vm5, %v8850_v43  ;;  %v8836_v52 = vadd.f32 %v17664_v51, %v8742_v55 }
 0x5a1   :  { %v8853_v44 = vmax.f32 %v8837_v23, 0.0 }
 0x5a2   :  { %v8852_v57 = vmax.f32 %v8836_v52, 0.0  ;;  %v13529_v4 = vpop.f32.mrb[68].mxu1 }
 0x5a3   :  { %8870 = vst.msk [vmem:[#allocation5 + $0x18] sm:$0xff] %vm8866_vm5, %v8853_v44  ;;  %v8839_v26 = vadd.f32 %v13529_v4, %v17664_v51  ;;  %v8752_v46 = vpop.f32.mrb[69].mxu1 }
 0x5a4   :  { %8869 = vst.msk [vmem:[#allocation5 + $0x10] sm:$0xff] %vm8866_vm5, %v8852_v57  ;;  %v8838_v63 = vadd.f32 %v17664_v51, %v8752_v46 }
 0x5a5   :  { %v8855_v48 = vmax.f32 %v8839_v26, 0.0 }
 0x5a6   :  { %v8854_v14 = vmax.f32 %v8838_v63, 0.0  ;;  %v13532_v10 = vpop.f32.mrb[70].mxu1 }
 0x5a7   :  { %v8883_v28 = vld [vmem:[#allocation5] ss:$2 sm:$0xff]  ;;  %v8899_v45 = vld [vmem:[#allocation5 + $0x1] ss:$2 sm:$0xff]  ;;  %8872 = vst.msk [vmem:[#allocation5 + $0x28] sm:$0xff] %vm8866_vm5, %v8855_v48  ;;  %v8841_v3 = vadd.f32 %v13532_v10, %v17664_v51  ;;  %v8762_v17 = vpop.f32.mrb[71].mxu1 }
 0x5a8   :  { %v8914_v58 = vmax.f32 %v8883_v28, %v8899_v45  ;;  %8871 = vst.msk [vmem:[#allocation5 + $0x20] sm:$0xff] %vm8866_vm5, %v8854_v14  ;;  %v8840_v11 = vadd.f32 %v17664_v51, %v8762_v17 }
 0x5a9   :  { %v8857_v20 = vmax.f32 %v8841_v3, 0.0 }
 0x5aa   :  { %v8930_v22 = vcombine.high %v8914_v58, %v8914_v58  ;;  %8947 = vst.msk [vmem:[#allocation6] sm:$0xf] %vm8946_vm6, %v8914_v58  ;;  %v8856_v25 = vmax.f32 %v8840_v11, 0.0  ;;  %v13535_v38 = vpop.f32.mrb[72].mxu1 }
 0x5ab   :  { %v8885_v30 = vld [vmem:[#allocation5 + $0x10] ss:$2 sm:$0xff]  ;;  %v8901_v61 = vld [vmem:[#allocation5 + $0x11] ss:$2 sm:$0xff]  ;;  %8874 = vst.msk [vmem:[#allocation5 + $0x38] sm:$0xff] %vm8866_vm5, %v8857_v20  ;;  %v8843_v32 = vadd.f32 %v13535_v38, %v17664_v51  ;;  %v8772_v18 = vpop.f32.mrb[73].mxu1 }
 0x5ac   :  { %8948 = vst.msk [vmem:[#allocation6 + $0x4] sm:$0xf] %vm8946_vm6, %v8930_v22  ;;  %v8915_v34 = vmax.f32 %v8885_v30, %v8901_v61  ;;  %v8842_v33 = vadd.f32 %v17664_v51, %v8772_v18 }
 0x5ad   :  { %8873 = vst.msk [vmem:[#allocation5 + $0x30] sm:$0xff] %vm8866_vm5, %v8856_v25  ;;  %v8859_v62 = vmax.f32 %v8843_v32, 0.0 }
 0x5ae   :  { %v8931_v35 = vcombine.high %v8915_v34, %v8915_v34  ;;  %8949 = vst.msk [vmem:[#allocation6 + $0x8] sm:$0xf] %vm8946_vm6, %v8915_v34  ;;  %v8858_v8 = vmax.f32 %v8842_v33, 0.0  ;;  %v13538_v9 = vpop.f32.mrb[74].mxu1 }
 0x5af   :  { %v8887_v36 = vld [vmem:[#allocation5 + $0x20] ss:$2 sm:$0xff]  ;;  %v8903_v31 = vld [vmem:[#allocation5 + $0x21] ss:$2 sm:$0xff]  ;;  %8876 = vst.msk [vmem:[#allocation5 + $0x48] sm:$0xff] %vm8866_vm5, %v8859_v62  ;;  %v8845_v27 = vadd.f32 %v13538_v9, %v17664_v51  ;;  %v8782_v41 = vpop.f32.mrb[75].mxu1 }
 0x5b0   :  { %8950 = vst.msk [vmem:[#allocation6 + $0xc] sm:$0xf] %vm8946_vm6, %v8931_v35  ;;  %v8916_v50 = vmax.f32 %v8887_v36, %v8903_v31  ;;  %v8844_v2 = vadd.f32 %v17664_v51, %v8782_v41  ;;  %v8998_v35 = vld [vmem:[%s17927_s5] sm:$0xff] }
 0x5b1   :  { %8875 = vst.msk [vmem:[#allocation5 + $0x40] sm:$0xff] %vm8866_vm5, %v8858_v8  ;;  %v8861_v19 = vmax.f32 %v8845_v27, 0.0  ;;  %v8963_v13 = vld [vmem:[#allocation6] sm:$0xf]  ;;  %v8999_v8 = vld [vmem:[%s17927_s5 + $0x8] sm:$0xff] }
 0x5b2   :  { %v8932_v59 = vcombine.high %v8916_v50, %v8916_v50  ;;  %8951 = vst.msk [vmem:[#allocation6 + $0x10] sm:$0xf] %vm8946_vm6, %v8916_v50  ;;  %v8860_v21 = vmax.f32 %v8844_v2, 0.0  ;;  %v13541_v1 = vpop.f32.mrb[76].mxu1  ;;  %v13672_v2 = vpack.c.bf16 %v8999_v8, %v8998_v35  ;;  %v11614_v35 = vld [vmem:[%s17927_s5 + $0x90] sm:$0xff]  ;;  %v11615_v8 = vld [vmem:[%s17927_s5 + $0x98] sm:$0xff] }
 0x5b3   :  { %8878 = vst.msk [vmem:[#allocation5 + $0x58] sm:$0xff] %vm8866_vm5, %v8861_v19  ;;  %v8847_v29 = vadd.f32 %v13541_v1, %v17664_v51  ;;  %v8792_v60 = vpop.f32.mrb[77].mxu1  ;;  %v8972_v47 = vld [vmem:[#allocation6 + $0x4] sm:$0xf] }
 0x5b4   :  { %v8889_v37 = vld [vmem:[#allocation5 + $0x30] ss:$2 sm:$0xff]  ;;  %v8905_v12 = vld [vmem:[#allocation5 + $0x31] ss:$2 sm:$0xff]  ;;  %8952 = vst.msk [vmem:[#allocation6 + $0x14] sm:$0xf] %vm8946_vm6, %v8932_v59  ;;  %v8846_v15 = vadd.f32 %v17664_v51, %v8792_v60  ;;  %v8980_v16 = vmax.f32 %v8963_v13, %v8972_v47 }
 0x5b5   :  { %v8917_v40 = vmax.f32 %v8889_v37, %v8905_v12  ;;  %8877 = vst.msk [vmem:[#allocation5 + $0x50] sm:$0xff] %vm8866_vm5, %v8860_v21  ;;  %v8863_v39 = vmax.f32 %v8847_v29, 0.0  ;;  %v8964_v23 = vld [vmem:[#allocation6 + $0x8] sm:$0xf]  ;;  %v11593_v19 = vld [vmem:[%s17927_s5 + $0x20] sm:$0xff]  ;;  %v11596_v47 = vld [vmem:[%s17927_s5 + $0x30] sm:$0xff] }
 0x5b6   :  { %v8862_v42 = vmax.f32 %v8846_v15, 0.0  ;;  %v13544_v56 = vpop.f32.mrb[78].mxu1  ;;  %8988 = vst.msk [vmem:[#allocation7] sm:$0xf] %vm8946_vm6, %v8980_v16  ;;  %v11594_v59 = vld [vmem:[%s17927_s5 + $0x28] sm:$0xff] }
 0x5b7   :  { %v8933_v53 = vcombine.high %v8917_v40, %v8917_v40  ;;  %8953 = vst.msk [vmem:[#allocation6 + $0x18] sm:$0xf] %vm8946_vm6, %v8917_v40  ;;  %v8849_v49 = vadd.f32 %v13544_v56, %v17664_v51  ;;  %v8802_v54 = vpop.f32.mrb[79].mxu1  ;;  %v8973_v55 = vld [vmem:[#allocation6 + $0xc] sm:$0xf]  ;;  %v13675_v15 = vpack.c.bf16 %v11594_v59, %v11593_v19 }
 0x5b8   :  { %v8891_v6 = vld [vmem:[#allocation5 + $0x40] ss:$2 sm:$0xff]  ;;  %v8907_v5 = vld [vmem:[#allocation5 + $0x41] ss:$2 sm:$0xff]  ;;  %8880 = vst.msk [vmem:[#allocation5 + $0x68] sm:$0xff] %vm8866_vm5, %v8863_v39  ;;  %8879 = vst.msk [vmem:[#allocation5 + $0x60] sm:$0xff] %vm8866_vm5, %v8862_v42  ;;  %v8848_v0 = vadd.f32 %v17664_v51, %v8802_v54  ;;  %v8981_v44 = vmax.f32 %v8964_v23, %v8973_v55 }
 0x5b9   :  { %8954 = vst.msk [vmem:[#allocation6 + $0x1c] sm:$0xf] %vm8946_vm6, %v8933_v53  ;;  %v8918_v43 = vmax.f32 %v8891_v6, %v8907_v5  ;;  %v8865_v52 = vmax.f32 %v8849_v49, 0.0  ;;  %v8965_v26 = vld [vmem:[#allocation6 + $0x10] sm:$0xf]  ;;  %v11597_v39 = vld [vmem:[%s17927_s5 + $0x38] sm:$0xff] }
 0x5ba   :  { %v8864_v4 = vmax.f32 %v8848_v0, 0.0  ;;  %8989 = vst.msk [vmem:[#allocation7 + $0x4] sm:$0xf] %vm8946_vm6, %v8981_v44  ;;  %v13678_v56 = vpack.c.bf16 %v11597_v39, %v11596_v47  ;;  %v11599_v5 = vld [vmem:[%s17927_s5 + $0x40] sm:$0xff]  ;;  %v11600_v49 = vld [vmem:[%s17927_s5 + $0x48] sm:$0xff]  ;;  %v11603_v44 = vld [vmem:[%s17927_s5 + $0x58] sm:$0xff] }
 0x5bb   :  { %v8934_v57 = vcombine.high %v8918_v43, %v8918_v43  ;;  %8955 = vst.msk [vmem:[#allocation6 + $0x20] sm:$0xf] %vm8946_vm6, %v8918_v43  ;;  %v8974_v48 = vld [vmem:[#allocation6 + $0x14] sm:$0xf]  ;;  %v13681_v23 = vpack.c.bf16 %v11600_v49, %v11599_v5  ;;  %v11623_v39 = vld [vmem:[%s17927_s5 + $0xc0] sm:$0xff] }
 0x5bc   :  { %v8893_v46 = vld [vmem:[#allocation5 + $0x50] ss:$2 sm:$0xff]  ;;  %v8909_v63 = vld [vmem:[#allocation5 + $0x51] ss:$2 sm:$0xff]  ;;  %8882 = vst.msk [vmem:[#allocation5 + $0x78] sm:$0xff] %vm8866_vm5, %v8865_v52  ;;  %8881 = vst.msk [vmem:[#allocation5 + $0x70] sm:$0xff] %vm8866_vm5, %v8864_v4  ;;  %v8982_v51 = vmax.f32 %v8965_v26, %v8974_v48 }
 0x5bd   :  { %8956 = vst.msk [vmem:[#allocation6 + $0x24] sm:$0xf] %vm8946_vm6, %v8934_v57  ;;  %v8919_v14 = vmax.f32 %v8893_v46, %v8909_v63  ;;  %v9000_v21 = vld [vmem:[#allocation7 + $0x1] sm:$0x1]  ;;  %v8996_v13 = vld [vmem:[#allocation7] sm:$0x1] }
 0x5be   :  { %8990 = vst.msk [vmem:[#allocation7 + $0x8] sm:$0xf] %vm8946_vm6, %v8982_v51  ;;  %v8966_v17 = vld [vmem:[#allocation6 + $0x18] sm:$0xf]  ;;  %v9158_v6 = vld [vmem:[#allocation7 + $0x2] sm:$0x1] }
 0x5bf   :  { %v8935_v10 = vcombine.high %v8919_v14, %v8919_v14  ;;  %8957 = vst.msk [vmem:[#allocation6 + $0x28] sm:$0xf] %vm8946_vm6, %v8919_v14  ;;  %v8895_v28 = vld [vmem:[#allocation5 + $0x60] ss:$2 sm:$0xff]  ;;  %v8911_v45 = vld [vmem:[#allocation5 + $0x61] ss:$2 sm:$0xff] }
 0x5c0   :  { %v8920_v3 = vmax.f32 %v8895_v28, %v8911_v45  ;;  %v8975_v58 = vld [vmem:[#allocation6 + $0x1c] sm:$0xf]  ;;  %v9240_v55 = vld [vmem:[#allocation7 + $0x3] sm:$0x1]  ;;  %v11602_v52 = vld [vmem:[%s17927_s5 + $0x50] sm:$0xff] }
 0x5c1   :  { %8958 = vst.msk [vmem:[#allocation6 + $0x2c] sm:$0xf] %vm8946_vm6, %v8935_v10  ;;  %v8983_v11 = vmax.f32 %v8966_v17, %v8975_v58  ;;  %v13684_v46 = vpack.c.bf16 %v11603_v44, %v11602_v52  ;;  %v9323_v63 = vld [vmem:[#allocation7 + $0x4] sm:$0x1]  ;;  %v11606_v14 = vld [vmem:[%s17927_s5 + $0x68] sm:$0xff]  ;;  %v11608_v17 = vld [vmem:[%s17927_s5 + $0x70] sm:$0xff] }
 0x5c2   :  { %v8936_v20 = vcombine.high %v8920_v3, %v8920_v3  ;;  %8959 = vst.msk [vmem:[#allocation6 + $0x30] sm:$0xf] %vm8946_vm6, %v8920_v3  ;;  %v8967_v22 = vld [vmem:[#allocation6 + $0x20] sm:$0xf]  ;;  %v9405_v3 = vld [vmem:[#allocation7 + $0x5] sm:$0x1] }
 0x5c3   :  { %v8897_v25 = vld [vmem:[#allocation5 + $0x70] ss:$2 sm:$0xff]  ;;  %v8913_v38 = vld [vmem:[#allocation5 + $0x71] ss:$2 sm:$0xff]  ;;  %8991 = vst.msk [vmem:[#allocation7 + $0xc] sm:$0xf] %vm8946_vm6, %v8983_v11 }
 0x5c4   :  { %v8976_v30 = vld [vmem:[#allocation6 + $0x24] sm:$0xf]  ;;  %8960 = vst.msk [vmem:[#allocation6 + $0x34] sm:$0xf] %vm8946_vm6, %v8936_v20  ;;  %v8921_v61 = vmax.f32 %v8897_v25, %v8913_v38  ;;  %v11609_v58 = vld [vmem:[%s17927_s5 + $0x78] sm:$0xff]  ;;  %v11626_v49 = vld [vmem:[%s17927_s5 + $0xd0] sm:$0xff] }
 0x5c5   :  { %v8984_v32 = vmax.f32 %v8967_v22, %v8976_v30  ;;  %v11605_v48 = vld [vmem:[%s17927_s5 + $0x60] sm:$0xff]  ;;  %v13690_v25 = vpack.c.bf16 %v11609_v58, %v11608_v17  ;;  %v9816_v47 = vld [vmem:[#allocation7 + $0xa] sm:$0x1]  ;;  %v9898_v5 = vld [vmem:[#allocation7 + $0xb] sm:$0x1] }
 0x5c6   :  { %v8937_v18 = vcombine.high %v8921_v61, %v8921_v61  ;;  %8961 = vst.msk [vmem:[#allocation6 + $0x38] sm:$0xf] %vm8946_vm6, %v8921_v61  ;;  %v8968_v34 = vld [vmem:[#allocation6 + $0x28] sm:$0xf]  ;;  %v13687_v45 = vpack.c.bf16 %v11606_v14, %v11605_v48  ;;  %v9487_v38 = vld [vmem:[#allocation7 + $0x6] sm:$0x1] }
 0x5c7   :  { %8992 = vst.msk [vmem:[#allocation7 + $0x10] sm:$0xf] %vm8946_vm6, %v8984_v32  ;;  %v11611_v30 = vld [vmem:[%s17927_s5 + $0x80] sm:$0xff]  ;;  %v11612_v61 = vld [vmem:[%s17927_s5 + $0x88] sm:$0xff]  ;;  %v11632_v14 = vld [vmem:[%s17927_s5 + $0xf0] sm:$0xff] }
 0x5c8   :  { %v8977_v33 = vld [vmem:[#allocation6 + $0x2c] sm:$0xf]  ;;  %8962 = vst.msk [vmem:[#allocation6 + $0x3c] sm:$0xf] %vm8946_vm6, %v8937_v18  ;;  %v11629_v44 = vld [vmem:[%s17927_s5 + $0xe0] sm:$0xff] }
 0x5c9   :  { %v8985_v62 = vmax.f32 %v8968_v34, %v8977_v33  ;;  %v8969_v9 = vld [vmem:[#allocation6 + $0x30] sm:$0xf]  ;;  %v13693_v33 = vpack.c.bf16 %v11612_v61, %v11611_v30 }
 0x5ca   :  { %v9981_v52 = vld [vmem:[#allocation7 + $0xc] sm:$0x1]  ;;  %v10063_v48 = vld [vmem:[#allocation7 + $0xd] sm:$0x1]  ;;  %v10145_v17 = vld [vmem:[#allocation7 + $0xe] sm:$0x1] }
 0x5cb   :  { %8993 = vst.msk [vmem:[#allocation7 + $0x14] sm:$0xf] %vm8946_vm6, %v8985_v62  ;;  %v8978_v36 = vld [vmem:[#allocation6 + $0x34] sm:$0xf]  ;;  %v9569_v62 = vld [vmem:[#allocation7 + $0x7] sm:$0x1] }
 0x5cc   :  { %v8986_v31 = vmax.f32 %v8969_v9, %v8978_v36  ;;  %v10319_v61 = vld [vmem:[%s17929_s7 + $0x10] sm:$0xff] }
 0x5cd   :  { %v8970_v1 = vld [vmem:[#allocation6 + $0x38] sm:$0xf] }
 0x5ce   :  { %v9001_v27 = vld [vmem:[#allocation7 + $0x11] sm:$0x1]  ;;  %v8997_v41 = vld [vmem:[#allocation7 + $0x10] sm:$0x1]  ;;  %8994 = vst.msk [vmem:[#allocation7 + $0x18] sm:$0xf] %vm8946_vm6, %v8986_v31 }
 0x5cf   :  { %v9007_v50 = vrot.slane %v9001_v27, 7  ;;  %v8979_v37 = vld [vmem:[#allocation6 + $0x3c] sm:$0xf]  ;;  %v9084_v29 = vrot.slane %v8997_v41, 7  ;;  %v9159_v40 = vld [vmem:[#allocation7 + $0x12] sm:$0x1]  ;;  %v13696_v27 = vpack.c.bf16 %v11615_v8, %v11614_v35 }
 0x5d0   :  { %v8987_v60 = vmax.f32 %v8970_v1, %v8979_v37  ;;  %v9165_v53 = vrot.slane %v9159_v40, 7  ;;  %v9241_v42 = vld [vmem:[#allocation7 + $0x13] sm:$0x1]  ;;  %v9652_v41 = vld [vmem:[#allocation7 + $0x8] sm:$0x1] }
 0x5d1   :  { %v9009_v12 = vsel %vm9008_vm7, %v9007_v50, %v9000_v21  ;;  %v9085_v16 = vsel %vm9008_vm7, %v9084_v29, %v8996_v13  ;;  %v9247_v43 = vrot.slane %v9241_v42, 7  ;;  %v11617_v50 = vld [vmem:[%s17927_s5 + $0xa0] sm:$0xff]  ;;  %v9734_v37 = vld [vmem:[#allocation7 + $0x9] sm:$0x1]  ;;  %v11621_v29 = vld [vmem:[%s17927_s5 + $0xb8] sm:$0xff] }
 0x5d2   :  { %13550 = vmatmul.mubr.msk.f32.vlgmr.msra.gmra.mrb[80].mxu1 %vm8866_vm5, %v9009_v12  ;;  %8995 = vst.msk [vmem:[#allocation7 + $0x1c] sm:$0xf] %vm8946_vm6, %v8987_v60  ;;  %v9166_v54 = vsel %vm9008_vm7, %v9165_v53, %v9158_v6  ;;  %v9324_v0 = vld [vmem:[#allocation7 + $0x14] sm:$0x1]  ;;  %v9406_v26 = vld [vmem:[#allocation7 + $0x15] sm:$0x1] }
 0x5d3   :  { %13673 = vmatpush3.bf16.msra.mxu1 %v13672_v2  ;;  %13556 = vmatprep.mubr.msk.f32.mxu1 %vm14401_vm4, %v18095_v7  ;;  %v9248_v57 = vsel %vm9008_vm7, %v9247_v43, %v9240_v55  ;;  %v9330_v4 = vrot.slane %v9324_v0, 7  ;;  %v9412_v10 = vrot.slane %v9406_v26, 7  ;;  %v9488_v28 = vld [vmem:[#allocation7 + $0x16] sm:$0x1]  ;;  %v9570_v22 = vld [vmem:[#allocation7 + $0x17] sm:$0x1] }
 0x5d4   :  { %13674 = vmatprep.subr.bf16.mxu1 %v14400_v24  ;;  %v9494_v20 = vrot.slane %v9488_v28, 7  ;;  %v9576_v18 = vrot.slane %v9570_v22, 7  ;;  %v11618_v2 = vld [vmem:[%s17927_s5 + $0xa8] sm:$0xff]  ;;  %v11620_v12 = vld [vmem:[%s17927_s5 + $0xb0] sm:$0xff] }
 0x5d5   :  { %v9331_v51 = vsel %vm9008_vm7, %v9330_v4, %v9323_v63  ;;  %v9413_v11 = vsel %vm9008_vm7, %v9412_v10, %v9405_v3  ;;  %v9653_v34 = vld [vmem:[#allocation7 + $0x18] sm:$0x1]  ;;  %v9735_v31 = vld [vmem:[#allocation7 + $0x19] sm:$0x1]  ;;  %v9817_v21 = vld [vmem:[#allocation7 + $0x1a] sm:$0x1]  ;;  %v13699_v1 = vpack.c.bf16 %v11618_v2, %v11617_v50  ;;  %v13702_v13 = vpack.c.bf16 %v11621_v29, %v11620_v12 }
 0x5d6   :  { %13557 = vmatmul.mubr.msk.f32.vlgmr.msra.gmra.mrb[82].mxu1 %vm8866_vm5, %v9085_v16  ;;  %v9495_v32 = vsel %vm9008_vm7, %v9494_v20, %v9487_v38  ;;  %v9577_v9 = vsel %vm9008_vm7, %v9576_v18, %v9569_v62  ;;  %v9659_v36 = vrot.slane %v9653_v34, 7  ;;  %v9741_v59 = vrot.slane %v9735_v31, 7  ;;  %v11624_v16 = vld [vmem:[%s17927_s5 + $0xc8] sm:$0xff] }
 0x5d7   :  { %13676 = vmatpush3.bf16.msra.mxu1 %v13675_v15  ;;  %13563 = vmatprep.mubr.msk.f32.mxu1 %vm14401_vm4, %v18095_v7  ;;  %v9823_v40 = vrot.slane %v9817_v21, 7  ;;  %v9899_v15 = vld [vmem:[#allocation7 + $0x1b] sm:$0x1]  ;;  %v13705_v6 = vpack.c.bf16 %v11624_v16, %v11623_v39  ;;  %v10227_v20 = vld [vmem:[#allocation7 + $0xf] sm:$0x1] }
 0x5d8   :  { %13677 = vmatprep.subr.bf16.mxu1 %v14400_v24  ;;  %v9660_v19 = vsel %vm9008_vm7, %v9659_v36, %v9652_v41  ;;  %v9742_v60 = vsel %vm9008_vm7, %v9741_v59, %v9734_v37  ;;  %v9905_v42 = vrot.slane %v9899_v15, 7  ;;  %v10318_v38 = vld [vmem:[%s17929_s7 + $0x8] sm:$0xff] }
 0x5d9   :  { %v9824_v53 = vsel %vm9008_vm7, %v9823_v40, %v9816_v47 }
 0x5da   :  { %13564 = vmatmul.mubr.msk.f32.vlgmr.msra.gmra.mrb[84].mxu1 %vm8866_vm5, %v9166_v54  ;;  %v11627_v54 = vld [vmem:[%s17927_s5 + $0xd8] sm:$0xff]  ;;  %v9906_v43 = vsel %vm9008_vm7, %v9905_v42, %v9898_v5 }
 0x5db   :  { %13679 = vmatpush3.bf16.msra.mxu1 %v13678_v56  ;;  %13570 = vmatprep.mubr.msk.f32.mxu1 %vm14401_vm4, %v18095_v7  ;;  %v9982_v56 = vld [vmem:[#allocation7 + $0x1c] sm:$0x1]  ;;  %v13708_v55 = vpack.c.bf16 %v11627_v54, %v11626_v49 }
 0x5dc   :  { %13680 = vmatprep.subr.bf16.mxu1 %v14400_v24  ;;  %v9988_v0 = vrot.slane %v9982_v56, 7 }
 0x5de   :  { %13571 = vmatmul.mubr.msk.f32.vlgmr.msra.gmra.mrb[86].mxu1 %vm8866_vm5, %v9248_v57  ;;  %v11630_v57 = vld [vmem:[%s17927_s5 + $0xe8] sm:$0xff]  ;;  %v9989_v4 = vsel %vm9008_vm7, %v9988_v0, %v9981_v52 }
 0x5df   :  { %13682 = vmatpush3.bf16.msra.mxu1 %v13681_v23  ;;  %13577 = vmatprep.mubr.msk.f32.mxu1 %vm14401_vm4, %v18095_v7  ;;  %v10064_v23 = vld [vmem:[#allocation7 + $0x1d] sm:$0x1]  ;;  %v13711_v63 = vpack.c.bf16 %v11630_v57, %v11629_v44 }
 0x5e0   :  { %13683 = vmatprep.subr.bf16.mxu1 %v14400_v24  ;;  %v10070_v26 = vrot.slane %v10064_v23, 7 }
 0x5e2   :  { %13578 = vmatmul.mubr.msk.f32.vlgmr.msra.gmra.mrb[88].mxu1 %vm8866_vm5, %v9331_v51  ;;  %v11633_v51 = vld [vmem:[%s17927_s5 + $0xf8] sm:$0xff]  ;;  %v10071_v10 = vsel %vm9008_vm7, %v10070_v26, %v10063_v48 }
 0x5e3   :  { %13685 = vmatpush3.bf16.msra.mxu1 %v13684_v46  ;;  %13584 = vmatprep.mubr.msk.f32.mxu1 %vm14401_vm4, %v18095_v7  ;;  %v10146_v46 = vld [vmem:[#allocation7 + $0x1e] sm:$0x1]  ;;  %v13714_v3 = vpack.c.bf16 %v11633_v51, %v11632_v14 }
 0x5e4   :  { %13686 = vmatprep.subr.bf16.mxu1 %v14400_v24  ;;  %v10152_v28 = vrot.slane %v10146_v46, 7 }
 0x5e6   :  { %13585 = vmatmul.mubr.msk.f32.vlgmr.msra.gmra.mrb[90].mxu1 %vm8866_vm5, %v9413_v11  ;;  %v10153_v58 = vsel %vm9008_vm7, %v10152_v28, %v10145_v17 }
 0x5e7   :  { %13688 = vmatpush3.bf16.msra.mxu1 %v13687_v45  ;;  %13591 = vmatprep.mubr.msk.f32.mxu1 %vm14401_vm4, %v18095_v7  ;;  %v10228_v45 = vld [vmem:[#allocation7 + $0x1f] sm:$0x1] }
 0x5e8   :  { %13689 = vmatprep.subr.bf16.mxu1 %v14400_v24  ;;  %v10234_v11 = vrot.slane %v10228_v45, 7 }
 0x5ea   :  { %13592 = vmatmul.mubr.msk.f32.vlgmr.msra.gmra.mrb[92].mxu1 %vm8866_vm5, %v9495_v32  ;;  %v10235_v22 = vsel %vm9008_vm7, %v10234_v11, %v10227_v20 }
 0x5eb   :  { %13691 = vmatpush3.bf16.msra.mxu1 %v13690_v25  ;;  %13598 = vmatprep.mubr.msk.f32.mxu1 %vm14401_vm4, %v18095_v7  ;;  %v10317_v25 = vld [vmem:[%s17929_s7] sm:$0xff] }
 0x5ec   :  { %13692 = vmatprep.subr.bf16.mxu1 %v14400_v24  ;;  %v13717_v30 = vpack.c.bf16 %v10318_v38, %v10317_v25 }
 0x5ee   :  { %13599 = vmatmul.mubr.msk.f32.vlgmr.msra.gmra.mrb[94].mxu1 %vm8866_vm5, %v9577_v9 }
 0x5ef   :  { %13694 = vmatpush3.bf16.msra.mxu1 %v13693_v33  ;;  %13605 = vmatprep.mubr.msk.f32.mxu1 %vm14401_vm4, %v18095_v7 }
 0x5f0   :  { %13695 = vmatprep.subr.bf16.mxu1 %v14400_v24 }
 0x5f2   :  { %13606 = vmatmul.mubr.msk.f32.vlgmr.msra.gmra.mrb[96].mxu1 %vm8866_vm5, %v9660_v19 }
 0x5f3   :  { %13697 = vmatpush3.bf16.msra.mxu1 %v13696_v27  ;;  %13612 = vmatprep.mubr.msk.f32.mxu1 %vm14401_vm4, %v18095_v7 }
 0x5f4   :  { %13698 = vmatprep.subr.bf16.mxu1 %v14400_v24 }
 0x5f6   :  { %13613 = vmatmul.mubr.msk.f32.vlgmr.msra.gmra.mrb[98].mxu1 %vm8866_vm5, %v9742_v60 }
 0x5f7   :  { %13700 = vmatpush3.bf16.msra.mxu1 %v13699_v1  ;;  %13619 = vmatprep.mubr.msk.f32.mxu1 %vm14401_vm4, %v18095_v7 }
 0x5f8   :  { %13701 = vmatprep.subr.bf16.mxu1 %v14400_v24 }
 0x5fa   :  { %13620 = vmatmul.mubr.msk.f32.vlgmr.msra.gmra.mrb[100].mxu1 %vm8866_vm5, %v9824_v53 }
 0x5fb   :  { %13703 = vmatpush3.bf16.msra.mxu1 %v13702_v13  ;;  %13626 = vmatprep.mubr.msk.f32.mxu1 %vm14401_vm4, %v18095_v7 }
 0x5fc   :  { %13704 = vmatprep.subr.bf16.mxu1 %v14400_v24 }
 0x5fe   :  { %13627 = vmatmul.mubr.msk.f32.vlgmr.msra.gmra.mrb[102].mxu1 %vm8866_vm5, %v9906_v43 }
 0x5ff   :  { %13706 = vmatpush3.bf16.msra.mxu1 %v13705_v6  ;;  %13633 = vmatprep.mubr.msk.f32.mxu1 %vm14401_vm4, %v18095_v7 }
 0x600   :  { %13707 = vmatprep.subr.bf16.mxu1 %v14400_v24 }
 0x602   :  { %13634 = vmatmul.mubr.msk.f32.vlgmr.msra.gmra.mrb[104].mxu1 %vm8866_vm5, %v9989_v4 }
 0x603   :  { %13709 = vmatpush3.bf16.msra.mxu1 %v13708_v55  ;;  %13640 = vmatprep.mubr.msk.f32.mxu1 %vm14401_vm4, %v18095_v7 }
 0x604   :  { %13710 = vmatprep.subr.bf16.mxu1 %v14400_v24 }
 0x606   :  { %13641 = vmatmul.mubr.msk.f32.vlgmr.msra.gmra.mrb[106].mxu1 %vm8866_vm5, %v10071_v10  ;;  %v11636_v10 = vld [vmem:[%s17930_s8] ss:$0 sm:$0xff] }
 0x607   :  { %13712 = vmatpush3.bf16.msra.mxu1 %v13711_v63  ;;  %13647 = vmatprep.mubr.msk.f32.mxu1 %vm14401_vm4, %v18095_v7  ;;  %v11635_v63 = vld [vmem:[%s17928_s6] ss:$0 sm:$0xff]  ;;  %s14403_s6 = smov [#allocation8]  }
 0x608   :  { %13713 = vmatprep.subr.bf16.mxu1 %v14400_v24  ;;  %s10447_s8 = sshll.u32 %s14403_s6, 4  ;;  %s10448_s8 = int_to_ptr.vmem [resolvable:$true] %s10447_s8 }
 0x609   :  { %s14375_s28 = scalar_lea.vmem %s10448_s8, 32  ;;  %p14380_p1 = scmp.lt.s32.totalorder %s10448_s8, %s10448_s8 }
 0x60a   :  { %13648 = vmatmul.mubr.msk.f32.vlgmr.msra.gmra.mrb[108].mxu1 %vm8866_vm5, %v10153_v58  ;;  %p14376_p0 = scmp.ne.s32.totalorder %s10448_s8, %s14375_s28  ;;  %p14381_p2 = scmp.lt.s32.totalorder %s14375_s28, %s14375_s28 }
 0x60b   :  { %13715 = vmatpush3.bf16.msra.mxu1 %v13714_v3  ;;  %13654 = vmatprep.mubr.msk.f32.mxu1 %vm14401_vm4, %v18095_v7 }
 0x60c   :  { %13716 = vmatprep.subr.bf16.mxu1 %v14400_v24  ;;  %p14382_p3 = por %p14381_p2, %p14380_p1 }
 0x60e   :  { %13655 = vmatmul.mubr.msk.f32.vlgmr.msra.gmra.mrb[110].mxu1 %vm8866_vm5, %v10235_v22  ;;  %p14383_p4 = pnand %p14382_p3, %p14376_p0 }
 0x60f   :  { %13665 = vmatprep.mubr.msk.f32.mxu1 %vm14401_vm4, %v18095_v7  ;;  %13718 = vmatpush3.bf16.msra.mxu1 %v13717_v30  ;;  %v10320_v7 = vld [vmem:[%s17929_s7 + $0x18] sm:$0xff]  ;;  %v14402_v30 = vmov 1966171168  }
 0x610   :  { %13719 = vmatprep.subr.bf16.mxu1 %v14400_v24  ;;  %v13720_v32 = vpack.c.bf16 %v10320_v7, %v10319_v61  ;;  %v10416_v61 = vunpack.c.l.s4 %v14402_v30  ;;  %v10418_v7 = vlaneseq }
 0x613   :  { %13721 = vmatpush3.bf16.msra.mxu1 %v13720_v32  ;;  %v10417_v32 = vunpack.c.0.s8 %v10416_v61 }
 0x6a5   :  { %v9078_v18 = vpop.f32.mrb[80].mxu1 }
 0x6a6   :  { %v13551_v34 = vpop.f32.mrb[81].mxu1 }
 0x6a9   :  { %v9154_v33 = vpop.f32.mrb[82].mxu1 }
 0x6aa   :  { %v9155_v62 = vadd.f32 %v9154_v33, %v9078_v18  ;;  %v13558_v35 = vpop.f32.mrb[83].mxu1  ;;  %v10419_v18 = vshrl.u32 %v10418_v7, 7 }
 0x6ac   :  { %v10420_v34 = vsub.s32 %v10417_v32, %v10419_v18 }
 0x6ad   :  { %v9235_v8 = vpop.f32.mrb[84].mxu1 }
 0x6ae   :  { %v9239_v9 = vadd.f32 %v9235_v8, %v9155_v62  ;;  %v13565_v36 = vpop.f32.mrb[85].mxu1 }
 0x6b1   :  { %v9317_v31 = vpop.f32.mrb[86].mxu1 }
 0x6b2   :  { %v9321_v24 = vadd.f32 %v9317_v31, %v9239_v9  ;;  %v13572_v27 = vpop.f32.mrb[87].mxu1 }
 0x6b5   :  { %v9400_v41 = vpop.f32.mrb[88].mxu1 }
 0x6b6   :  { %v9404_v50 = vadd.f32 %v9400_v41, %v9321_v24  ;;  %v13579_v2 = vpop.f32.mrb[89].mxu1 }
 0x6b9   :  { %v9482_v19 = vpop.f32.mrb[90].mxu1 }
 0x6ba   :  { %v9486_v59 = vadd.f32 %v9482_v19, %v9404_v50  ;;  %v13586_v21 = vpop.f32.mrb[91].mxu1 }
 0x6bd   :  { %v9564_v1 = vpop.f32.mrb[92].mxu1 }
 0x6be   :  { %v9568_v37 = vadd.f32 %v9564_v1, %v9486_v59  ;;  %v13593_v12 = vpop.f32.mrb[93].mxu1 }
 0x6c1   :  { %v9646_v29 = vpop.f32.mrb[94].mxu1 }
 0x6c2   :  { %v9650_v60 = vadd.f32 %v9646_v29, %v9568_v37  ;;  %v13600_v40 = vpop.f32.mrb[95].mxu1 }
 0x6c5   :  { %v9729_v15 = vpop.f32.mrb[96].mxu1 }
 0x6c6   :  { %v9733_v13 = vadd.f32 %v9729_v15, %v9650_v60  ;;  %v13607_v47 = vpop.f32.mrb[97].mxu1 }
 0x6c9   :  { %v9811_v39 = vpop.f32.mrb[98].mxu1 }
 0x6ca   :  { %v9815_v16 = vadd.f32 %v9811_v39, %v9733_v13  ;;  %v13614_v53 = vpop.f32.mrb[99].mxu1 }
 0x6cd   :  { %v9893_v42 = vpop.f32.mrb[100].mxu1 }
 0x6ce   :  { %v9897_v56 = vadd.f32 %v9893_v42, %v9815_v16  ;;  %v13621_v6 = vpop.f32.mrb[101].mxu1 }
 0x6d1   :  { %v9975_v5 = vpop.f32.mrb[102].mxu1 }
 0x6d2   :  { %v9979_v49 = vadd.f32 %v9975_v5, %v9897_v56  ;;  %v13628_v54 = vpop.f32.mrb[103].mxu1 }
 0x6d5   :  { %v10058_v43 = vpop.f32.mrb[104].mxu1 }
 0x6d6   :  { %v10062_v0 = vadd.f32 %v10058_v43, %v9979_v49  ;;  %v13635_v23 = vpop.f32.mrb[105].mxu1 }
 0x6d9   :  { %v10140_v55 = vpop.f32.mrb[106].mxu1 }
 0x6da   :  { %v10144_v52 = vadd.f32 %v10140_v55, %v10062_v0  ;;  %v13642_v44 = vpop.f32.mrb[107].mxu1 }
 0x6dd   :  { %v10222_v57 = vpop.f32.mrb[108].mxu1 }
 0x6de   :  { %v10226_v4 = vadd.f32 %v10222_v57, %v10144_v52  ;;  %v13649_v26 = vpop.f32.mrb[109].mxu1 }
 0x6e1   :  { %v10304_v46 = vpop.f32.mrb[110].mxu1 }
 0x6e2   :  { %v10308_v48 = vadd.f32 %v10304_v46, %v10226_v4  ;;  %v13656_v14 = vpop.f32.mrb[111].mxu1 }
 0x6e4   :  { %v10316_v51 = vadd.f32 %v11635_v63, %v10308_v48 }
 0x6e6   :  { %13666 = vmatmul.mubr.msk.f32.vlgmr.msra.gmra.mrb[112].mxu1 %vm10328_vm8, %v10316_v51 }
 0x7b9   :  { %v10398_v28 = vpop.f32.mrb[112].mxu1 }
 0x7ba   :  { %v10399_v45 = vadd.f32 %v11636_v10, %v10398_v28  ;;  %v13667_v3 = vpop.f32.mrb[113].mxu1 }
 0x7bc   :  { %v10403_v17 = vsel %vm10402_vm9, %v10399_v45, -inf }
 0x7bd   :  { %10404 = vmax.xlane.f32.xlu0 %v10403_v17 }
 0x84a   :  { %v10405_v58 = vpop.xlane.xlu0 %10404 }
 0x84b   :  { %v10406_v11 = vsub.f32 %v10399_v45, %v10405_v58 }
 0x84d   :  { %v10407_v20 = vmul.f32 1.442695, %v10406_v11 }
 0x84f   :  { %14371 = vpow2.f32 %v10407_v20 }
 0x859   :  { %v14372_v22 = vpop.eup %14371 }
 0x85a   :  { %v10409_v25 = vsel %vm10402_vm9, %v14372_v22, 0.0 }
 0x85b   :  { %10410 = vadd.xlane.f32.xlu0 %v10409_v25 }
 0x8e8   :  { %v10411_v38 = vpop.xlane.xlu0 %10410 }
 0x8e9   :  { %14373 = vrcp.f32 %v10411_v38 }
 0x8f3   :  { %v14374_v33 = vpop.eup %14373 }
 0x8f4   :  { %v10413_v62 = vmul.f32 %v14374_v33, %v14372_v22 }
 0x8f6   :  { %v10421_v35 = vrot.slane %v10413_v62, %v10420_v34 }
 0x8f8   :  { %v10422_v8 = vcombine.high %v10421_v35, %v10421_v35  ;;  %v10429_v9 = vrot.slane %v10421_v35, %v10420_v34 }
 0x8fa   :  { %v10436_v36 = vrot.slane %v10422_v8, %v10420_v34  ;;  %10440 = vst.msk [vmem:[#allocation8] sm:$0x1] %vm10439_vm10, %v10429_v9 }
 0x8fc   :  { %10441 = vst.msk [vmem:[#allocation8 + $0x1] sm:$0x1] %vm10439_vm10, %v10436_v36 }
 0x8fd   :  { %14386 = shalt.err (!%p14383_p4)
}
 0x8fe   :  { %s14387_s30 = scalar_lea.hbm %s17931_s9, 32 }
 0x8ff   :  { %p14388_p5 = scmp.ne.s32.totalorder %s17931_s9, %s14387_s30  ;;  %p14391_p6 = scmp.lt.u32.totalorder %s14387_s30, %s17931_s9 }
 0x901   :  { %p14393_p7 = pnand %p14391_p6, %p14388_p5 }
 0x903   :  { %14396 = shalt.err (!%p14393_p7)
}
 0x904   :  { %s14404_s4 = smov 16   ;;  %s14405_s14 = smov 1  }
 0x905   :  { %10453 = dma.vmem_to_hbm [thread:$0]  %s10448_s8, 32, %s17931_s9, [#allocation9], %s14404_s4, %s14404_s4, %s14405_s14  }
 0x906   :  { %14397 = dma.done.wait [#allocation9], 32  }
 0x907   :  { %14398 = vsyncadd [#allocation9], 4294967264 }
 0x908   :  { %10457 = vsyncpa [#allocation9], 1 }

</bundles_post_ra>
